<compile_context>
chip_gen: v7x
topology: tpu7x:2x2x1
jax: 0.10.0
libtpu: 0.0.40
codegen_flags: <defaults>
</compile_context>

<pallas_src>
import functools
import numpy as np

import jax
import jax.numpy as jnp
from jax.experimental import pallas as pl
from jax.experimental.pallas import tpu as pltpu


# ----------------------------------------------------------------------------
# Kernel: one edge block of one node tile per grid step (flat 1-D grid).
# ----------------------------------------------------------------------------
def _rgat_block_kernel(res_lambda, leaky_slope, tile_n,
                       # scalar prefetch (SMEM): node-tile id of every block
                       blk_tile_ref,
                       # per-edge-block streams
                       head_col_ref, head_row_ref, te_ref, q1_ref, q2_ref,
                       # node-tile-resident inputs
                       emb_ref, res_ref, drop_ref,
                       # node-tile outputs
                       out_emb_ref, out_res_ref,
                       # scratch (persist across the blocks of a tile)
                       acc_ref, den_ref, m_ref):
    b = pl.program_id(0)
    nb = pl.num_programs(0)
    cur = blk_tile_ref[b]
    prev = blk_tile_ref[jnp.maximum(b - 1, 0)]
    nxt = blk_tile_ref[jnp.minimum(b + 1, nb - 1)]
    is_first = (b == 0) | (prev != cur)
    is_last = (b == nb - 1) | (nxt != cur)

    @pl.when(is_first)
    def _init():
        acc_ref[...] = jnp.zeros_like(acc_ref)
        den_ref[...] = jnp.zeros_like(den_ref)
        m_ref[...] = jnp.full_like(m_ref, -jnp.inf)

    tile_e = te_ref.shape[0]
    base = cur * tile_n

    te = te_ref[...]                                          # [TE, Dp]
    local_col = head_col_ref[...] - base                      # [TE, 1]
    valid = (local_col >= 0) & (local_col < tile_n)           # padding edges
                                                              # carry a sentinel

    # emb[head] gathered from the resident node tile via an MXU one-hot
    # ([TE,TN] @ [TN,Dp]); sentinel heads produce an all-zero row.
    lane_n = jax.lax.broadcasted_iota(jnp.int32, (tile_e, tile_n), 1)
    onehot_et = (lane_n == local_col).astype(jnp.float32)     # [TE, TN]
    he = jnp.dot(onehot_et, emb_ref[...],
                 preferred_element_type=jnp.float32)          # [TE, Dp]

    # (cat([he,te]) @ W) . rel == he . Q1[type] + te . Q2[type]
    logit = jnp.sum(he * q1_ref[...] + te * q2_ref[...],
                    axis=-1, keepdims=True)                   # [TE, 1]
    e = jnp.where(logit > 0, logit, leaky_slope * logit)      # LeakyReLU(0.2)

    # Flash-style running max.  One shift per node tile is a valid constant
    # shift for every head in it (softmax is shift-invariant per head), so
    # the result matches scatter_softmax up to fp32 rounding.
    m_old = m_ref[...]                                        # [1, 1]
    cmax = jnp.max(jnp.where(valid, e, -jnp.inf), axis=0, keepdims=True)
    m_new = jnp.maximum(m_old, cmax)
    rescale = jnp.where(m_new > -jnp.inf, jnp.exp(m_old - m_new), 0.0)
    acc_ref[...] = acc_ref[...] * rescale
    den_ref[...] = den_ref[...] * rescale
    m_ref[...] = m_new

    p = jnp.where(valid, jnp.exp(e - m_new), 0.0)             # [TE, 1]

    # Scatter-sum into the node tile with a [TN, TE] one-hot built from a
    # lane-layout copy of the head indices (plain NN matmuls, no transposes).
    local_row = head_row_ref[...] - base                      # [1, TE]
    sub_n = jax.lax.broadcasted_iota(jnp.int32, (tile_n, tile_e), 0)
    onehot_ne = (sub_n == local_row).astype(jnp.float32)      # [TN, TE]
    den_ref[...] += jnp.dot(onehot_ne, p,
                            preferred_element_type=jnp.float32)
    acc_ref[...] += jnp.dot(onehot_ne, p * te,
                            preferred_element_type=jnp.float32)

    @pl.when(is_last)
    def _finalize():
        den = den_ref[...]                                    # [TN, 1]
        safe = jnp.where(den > 0, den, 1.0)
        # softmax-weighted neighbor sum + self term, like the reference.
        agg = jnp.where(den > 0, acc_ref[...] / safe, 0.0) + emb_ref[...]
        x = agg * drop_ref[...]                               # message dropout
        # F.normalize: L2 along dim=1, eps=1e-12
        norm = jnp.sqrt(jnp.sum(x * x, axis=-1, keepdims=True))
        x = x * (1.0 / jnp.maximum(norm, 1e-12))
        out_emb_ref[...] = x
        out_res_ref[...] = res_lambda * res_ref[...] + x


# ----------------------------------------------------------------------------
# Host-side graph preprocessing (NumPy, once per graph, hop-invariant).
# ----------------------------------------------------------------------------
def _prepare_graph(head, tail, edge_type, n_nodes, tile_n, tile_e):
    """Sort edges by head, group them per node tile of `tile_n` rows and pad
    each group to a multiple of `tile_e`; every tile owns >= 1 block so every
    output tile is initialized and finalized.  Sentinel heads mark padding."""
    head = np.asarray(head).astype(np.int32)
    tail = np.asarray(tail).astype(np.int32)
    etyp = np.asarray(edge_type).astype(np.int32)

    order = np.argsort(head, kind="stable")
    head, tail, etyp = head[order], tail[order], etyp[order]

    n_pad = int(pl.cdiv(n_nodes, tile_n)) * tile_n
    num_tiles = n_pad // tile_n

    counts = np.bincount(head // tile_n, minlength=num_tiles)[:num_tiles]
    nblk = np.maximum(1, -(-counts // tile_e)).astype(np.int64)
    total_blk = int(nblk.sum())
    e_pad = total_blk * tile_e

    blk_start = np.zeros(num_tiles, np.int64)
    blk_start[1:] = np.cumsum(nblk)[:-1]

    # Sentinel head == n_pad is outside every tile's local range, so padding
    # edges never hit the one-hots / softmax.
    head_p = np.full(e_pad, n_pad, np.int32)
    tail_p = np.zeros(e_pad, np.int32)
    type_p = np.zeros(e_pad, np.int32)
    seg = np.zeros(num_tiles + 1, np.int64)
    seg[1:] = np.cumsum(counts)
    for t in range(num_tiles):
        s, cnt = int(seg[t]), int(counts[t])
        dst = int(blk_start[t]) * tile_e
        head_p[dst:dst + cnt] = head[s:s + cnt]
        tail_p[dst:dst + cnt] = tail[s:s + cnt]
        type_p[dst:dst + cnt] = etyp[s:s + cnt]

    blk_tile = np.repeat(np.arange(num_tiles, dtype=np.int32), nblk)
    return head_p, tail_p, type_p, blk_tile, total_blk, n_pad, e_pad


def _pad2d(x, rows, cols):
    return jnp.pad(x, ((0, rows - x.shape[0]), (0, cols - x.shape[1])))


# ----------------------------------------------------------------------------
# One RGAT hop == one pallas_call (flat grid over edge blocks).
# ----------------------------------------------------------------------------
def rgat_hop(emb_p, res_p, te, q1e, q2e, head_col, head_row, blk_tile, drop_p,
             *, tile_n, tile_e, total_blk, res_lambda, leaky_slope):
    n_pad, d_pad = emb_p.shape

    edge_map = lambda b, bt: (b, 0)
    edge_row_map = lambda b, bt: (0, b)
    node_map = lambda b, bt: (bt[b], 0)      # scalar-prefetched tile id

    kern = functools.partial(_rgat_block_kernel, float(res_lambda),
                             float(leaky_slope), tile_n)

    grid_spec = pltpu.PrefetchScalarGridSpec(
        num_scalar_prefetch=1,
        grid=(total_blk,),
        in_specs=[
            pl.BlockSpec((tile_e, 1), edge_map),        # head idx (sublane)
            pl.BlockSpec((1, tile_e), edge_row_map),    # head idx (lane)
            pl.BlockSpec((tile_e, d_pad), edge_map),    # emb[tail]
            pl.BlockSpec((tile_e, d_pad), edge_map),    # Q1[type]
            pl.BlockSpec((tile_e, d_pad), edge_map),    # Q2[type]
            pl.BlockSpec((tile_n, d_pad), node_map),    # emb tile (heads+self)
            pl.BlockSpec((tile_n, d_pad), node_map),    # residual tile
            pl.BlockSpec((tile_n, d_pad), node_map),    # dropout mask tile
        ],
        out_specs=[pl.BlockSpec((tile_n, d_pad), node_map),
                   pl.BlockSpec((tile_n, d_pad), node_map)],
        scratch_shapes=[pltpu.VMEM((tile_n, d_pad), jnp.float32),  # acc
                        pltpu.VMEM((tile_n, 1), jnp.float32),      # denom
                        pltpu.VMEM((1, 1), jnp.float32)],          # running max
    )

    out_emb, out_res = pl.pallas_call(
        kern,
        grid_spec=grid_spec,
        out_shape=(jax.ShapeDtypeStruct((n_pad, d_pad), jnp.float32),
                   jax.ShapeDtypeStruct((n_pad, d_pad), jnp.float32)),
        compiler_params=pltpu.CompilerParams(
            dimension_semantics=("arbitrary",),
            vmem_limit_bytes=32 * 1024 * 1024),
    )(blk_tile, head_col, head_row, te, q1e, q2e, emb_p, res_p, drop_p)
    return out_emb, out_res


# ----------------------------------------------------------------------------
# Full forward (mirrors RGAT.forward / RGAT.agg).
# ----------------------------------------------------------------------------
def rgat_forward(entity_emb, relation_emb, edge_index, edge_type, W,
                 n_hops=2, mess_dropout=True, dropout_rate=0.4,
                 res_lambda=0.5, dropout_key=None,
                 tile_n=256, tile_e=256, leaky_slope=0.2):
    assert tile_n % 8 == 0 and tile_e % 128 == 0
    n, d = entity_emb.shape
    d_pad = int(pl.cdiv(d, 128)) * 128       # lane-dense feature axis

    head, tail = edge_index
    (head_p, tail_p, type_p, blk_tile,
     total_blk, n_pad, e_pad) = _prepare_graph(
        head, tail, edge_type, n, tile_n, tile_e)

    blk_tile_d = jnp.asarray(blk_tile, jnp.int32)
    head_col = jnp.asarray(head_p, jnp.int32).reshape(e_pad, 1)
    head_row = jnp.asarray(head_p, jnp.int32).reshape(1, e_pad)
    gather_tail = jnp.asarray(tail_p, jnp.int32)
    gather_type = jnp.asarray(type_p, jnp.int32)

    emb_p = _pad2d(entity_emb.astype(jnp.float32), n_pad, d_pad)
    res_p = emb_p
    rel_p = _pad2d(relation_emb.astype(jnp.float32),
                   relation_emb.shape[0], d_pad)
    w1_p = _pad2d(W[:d].astype(jnp.float32), d_pad, d_pad)
    w2_p = _pad2d(W[d:].astype(jnp.float32), d_pad, d_pad)

    # Hop-invariant: Q1[r] = W1 @ rel[r], Q2[r] = W2 @ rel[r]  (tiny matmuls),
    # then one row gather per edge.  Replaces the per-edge-block Dp x Dp
    # matmuls of the projection entirely.
    q1 = jnp.dot(rel_p, w1_p.T)                               # [R, Dp]
    q2 = jnp.dot(rel_p, w2_p.T)                               # [R, Dp]
    q1e = jnp.take(q1, gather_type, axis=0)                   # [E_pad, Dp]
    q2e = jnp.take(q2, gather_type, axis=0)                   # [E_pad, Dp]

    keep = 1.0 - dropout_rate
    if mess_dropout:
        if dropout_key is None:
            dropout_key = jax.random.PRNGKey(0)
        keys = jax.random.split(dropout_key, n_hops)

    for h in range(n_hops):
        if mess_dropout:
            mask = (jax.random.bernoulli(keys[h], keep, (n_pad, d_pad))
                    .astype(jnp.float32) / keep)
        else:
            mask = jnp.ones((n_pad, d_pad), jnp.float32)
        # XLA glue: the only per-hop row gather left (emb[tail]).
        te = jnp.take(emb_p, gather_tail, axis=0)             # [E_pad, Dp]
        emb_p, res_p = rgat_hop(
            emb_p, res_p, te, q1e, q2e, head_col, head_row, blk_tile_d, mask,
            tile_n=tile_n, tile_e=tile_e, total_blk=total_blk,
            res_lambda=res_lambda, leaky_slope=leaky_slope)

    return res_p[:n, :d]


if __name__ == "__main__":
    # Small deterministic setup consistent with the module's forward.
    N, D, E, R = 128, 32, 512, 4          # entities, latdim, edges, relations
    n_hops = 2
    TN, TE = 64, 128                      # small tiles so the tiny demo
                                          # exercises multi-tile / multi-block
                                          # (production defaults are 256/256)

    key = jax.random.PRNGKey(0)
    k_ent, k_rel, k_head, k_tail, k_type, k_w, k_drop = jax.random.split(key, 7)

    entity_emb = jax.random.normal(k_ent, (N, D), dtype=jnp.float32)
    relation_emb = jax.random.normal(k_rel, (R, D), dtype=jnp.float32)
    head = jax.random.randint(k_head, (E,), 0, N)
    tail = jax.random.randint(k_tail, (E,), 0, N)
    edge_type = jax.random.randint(k_type, (E,), 0, R)

    # xavier_uniform_ with gain = calculate_gain('relu') = sqrt(2)
    gain = 2.0 ** 0.5
    bound = gain * (6.0 / (2 * D + D)) ** 0.5
    W = jax.random.uniform(k_w, (2 * D, D), dtype=jnp.float32,
                           minval=-bound, maxval=bound)

    out = rgat_forward(entity_emb, relation_emb, (head, tail), edge_type, W,
                       n_hops=n_hops, mess_dropout=True, dropout_rate=0.4,
                       res_lambda=0.5, dropout_key=k_drop,
                       tile_n=TN, tile_e=TE)
    jax.block_until_ready(out)
    print("KERNEL_OK")
</pallas_src>

<mosaic_0001>
module attributes {stable_mosaic.version = 11 : i64} {
  func.func @_rgat_block_kernel(%arg0: i32, %arg1: memref<5xi32, #tpu.memory_space<smem>>, %arg2: memref<128x1xi32, #tpu.memory_space<vmem>>, %arg3: memref<1x128xi32, #tpu.memory_space<vmem>>, %arg4: memref<128x128xf32, #tpu.memory_space<vmem>>, %arg5: memref<128x128xf32, #tpu.memory_space<vmem>>, %arg6: memref<128x128xf32, #tpu.memory_space<vmem>>, %arg7: memref<64x128xf32, #tpu.memory_space<vmem>>, %arg8: memref<64x128xf32, #tpu.memory_space<vmem>>, %arg9: memref<64x128xf32, #tpu.memory_space<vmem>>, %arg10: memref<64x128xf32, #tpu.memory_space<vmem>>, %arg11: memref<64x128xf32, #tpu.memory_space<vmem>>, %arg12: memref<64x128xf32, #tpu.memory_space<vmem>>, %arg13: memref<64x1xf32, #tpu.memory_space<vmem>>, %arg14: memref<1x1xf32, #tpu.memory_space<vmem>>) attributes {dimension_semantics = [#tpu.dimension_semantics<arbitrary>], iteration_bounds = array<i64: 5>, scalar_prefetch = 1 : i64, scratch_operands = 3 : i64, tpu.core_type = #tpu.core_type<tc>, window_params = [{transform_indices = @transform_0, window_bounds = array<i64: 128, 1>}, {transform_indices = @transform_1, window_bounds = array<i64: 1, 128>}, {transform_indices = @transform_2, window_bounds = array<i64: 128, 128>}, {transform_indices = @transform_3, window_bounds = array<i64: 128, 128>}, {transform_indices = @transform_4, window_bounds = array<i64: 128, 128>}, {transform_indices = @transform_5, window_bounds = array<i64: 64, 128>}, {transform_indices = @transform_6, window_bounds = array<i64: 64, 128>}, {transform_indices = @transform_7, window_bounds = array<i64: 64, 128>}, {transform_indices = @transform_8, window_bounds = array<i64: 64, 128>}, {transform_indices = @transform_9, window_bounds = array<i64: 64, 128>}]} {
    %0 = arith.index_cast %arg0 : i32 to index
    %1 = memref.load %arg1[%0] : memref<5xi32, #tpu.memory_space<smem>>
    %c1_i32 = arith.constant 1 : i32
    %2 = arith.subi %arg0, %c1_i32 : i32
    %c0_i32 = arith.constant 0 : i32
    %3 = arith.maxsi %2, %c0_i32 : i32
    %4 = arith.index_cast %3 : i32 to index
    %5 = memref.load %arg1[%4] : memref<5xi32, #tpu.memory_space<smem>>
    %c1_i32_0 = arith.constant 1 : i32
    %6 = arith.addi %arg0, %c1_i32_0 : i32
    %c4_i32 = arith.constant 4 : i32
    %7 = arith.minsi %6, %c4_i32 : i32
    %8 = arith.index_cast %7 : i32 to index
    %9 = memref.load %arg1[%8] : memref<5xi32, #tpu.memory_space<smem>>
    %c0_i32_1 = arith.constant 0 : i32
    %10 = arith.cmpi eq, %arg0, %c0_i32_1 : i32
    %11 = arith.cmpi ne, %5, %1 : i32
    %12 = arith.ori %10, %11 : i1
    %c4_i32_2 = arith.constant 4 : i32
    %13 = arith.cmpi eq, %arg0, %c4_i32_2 : i32
    %14 = arith.cmpi ne, %9, %1 : i32
    %15 = arith.ori %13, %14 : i1
    %16 = arith.extui %12 : i1 to i32
    %c0_i32_3 = arith.constant 0 : i32
    %17 = arith.cmpi ne, %16, %c0_i32_3 : i32
    scf.if %17 {
      %cst_48 = arith.constant 0.000000e+00 : f32
      %93 = vector.broadcast %cst_48 : f32 to vector<64x128xf32>
      %c0_49 = arith.constant 0 : index
      %c0_50 = arith.constant 0 : index
      %94 = vector.load %arg12[%c0_49, %c0_50] : memref<64x128xf32, #tpu.memory_space<vmem>>, vector<64x128xf32>
      tpu.vector_store %arg12[%c0_49, %c0_50], %93 {strides = array<i32>} : memref<64x128xf32, #tpu.memory_space<vmem>>, vector<64x128xf32>,
      %cst_51 = arith.constant 0.000000e+00 : f32
      %95 = vector.broadcast %cst_51 : f32 to vector<64x1xf32>
      %c0_52 = arith.constant 0 : index
      %c0_53 = arith.constant 0 : index
      %96 = vector.load %arg13[%c0_52, %c0_53] : memref<64x1xf32, #tpu.memory_space<vmem>>, vector<64x1xf32>
      tpu.vector_store %arg13[%c0_52, %c0_53], %95 {strides = array<i32>} : memref<64x1xf32, #tpu.memory_space<vmem>>, vector<64x1xf32>,
      %cst_54 = arith.constant 0xFF800000 : f32
      %97 = vector.broadcast %cst_54 : f32 to vector<1x1xf32>
      %c0_55 = arith.constant 0 : index
      %c0_56 = arith.constant 0 : index
      %98 = vector.load %arg14[%c0_55, %c0_56] : memref<1x1xf32, #tpu.memory_space<vmem>>, vector<1x1xf32>
      tpu.vector_store %arg14[%c0_55, %c0_56], %97 {strides = array<i32>} : memref<1x1xf32, #tpu.memory_space<vmem>>, vector<1x1xf32>,
    } else {
    }
    %c64_i32 = arith.constant 64 : i32
    %18 = arith.muli %1, %c64_i32 : i32
    %c0 = arith.constant 0 : index
    %c0_4 = arith.constant 0 : index
    %19 = vector.load %arg4[%c0, %c0_4] : memref<128x128xf32, #tpu.memory_space<vmem>>, vector<128x128xf32>
    %c0_5 = arith.constant 0 : index
    %c0_6 = arith.constant 0 : index
    %20 = vector.load %arg2[%c0_5, %c0_6] : memref<128x1xi32, #tpu.memory_space<vmem>>, vector<128x1xi32>
    %21 = vector.broadcast %18 : i32 to vector<128x1xi32>
    %22 = arith.subi %20, %21 : vector<128x1xi32>
    %c0_i32_7 = arith.constant 0 : i32
    %23 = vector.broadcast %c0_i32_7 : i32 to vector<128x1xi32>
    %24 = arith.cmpi sge, %22, %23 : vector<128x1xi32>
    %c64_i32_8 = arith.constant 64 : i32
    %25 = vector.broadcast %c64_i32_8 : i32 to vector<128x1xi32>
    %26 = arith.cmpi slt, %22, %25 : vector<128x1xi32>
    %27 = arith.andi %24, %26 : vector<128x1xi1>
    %28 = tpu.iota {dimensions = array<i32: 1>} : vector<128x64xi32>
    %29 = vector.broadcast %22 : vector<128x1xi32> to vector<128x64xi32>
    %30 = arith.cmpi eq, %28, %29 : vector<128x64xi32>
    %31 = arith.extui %30 : vector<128x64xi1> to vector<128x64xi32>
    %32 = arith.sitofp %31 : vector<128x64xi32> to vector<128x64xf32>
    %c0_9 = arith.constant 0 : index
    %c0_10 = arith.constant 0 : index
    %33 = vector.load %arg7[%c0_9, %c0_10] : memref<64x128xf32, #tpu.memory_space<vmem>>, vector<64x128xf32>
    %cst = arith.constant dense<0.000000e+00> : vector<128x128xf32>
    %34 = tpu.matmul %32, %33, %cst {dimension_numbers = #tpu.dot_dimension_numbers<[1], [0], [0], [1], [0, 0, 1, 1], [], []>} : vector<128x64xf32>, vector<64x128xf32>, vector<128x128xf32> -> vector<128x128xf32>
    %c0_11 = arith.constant 0 : index
    %c0_12 = arith.constant 0 : index
    %35 = vector.load %arg5[%c0_11, %c0_12] : memref<128x128xf32, #tpu.memory_space<vmem>>, vector<128x128xf32>
    %36 = arith.mulf %34, %35 : vector<128x128xf32>
    %c0_13 = arith.constant 0 : index
    %c0_14 = arith.constant 0 : index
    %37 = vector.load %arg6[%c0_13, %c0_14] : memref<128x128xf32, #tpu.memory_space<vmem>>, vector<128x128xf32>
    %38 = arith.mulf %19, %37 : vector<128x128xf32>
    %39 = arith.addf %36, %38 : vector<128x128xf32>
    %cst_15 = arith.constant dense<0.000000e+00> : vector<128xf32>
    %40 = vector.multi_reduction <add>, %39, %cst_15 [1] : vector<128x128xf32> to vector<128xf32>
    %41 = vector.shape_cast %40 : vector<128xf32> to vector<128x1xf32>
    %cst_16 = arith.constant 0.000000e+00 : f32
    %42 = vector.broadcast %cst_16 : f32 to vector<128x1xf32>
    %43 = arith.cmpf ogt, %41, %42 : vector<128x1xf32>
    %cst_17 = arith.constant 2.000000e-01 : f32
    %44 = vector.broadcast %cst_17 : f32 to vector<128x1xf32>
    %45 = arith.mulf %44, %41 : vector<128x1xf32>
    %46 = arith.select %43, %41, %45 : vector<128x1xi1>, vector<128x1xf32>
    %c0_18 = arith.constant 0 : index
    %c0_19 = arith.constant 0 : index
    %47 = vector.load %arg14[%c0_18, %c0_19] : memref<1x1xf32, #tpu.memory_space<vmem>>, vector<1x1xf32>
    %cst_20 = arith.constant 0xFF800000 : f32
    %48 = vector.broadcast %cst_20 : f32 to vector<128x1xf32>
    %49 = arith.select %27, %46, %48 : vector<128x1xi1>, vector<128x1xf32>
    %cst_21 = arith.constant dense<0xFF800000> : vector<1xf32>
    %50 = vector.multi_reduction <maximumf>, %49, %cst_21 [0] : vector<128x1xf32> to vector<1xf32>
    %51 = vector.shape_cast %50 : vector<1xf32> to vector<1x1xf32>
    %52 = arith.maximumf %47, %51 : vector<1x1xf32>
    %cst_22 = arith.constant 0xFF800000 : f32
    %53 = vector.broadcast %cst_22 : f32 to vector<1x1xf32>
    %54 = arith.cmpf ogt, %52, %53 : vector<1x1xf32>
    %55 = arith.subf %47, %52 : vector<1x1xf32>
    %56 = math.exp %55 : vector<1x1xf32>
    %cst_23 = arith.constant 0.000000e+00 : f32
    %57 = vector.broadcast %cst_23 : f32 to vector<1x1xf32>
    %58 = arith.select %54, %56, %57 : vector<1x1xi1>, vector<1x1xf32>
    %c0_24 = arith.constant 0 : index
    %c0_25 = arith.constant 0 : index
    %59 = vector.load %arg12[%c0_24, %c0_25] : memref<64x128xf32, #tpu.memory_space<vmem>>, vector<64x128xf32>
    %60 = vector.broadcast %58 : vector<1x1xf32> to vector<64x128xf32>
    %61 = arith.mulf %59, %60 : vector<64x128xf32>
    %c0_26 = arith.constant 0 : index
    %c0_27 = arith.constant 0 : index
    %62 = vector.load %arg12[%c0_26, %c0_27] : memref<64x128xf32, #tpu.memory_space<vmem>>, vector<64x128xf32>
    tpu.vector_store %arg12[%c0_26, %c0_27], %61 {strides = array<i32>} : memref<64x128xf32, #tpu.memory_space<vmem>>, vector<64x128xf32>,
    %c0_28 = arith.constant 0 : index
    %c0_29 = arith.constant 0 : index
    %63 = vector.load %arg13[%c0_28, %c0_29] : memref<64x1xf32, #tpu.memory_space<vmem>>, vector<64x1xf32>
    %64 = vector.broadcast %58 : vector<1x1xf32> to vector<64x1xf32>
    %65 = arith.mulf %63, %64 : vector<64x1xf32>
    %c0_30 = arith.constant 0 : index
    %c0_31 = arith.constant 0 : index
    %66 = vector.load %arg13[%c0_30, %c0_31] : memref<64x1xf32, #tpu.memory_space<vmem>>, vector<64x1xf32>
    tpu.vector_store %arg13[%c0_30, %c0_31], %65 {strides = array<i32>} : memref<64x1xf32, #tpu.memory_space<vmem>>, vector<64x1xf32>,
    %c0_32 = arith.constant 0 : index
    %c0_33 = arith.constant 0 : index
    %67 = vector.load %arg14[%c0_32, %c0_33] : memref<1x1xf32, #tpu.memory_space<vmem>>, vector<1x1xf32>
    tpu.vector_store %arg14[%c0_32, %c0_33], %52 {strides = array<i32>} : memref<1x1xf32, #tpu.memory_space<vmem>>, vector<1x1xf32>,
    %68 = vector.broadcast %52 : vector<1x1xf32> to vector<128x1xf32>
    %69 = arith.subf %46, %68 : vector<128x1xf32>
    %70 = math.exp %69 : vector<128x1xf32>
    %cst_34 = arith.constant 0.000000e+00 : f32
    %71 = vector.broadcast %cst_34 : f32 to vector<128x1xf32>
    %72 = arith.select %27, %70, %71 : vector<128x1xi1>, vector<128x1xf32>
    %c0_35 = arith.constant 0 : index
    %c0_36 = arith.constant 0 : index
    %73 = vector.load %arg3[%c0_35, %c0_36] : memref<1x128xi32, #tpu.memory_space<vmem>>, vector<1x128xi32>
    %74 = vector.broadcast %18 : i32 to vector<1x128xi32>
    %75 = arith.subi %73, %74 : vector<1x128xi32>
    %76 = tpu.iota {dimensions = array<i32: 0>} : vector<64x128xi32>
    %77 = vector.broadcast %75 : vector<1x128xi32> to vector<64x128xi32>
    %78 = arith.cmpi eq, %76, %77 : vector<64x128xi32>
    %79 = arith.extui %78 : vector<64x128xi1> to vector<64x128xi32>
    %80 = arith.sitofp %79 : vector<64x128xi32> to vector<64x128xf32>
    %c0_37 = arith.constant 0 : index
    %c0_38 = arith.constant 0 : index
    %81 = vector.load %arg13[%c0_37, %c0_38] : memref<64x1xf32, #tpu.memory_space<vmem>>, vector<64x1xf32>
    %cst_39 = arith.constant dense<0.000000e+00> : vector<64x1xf32>
    %82 = tpu.matmul %80, %72, %cst_39 {dimension_numbers = #tpu.dot_dimension_numbers<[1], [0], [0], [1], [0, 0, 1, 1], [], []>} : vector<64x128xf32>, vector<128x1xf32>, vector<64x1xf32> -> vector<64x1xf32>
    %83 = arith.addf %81, %82 : vector<64x1xf32>
    %c0_40 = arith.constant 0 : index
    %c0_41 = arith.constant 0 : index
    %84 = vector.load %arg13[%c0_40, %c0_41] : memref<64x1xf32, #tpu.memory_space<vmem>>, vector<64x1xf32>
    tpu.vector_store %arg13[%c0_40, %c0_41], %83 {strides = array<i32>} : memref<64x1xf32, #tpu.memory_space<vmem>>, vector<64x1xf32>,
    %c0_42 = arith.constant 0 : index
    %c0_43 = arith.constant 0 : index
    %85 = vector.load %arg12[%c0_42, %c0_43] : memref<64x128xf32, #tpu.memory_space<vmem>>, vector<64x128xf32>
    %86 = vector.broadcast %72 : vector<128x1xf32> to vector<128x128xf32>
    %87 = arith.mulf %86, %19 : vector<128x128xf32>
    %cst_44 = arith.constant dense<0.000000e+00> : vector<64x128xf32>
    %88 = tpu.matmul %80, %87, %cst_44 {dimension_numbers = #tpu.dot_dimension_numbers<[1], [0], [0], [1], [0, 0, 1, 1], [], []>} : vector<64x128xf32>, vector<128x128xf32>, vector<64x128xf32> -> vector<64x128xf32>
    %89 = arith.addf %85, %88 : vector<64x128xf32>
    %c0_45 = arith.constant 0 : index
    %c0_46 = arith.constant 0 : index
    %90 = vector.load %arg12[%c0_45, %c0_46] : memref<64x128xf32, #tpu.memory_space<vmem>>, vector<64x128xf32>
    tpu.vector_store %arg12[%c0_45, %c0_46], %89 {strides = array<i32>} : memref<64x128xf32, #tpu.memory_space<vmem>>, vector<64x128xf32>,
    %91 = arith.extui %15 : i1 to i32
    %c0_i32_47 = arith.constant 0 : i32
    %92 = arith.cmpi ne, %91, %c0_i32_47 : i32
    scf.if %92 {
      %c0_48 = arith.constant 0 : index
      %c0_49 = arith.constant 0 : index
      %93 = vector.load %arg13[%c0_48, %c0_49] : memref<64x1xf32, #tpu.memory_space<vmem>>, vector<64x1xf32>
      %cst_50 = arith.constant 0.000000e+00 : f32
      %94 = vector.broadcast %cst_50 : f32 to vector<64x1xf32>
      %95 = arith.cmpf ogt, %93, %94 : vector<64x1xf32>
      %cst_51 = arith.constant 1.000000e+00 : f32
      %96 = vector.broadcast %cst_51 : f32 to vector<64x1xf32>
      %97 = arith.select %95, %93, %96 : vector<64x1xi1>, vector<64x1xf32>
      %cst_52 = arith.constant 0.000000e+00 : f32
      %98 = vector.broadcast %cst_52 : f32 to vector<64x1xf32>
      %99 = arith.cmpf ogt, %93, %98 : vector<64x1xf32>
      %c0_53 = arith.constant 0 : index
      %c0_54 = arith.constant 0 : index
      %100 = vector.load %arg12[%c0_53, %c0_54] : memref<64x128xf32, #tpu.memory_space<vmem>>, vector<64x128xf32>
      %101 = vector.broadcast %97 : vector<64x1xf32> to vector<64x128xf32>
      %102 = arith.divf %100, %101 : vector<64x128xf32>
      %cst_55 = arith.constant 0.000000e+00 : f32
      %103 = vector.shape_cast %99 : vector<64x1xi1> to vector<64x1xi1>
      %104 = vector.broadcast %103 : vector<64x1xi1> to vector<64x128xi1>
      %105 = vector.broadcast %cst_55 : f32 to vector<64x128xf32>
      %106 = arith.select %104, %102, %105 : vector<64x128xi1>, vector<64x128xf32>
      %c0_56 = arith.constant 0 : index
      %c0_57 = arith.constant 0 : index
      %107 = vector.load %arg7[%c0_56, %c0_57] : memref<64x128xf32, #tpu.memory_space<vmem>>, vector<64x128xf32>
      %108 = arith.addf %106, %107 : vector<64x128xf32>
      %c0_58 = arith.constant 0 : index
      %c0_59 = arith.constant 0 : index
      %109 = vector.load %arg9[%c0_58, %c0_59] : memref<64x128xf32, #tpu.memory_space<vmem>>, vector<64x128xf32>
      %110 = arith.mulf %108, %109 : vector<64x128xf32>
      %111 = arith.mulf %110, %110 : vector<64x128xf32>
      %cst_60 = arith.constant dense<0.000000e+00> : vector<64xf32>
      %112 = vector.multi_reduction <add>, %111, %cst_60 [1] : vector<64x128xf32> to vector<64xf32>
      %113 = vector.shape_cast %112 : vector<64xf32> to vector<64x1xf32>
      %114 = math.sqrt %113 : vector<64x1xf32>
      %cst_61 = arith.constant 9.99999996E-13 : f32
      %115 = vector.broadcast %cst_61 : f32 to vector<64x1xf32>
      %116 = arith.maximumf %114, %115 : vector<64x1xf32>
      %cst_62 = arith.constant 1.000000e+00 : f32
      %117 = vector.broadcast %cst_62 : f32 to vector<64x1xf32>
      %118 = arith.divf %117, %116 : vector<64x1xf32>
      %119 = vector.broadcast %118 : vector<64x1xf32> to vector<64x128xf32>
      %120 = arith.mulf %110, %119 : vector<64x128xf32>
      %c0_63 = arith.constant 0 : index
      %c0_64 = arith.constant 0 : index
      %121 = vector.load %arg10[%c0_63, %c0_64] : memref<64x128xf32, #tpu.memory_space<vmem>>, vector<64x128xf32>
      tpu.vector_store %arg10[%c0_63, %c0_64], %120 {strides = array<i32>} : memref<64x128xf32, #tpu.memory_space<vmem>>, vector<64x128xf32>,
      %c0_65 = arith.constant 0 : index
      %c0_66 = arith.constant 0 : index
      %122 = vector.load %arg8[%c0_65, %c0_66] : memref<64x128xf32, #tpu.memory_space<vmem>>, vector<64x128xf32>
      %cst_67 = arith.constant 5.000000e-01 : f32
      %123 = vector.broadcast %cst_67 : f32 to vector<64x128xf32>
      %124 = arith.mulf %123, %122 : vector<64x128xf32>
      %125 = arith.addf %124, %120 : vector<64x128xf32>
      %c0_68 = arith.constant 0 : index
      %c0_69 = arith.constant 0 : index
      %126 = vector.load %arg11[%c0_68, %c0_69] : memref<64x128xf32, #tpu.memory_space<vmem>>, vector<64x128xf32>
      tpu.vector_store %arg11[%c0_68, %c0_69], %125 {strides = array<i32>} : memref<64x128xf32, #tpu.memory_space<vmem>>, vector<64x128xf32>,
    } else {
    }
    return
  }
  func.func @transform_0(%arg0: i32, %arg1: memref<5xi32, #tpu.memory_space<smem>>) -> (i32, i32) {
    %c0_i32 = arith.constant 0 : i32
    %c0_i32_0 = arith.constant 0 : i32
    return %arg0, %c0_i32 : i32, i32
  }
  func.func @transform_1(%arg0: i32, %arg1: memref<5xi32, #tpu.memory_space<smem>>) -> (i32, i32) {
    %c0_i32 = arith.constant 0 : i32
    %c0_i32_0 = arith.constant 0 : i32
    return %c0_i32, %arg0 : i32, i32
  }
  func.func @transform_2(%arg0: i32, %arg1: memref<5xi32, #tpu.memory_space<smem>>) -> (i32, i32) {
    %c0_i32 = arith.constant 0 : i32
    %c0_i32_0 = arith.constant 0 : i32
    return %arg0, %c0_i32 : i32, i32
  }
  func.func @transform_3(%arg0: i32, %arg1: memref<5xi32, #tpu.memory_space<smem>>) -> (i32, i32) {
    %c0_i32 = arith.constant 0 : i32
    %c0_i32_0 = arith.constant 0 : i32
    return %arg0, %c0_i32 : i32, i32
  }
  func.func @transform_4(%arg0: i32, %arg1: memref<5xi32, #tpu.memory_space<smem>>) -> (i32, i32) {
    %c0_i32 = arith.constant 0 : i32
    %c0_i32_0 = arith.constant 0 : i32
    return %arg0, %c0_i32 : i32, i32
  }
  func.func @transform_5(%arg0: i32, %arg1: memref<5xi32, #tpu.memory_space<smem>>) -> (i32, i32) {
    %0 = arith.index_cast %arg0 : i32 to index
    %1 = memref.load %arg1[%0] : memref<5xi32, #tpu.memory_space<smem>>
    %c0_i32 = arith.constant 0 : i32
    %c0_i32_0 = arith.constant 0 : i32
    return %1, %c0_i32 : i32, i32
  }
  func.func @transform_6(%arg0: i32, %arg1: memref<5xi32, #tpu.memory_space<smem>>) -> (i32, i32) {
    %0 = arith.index_cast %arg0 : i32 to index
    %1 = memref.load %arg1[%0] : memref<5xi32, #tpu.memory_space<smem>>
    %c0_i32 = arith.constant 0 : i32
    %c0_i32_0 = arith.constant 0 : i32
    return %1, %c0_i32 : i32, i32
  }
  func.func @transform_7(%arg0: i32, %arg1: memref<5xi32, #tpu.memory_space<smem>>) -> (i32, i32) {
    %0 = arith.index_cast %arg0 : i32 to index
    %1 = memref.load %arg1[%0] : memref<5xi32, #tpu.memory_space<smem>>
    %c0_i32 = arith.constant 0 : i32
    %c0_i32_0 = arith.constant 0 : i32
    return %1, %c0_i32 : i32, i32
  }
  func.func @transform_8(%arg0: i32, %arg1: memref<5xi32, #tpu.memory_space<smem>>) -> (i32, i32) {
    %0 = arith.index_cast %arg0 : i32 to index
    %1 = memref.load %arg1[%0] : memref<5xi32, #tpu.memory_space<smem>>
    %c0_i32 = arith.constant 0 : i32
    %c0_i32_0 = arith.constant 0 : i32
    return %1, %c0_i32 : i32, i32
  }
  func.func @transform_9(%arg0: i32, %arg1: memref<5xi32, #tpu.memory_space<smem>>) -> (i32, i32) {
    %0 = arith.index_cast %arg0 : i32 to index
    %1 = memref.load %arg1[%0] : memref<5xi32, #tpu.memory_space<smem>>
    %c0_i32 = arith.constant 0 : i32
    %c0_i32_0 = arith.constant 0 : i32
    return %1, %c0_i32 : i32, i32
  }
}

</mosaic_0001>

<bundles_post_ra>
// kernel: tpu_custom_call.1
= control target key start
LH: loop header
LB: loop body
LE: loop exit
PB: predicated region body
PF: predicated region fallthrough
CT: control target
= control target key end

     0   :  { %s5226_s0 = inlined_call_operand.vmem [shape: s32[5], index: 0, kind: input, shape index: {}]   ;;  %s5227_s1 = inlined_call_operand.vmem [shape: s32[640,1], index: 1, kind: input, shape index: {}]   ;;  %s5228_s2 = inlined_call_operand.vmem [shape: s32[1,640], index: 2, kind: input, shape index: {}]   ;;  %s5229_s3 = inlined_call_operand.vmem [shape: f32[640,128], index: 3, kind: input, shape index: {}]   ;;  %s5230_s4 = inlined_call_operand.hbm [shape: f32[640,128], index: 4, kind: input, shape index: {}]   ;;  %s5231_s5 = inlined_call_operand.hbm [shape: f32[640,128], index: 5, kind: input, shape index: {}]   ;;  %s5232_s6 = inlined_call_operand.hbm [shape: f32[128,128], index: 6, kind: input, shape index: {}]   ;;  %s5233_s7 = inlined_call_operand.hbm [shape: f32[128,128], index: 7, kind: input, shape index: {}]   ;;  %s5234_s8 = inlined_call_operand.hbm [shape: f32[128,128], index: 8, kind: input, shape index: {}]   ;;  %s5235_s9 = inlined_call_operand.hbm [shape: f32[128,128], index: 9, kind: output, shape index: {0}]   ;;  %s5236_s10 = inlined_call_operand.hbm [shape: f32[128,128], index: 10, kind: output, shape index: {1}]  }
   0x1   :  { %5320 = sst [smem:[#allocation75_spill]] %s5227_s1  ;;  %s16_s15 = sshll.u32 %s5226_s0, 4  ;;  %s17_s15 = int_to_ptr.vmem [resolvable:$true] %s16_s15 }
   0x2   :  { %5321 = sst [smem:[#allocation76_spill]] %s5228_s2  ;;  %s3088_s16 = scalar_lea.vmem %s17_s15, 16 }
   0x3   :  { %5322 = sst [smem:[#allocation77_spill]] %s5229_s3  ;;  %p3089_p0 = scmp.ne.s32.totalorder %s17_s15, %s3088_s16 }
   0x4   :  { %5323 = sst [smem:[#allocation78_spill]] %s5230_s4  ;;  %p3093_p1 = scmp.lt.s32.totalorder %s17_s15, %s17_s15 }
   0x5   :  { %5324 = sst [smem:[#allocation79_spill]] %s5231_s5  ;;  %p3094_p2 = scmp.lt.s32.totalorder %s3088_s16, %s3088_s16 }
   0x6   :  { %5325 = sst [smem:[#allocation80_spill]] %s5232_s6 }
   0x7   :  { %5326 = sst [smem:[#allocation81_spill]] %s5233_s7  ;;  %p3095_p3 = por %p3094_p2, %p3093_p1 }
   0x8   :  { %5327 = sst [smem:[#allocation82_spill]] %s5234_s8 }
   0x9   :  { %5328 = sst [smem:[#allocation83_spill]] %s5235_s9  ;;  %p3096_p4 = pnand %p3095_p3, %p3089_p0 }
   0xa   :  { %5329 = sst [smem:[#allocation84_spill]] %s5236_s10 }
   0xb   :  { %3099 = shalt.err (!%p3096_p4)  }
   0xc   :  { %s3488_s17 = smov [#allocation6]  }
   0xd   :  { %19 = dma.vmem_to_smem %s17_s15, 16, %s3488_s17, [#allocation5] }
   0xe   :  { %3382 = dma.done.wait [#allocation5], 16 }
   0xf   :  { %3383 = vsyncadd [#allocation5], 4294967280 }
  0x10   :  { %21 = sfence }
  0x11   :  { %22 = vsyncpa [#allocation8], 0 }
  0x12   :  { %24 = vsyncpa [#allocation8 + $0x1], 0 }
  0x13   :  { %25 = vsyncpa [#allocation11], 0 }
  0x14   :  { %27 = vsyncpa [#allocation11 + $0x1], 0 }
  0x15   :  { %28 = vsyncpa [#allocation14], 0 }
  0x16   :  { %30 = vsyncpa [#allocation14 + $0x1], 0 }
  0x17   :  { %31 = vsyncpa [#allocation9], 0 }
  0x18   :  { %33 = vsyncpa [#allocation9 + $0x1], 0 }
  0x19   :  { %34 = vsyncpa [#allocation18], 0 }
  0x1a   :  { %36 = vsyncpa [#allocation18 + $0x1], 0  ;;  %s3564_s0 = smov 0   ;;  %s3566_s18 = smov 0  }
  0x1b   :  { %s3568_s19 = smov 0   ;;  %s3570_s20 = smov 0  }
  0x1c   :  { %s3572_s21 = smov 0   ;;  %s3574_s22 = smov 0  }
  0x1d   :  { %s3576_s23 = smov 0   ;;  %s3578_s24 = smov 0  }
  0x1e   :  { %s3580_s25 = smov 0   ;;  %s3582_s26 = smov 0  }
  0x1f   :  { %s3584_s27 = smov 0   ;;  %s3586_s28 = smov 0  }
  0x20   :  { %s3588_s29 = smov 0   ;;  %s3590_s30 = smov 0  }
  0x21   :  { %s3592_s11 = smov 0   ;;  %s3594_s12 = smov 0  }
  0x22   :  { %s3596_s13 = smov 0   ;;  %s3598_s14 = smov 0  }
  0x23   :  { %s3600_s15 = smov 0  }
  0x24 LB: > { %5330 = sst [smem:[#allocation35_spill]] %s3414_s0  ;;  %s3658_s16 = sadd.s32 4294967295, %s3486_s15   ;;  %s3486_s15 = sphi %s3600_s15, %s5609_s15   ;;  %s3482_s14 = sphi %s3598_s14, %s5598_s14   ;;  %s3478_s13 = sphi %s3596_s13, %s5608_s13   ;;  %s3474_s12 = sphi %s3594_s12, %s5596_s12   ;;  %s3470_s11 = sphi %s3592_s11, %s5595_s11   ;;  %s3466_s30 = sphi %s3590_s30, %s5607_s30   ;;  %s3462_s29 = sphi %s3588_s29, %s5606_s29   ;;  %s3458_s28 = sphi %s3586_s28, %s5605_s28   ;;  %s3454_s27 = sphi %s3584_s27, %s5604_s27   ;;  %s3450_s26 = sphi %s3582_s26, %s5603_s26   ;;  %s3446_s25 = sphi %s3580_s25, %s5602_s25   ;;  %s3442_s24 = sphi %s3578_s24, %s5601_s24   ;;  %s3438_s23 = sphi %s3576_s23, %s5600_s23   ;;  %s3434_s22 = sphi %s3574_s22, %s5599_s22   ;;  %s3430_s21 = sphi %s3572_s21, %s5589_s21   ;;  %s3426_s20 = sphi %s3570_s20, %s5588_s20   ;;  %s3422_s19 = sphi %s3568_s19, %s5587_s19   ;;  %s3418_s18 = sphi %s3566_s18, %s5586_s18   ;;  %s3414_s0 = sphi %s3564_s0, %s5585_s0  }
  0x25   : > { %5331 = sst [smem:[#allocation36_spill]] %s3418_s18  ;;  %s2369_s17 = sadd.s32 4294967294, %s3486_s15  }
  0x26   : > { %5332 = sst [smem:[#allocation37_spill]] %s3422_s19  ;;  %s3662_s10 = sadd.s32 1, %s3486_s15  }
  0x27   : > { %5333 = sst [smem:[#allocation38_spill]] %s3426_s20  ;;  %s127_s9 = sadd.s32 1, %s3482_s14 }
  0x28   : > { %5334 = sst [smem:[#allocation39_spill]] %s3430_s21  ;;  %s124_s2 = ssub.s32 %s3486_s15, %s3662_s10 }
  0x29   : > { %5335 = sst [smem:[#allocation40_spill]] %s3434_s22  ;;  %p134_p5 = scmp.ne.s32.totalorder %s3482_s14, %s3478_s13 }
  0x2a   : > { %5336 = sst [smem:[#allocation41_spill]] %s3438_s23  ;;  %p125_p6 = scmp.eq.s32.totalorder %s124_s2, 0 }
  0x2b   : > { %5337 = sst [smem:[#allocation42_spill]] %s3446_s25  ;;  %p5258_p7 = scmp.eq.s32.totalorder %s3486_s15, 0 }
  0x2c   : > { %5338 = sst [smem:[#allocation43_spill]] %s3470_s11  ;;  %p140_p8 = scmp.ne.s32.totalorder %s3478_s13, %s3474_s12 }
  0x2d   : > { %5339 = sst [smem:[#allocation44_spill]] %s3478_s13  ;;  %p5251_p9 = scmp.eq.s32.totalorder %s3658_s16, 0 }
  0x2e   : > { %5340 = sst [smem:[#allocation45_spill]] %s3482_s14  ;;  %p3677_p10 = por %p5258_p7, %p134_p5 }
  0x2f   : > { %s3673_s3 = scalar_select %p125_p6, %s3482_s14, %s127_s9  }
  0x30   : > { %p3683_p11 = por %p5251_p9, %p140_p8  ;;  %s260_s2 = sld [smem:[#allocation6 + %s3486_s15]] }
  0x31   : > { %5341 = sst [smem:[#allocation46_spill]] %s3673_s3  ;;  %s265_s9 = sadd.s32 1, %s3434_s22 }
  0x32   : > { %s5343_s8 = scalar_select %p3683_p11, 1, 0 }
  0x33   : > { %s261_s12 = sld [smem:[#allocation6 + %s3662_s10]]  ;;  %p275_p12 = scmp.ne.s32.totalorder %s3434_s22, %s3430_s21 }
  0x34   : > { %5344 = sst [smem:[#allocation47_spill]] %s5343_s8  ;;  %p5256_p13 = scmp.eq.s32.totalorder %s3658_s16, 4 }
  0x35   : > { %p281_p0 = scmp.ne.s32.totalorder %s3430_s21, %s3426_s20  ;;  %p3695_p1 = scmp.eq.s32.totalorder %s2369_s17, 4 }
  0x36   : > { %s288_s13 = sld [smem:[#allocation6 + %s3486_s15]]  ;;  %p3702_p2 = por %p5256_p13, %p275_p12 }
  0x37   : > { %s289_s6 = sld [smem:[#allocation6 + %s3662_s10]]  ;;  %p3709_p3 = por %p3695_p1, %p281_p0 }
  0x38   : > { %s5346_s8 = scalar_select %p3702_p2, 1, 0 }
  0x39   : > { %s5348_s20 = scalar_select %p3709_p3, 1, 0 }
  0x3a   : > { %5347 = sst [smem:[#allocation48_spill]] %s5346_s8  ;;  %s293_s17 = sadd.s32 1, %s3422_s19 }
  0x3b   : > { %5349 = sst [smem:[#allocation49_spill]] %s5348_s20  ;;  %s262_s21 = ssub.s32 %s260_s2, %s261_s12 }
  0x3c   : > { %p303_p4 = scmp.ne.s32.totalorder %s3422_s19, %s3418_s18  ;;  %p263_p5 = scmp.eq.s32.totalorder %s262_s21, 0 }
  0x3d   : > { %p309_p6 = scmp.ne.s32.totalorder %s3418_s18, %s3414_s0  ;;  %s290_s25 = ssub.s32 %s288_s13, %s289_s6 }
  0x3e   : > { %p3720_p8 = por %p303_p4, %p5256_p13  ;;  %p291_p0 = scmp.eq.s32.totalorder %s290_s25, 0 }
  0x3f   : > { %s3725_s23 = scalar_select %p263_p5, %s3434_s22, %s265_s9  }
  0x40   : > { %s5350_s8 = scalar_select %p3720_p8, 1, 0 }
  0x41   : > { %5352 = sst [smem:[#allocation51_spill]] %s3725_s23  ;;  %p3729_p12 = por %p309_p6, %p3695_p1 }
  0x42   : > { %5351 = sst [smem:[#allocation50_spill]] %s5350_s8  ;;  %p5257_p9 = scmp.lt.s32.totalorder %s3486_s15, 5 }
  0x43   : > { %s5353_s20 = scalar_select %p3729_p12, 1, 0 }
  0x44   : > { %s5253_s2 = sand.u32 1, %s3482_s14   ;;  %s5254_s21 = sshll.u32 %s3486_s15, 11 }
  0x45   : > { %5354 = sst [smem:[#allocation52_spill]] %s5353_s20  ;;  %s3741_s0 = sshll.u32 %s5253_s2, 7 }
  0x46   : > { %s3737_s12 = scalar_select %p291_p0, %s3422_s19, %s293_s17  }
  0x47   : > { %p3747_p4 = pnand %p5257_p9, %p3677_p10  ;;  %s5259_s3 = sand.u32 1, %s3486_s15  }
  0x48   : > { %5355 = sst [smem:[#allocation53_spill]] %s3737_s12  ;;  %s379_s1 = scalar_lea.vmem [#allocation10], %s3741_s0 }
  0x49   : > { %s5357_s5 = sld [smem:[#allocation79_spill]]  ;;  %s386_s17 = sshll.u32 %s379_s1, 4  ;;  %s3760_s17 = int_to_ptr.vmem [resolvable:$true] %s386_s17 }
  0x4a   : > { %s3765_s2 = scalar_lea.sflag [#allocation11], %s5259_s3  ;;  %p3102_p5 = pneg %p3747_p4 }
  0x4f   : > { %s3757_s13 = scalar_lea.hbm %s5357_s5, %s5254_s21  ;;  %s3105_s21 = scalar_lea.hbm %s5357_s5, 10240 }
  0x50   : > { %s3100_s23 = scalar_lea.hbm %s3757_s13, 2048  ;;  %p3106_p13 = scmp.lt.u32.totalorder %s3757_s13, %s5357_s5 }
  0x51   : > { %p3101_p1 = scmp.ne.s32.totalorder %s3757_s13, %s3100_s23  ;;  %p3107_p9 = scmp.lt.u32.totalorder %s3105_s21, %s3100_s23 }
  0x52   : > { %p3109_p10 = scmp.lt.u32.totalorder %s3100_s23, %s3757_s13 }
  0x53   : > { %p3103_p6 = pnand %p3102_p5, %p3101_p1  ;;  %p3108_p7 = por %p3107_p9, %p3106_p13 }
  0x55   : > { %p3104_p0 = pneg %p3103_p6  ;;  %p3110_p12 = por %p3109_p10, %p3108_p7 }
  0x57   : > { %p3111_p3 = pnand %p3110_p12, %p3104_p0 }
  0x59   : > { %3114 = shalt.err (!%p3111_p3)
}
  0x5a   : > { %s3115_s3 = scalar_lea.vmem %s3760_s17, 2048  ;;  %s3489_s6 = smov [#allocation10]  }
  0x5b   : > { %p3116_p1 = scmp.ne.s32.totalorder %s3760_s17, %s3115_s3  ;;  %s3120_s25 = sshll.u32 %s3489_s6, 4  ;;  %s3121_s25 = int_to_ptr.vmem [resolvable:$false] %s3120_s25 }
  0x5c   : > { %s3122_s22 = scalar_lea.vmem %s3121_s25, 4096  ;;  %p3123_p2 = scmp.lt.s32.totalorder %s3760_s17, %s3121_s25 }
  0x5d   : > { %p3118_p6 = pnand %p3116_p1, %p3102_p5  ;;  %p3124_p9 = scmp.lt.s32.totalorder %s3122_s22, %s3115_s3 }
  0x5f   : > { %p3119_p8 = pneg %p3118_p6  ;;  %p3125_p13 = por %p3124_p9, %p3123_p2 }
  0x61   : > { %p3126_p7 = pnand %p3125_p13, %p3119_p8 }
  0x63   : > { %3129 = shalt.err (!%p3126_p7)
}
  0x64   : > { %s5262_s23 = smov 128   ;;  %s5264_s21 = smov 8  }
  0x65   : > { %2814 = dma.hbm_to_vmem [thread:$0]  (!%p3747_p4), %s3757_s13, 2048, %s3760_s17, %s3765_s2, %s5262_s23, %s5262_s23, %s5264_s21  }
  0x66   : > { %p460_p2 = scmp.lt.s32.totalorder %s3486_s15, 6  ;;  %p5358_p3 = scmp.ge.s32.totalorder %s3486_s15, 1 }
  0x67   : > { %s204_s1 = sld [smem:[#allocation6 + %s3486_s15]]  ;;  %s209_s25 = sadd.s32 1, %s3458_s28 }
  0x68   : > { %p3799_p8 = pnand %p5358_p3, %p460_p2  ;;  %s205_s6 = sld [smem:[#allocation6 + %s3662_s10]] }
  0x69   : > { %p216_p12 = scmp.ne.s32.totalorder %s3458_s28, %s3454_s27  ;;  %p222_p10 = scmp.ne.s32.totalorder %s3454_s27, %s3450_s26 }
  0x6a   : > { %s5359_s3 = scalar_select %p3799_p8, 1, 0 }
  0x6b   : > { %p5360_p0 = scmp.eq.s32.totalorder %s3486_s15, 0  ;;  %s420_s13 = sand.u32 1, %s3458_s28  }
  0x6c   : > { %p5362_p6 = scmp.eq.s32.totalorder %s3658_s16, 0  ;;  %s2381_s23 = sshll.u32 %s420_s13, 6 }
  0x6d   : > { %p3812_p1 = por %p216_p12, %p5360_p0  ;;  %p5364_p13 = scmp.lt.s32.totalorder %s3486_s15, 5 }
  0x6e   : > { %p3819_p9 = por %p222_p10, %p5362_p6  ;;  %s206_s21 = ssub.s32 %s204_s1, %s205_s6 }
  0x6f   : > { %p3827_p7 = pnand %p5364_p13, %p3812_p1  ;;  %s422_s5 = scalar_lea.vmem [#allocation13], %s2381_s23 }
  0x70   : > { %s5363_s17 = scalar_select %p3819_p9, 1, 0 }
  0x71   : > { %s430_s12 = sshll.u32 %s422_s5, 4  ;;  %p207_p2 = scmp.eq.s32.totalorder %s206_s21, 0  ;;  %s3831_s12 = int_to_ptr.vmem [resolvable:$true] %s430_s12 }
  0x72   : > { %s2789_s19 = scalar_select %p3812_p1, [#allocation6], [#allocation20] }
  0x73   : > { %s3836_s20 = scalar_select %p207_p2, %s3458_s28, %s209_s25  }
  0x74   : > { %s2790_s13 = scalar_select %p3812_p1, %s3486_s15, 0 }
  0x75   : > { %5366 = sst [smem:[#allocation54_spill]] %s3836_s20  ;;  %p5367_p3 = pmov %p5364_p13 }
  0x76   : > { %s5369_s18 = sshll.u32 %s3486_s15, 11  ;;  %s5370_s4 = sld [smem:[#allocation78_spill]] }
  0x77   : > { %s5611_s19 = smov (!%p5367_p3, %s2789_s19), [#allocation25]  ;;  %p5368_p12 = pmov %p5367_p3 }
  0x78   : > { %s358_s21 = scalar_lea.vmem [#allocation7], %s3741_s0  ;;  %s5371_s25 = sand.u32 1, %s3482_s14  }
  0x79   : > { %s5613_s13 = smov (!%p5368_p12, %s2790_s13), 0  ;;  %s365_s6 = sshll.u32 %s358_s21, 4  ;;  %s3855_s6 = int_to_ptr.vmem [resolvable:$true] %s365_s6 }
  0x7a   : > { %s3845_s8 = sld [smem:[%s5611_s19 + %s5613_s13]]  ;;  %s3859_s22 = scalar_lea.sflag [#allocation8], %s5371_s25 }
  0x7c   : > { %s3852_s5 = scalar_lea.hbm %s5370_s4, %s5369_s18  ;;  %s3135_s13 = scalar_lea.hbm %s5370_s4, 10240 }
  0x7d   : > { %s3130_s20 = scalar_lea.hbm %s3852_s5, 2048  ;;  %p3136_p6 = scmp.lt.u32.totalorder %s3852_s5, %s5370_s4 }
  0x7e   : > { %p3131_p10 = scmp.ne.s32.totalorder %s3852_s5, %s3130_s20  ;;  %p3137_p13 = scmp.lt.u32.totalorder %s3135_s13, %s3130_s20 }
  0x7f   : > { %p3139_p3 = scmp.lt.u32.totalorder %s3130_s20, %s3852_s5 }
  0x80   : > { %p3133_p0 = pnand %p3131_p10, %p3102_p5  ;;  %p3138_p2 = por %p3137_p13, %p3136_p6 }
  0x82   : > { %p3134_p1 = pneg %p3133_p0  ;;  %p3140_p12 = por %p3139_p3, %p3138_p2 }
  0x84   : > { %p3141_p9 = pnand %p3140_p12, %p3134_p1 }
  0x86   : > { %3144 = shalt.err (!%p3141_p9)
}
  0x87   : > { %s3145_s0 = scalar_lea.vmem %s3855_s6, 2048  ;;  %s3492_s21 = smov [#allocation7]  }
  0x88   : > { %p3146_p10 = scmp.ne.s32.totalorder %s3855_s6, %s3145_s0  ;;  %s3150_s25 = sshll.u32 %s3492_s21, 4  ;;  %s3151_s25 = int_to_ptr.vmem [resolvable:$false] %s3150_s25 }
  0x89   : > { %s3152_s19 = scalar_lea.vmem %s3151_s25, 4096  ;;  %p3153_p8 = scmp.lt.s32.totalorder %s3855_s6, %s3151_s25 }
  0x8a   : > { %p3148_p0 = pnand %p3146_p10, %p3102_p5  ;;  %p3154_p6 = scmp.lt.s32.totalorder %s3152_s19, %s3145_s0 }
  0x8c   : > { %p3149_p11 = pneg %p3148_p0  ;;  %p3155_p13 = por %p3154_p6, %p3153_p8 }
  0x8e   : > { %p3156_p2 = pnand %p3155_p13, %p3149_p11 }
  0x90   : > { %3159 = shalt.err (!%p3156_p2)
}
  0x91   : > { %s5372_s20 = smov 8   ;;  %s5373_s18 = smov 128  }
  0x92   : > { %2811 = dma.hbm_to_vmem [thread:$0]  (!%p3747_p4), %s3852_s5, 2048, %s3855_s6, %s3859_s22, %s5373_s18, %s5373_s18, %s5372_s20  }
  0x93   : > { %s2484_s13 = sshll.u32 %s3845_s8, 10  ;;  %s5374_s7 = sld [smem:[#allocation81_spill]] }
  0x94   : > { %s3895_s9 = sld [smem:[#allocation6 + %s3486_s15]]  ;;  %s5375_s21 = sand.u32 1, %s3486_s15  }
  0x95   : > { %s3899_s25 = scalar_lea.sflag [#allocation14], %s5375_s21  ;;  %p3162_p5 = pneg %p3827_p7 }
  0x99   : > { %s3892_s0 = scalar_lea.hbm %s5374_s7, %s2484_s13  ;;  %s3165_s6 = scalar_lea.hbm %s5374_s7, 2048 }
  0x9a   : > { %s3160_s19 = scalar_lea.hbm %s3892_s0, 1024  ;;  %p3166_p9 = scmp.lt.u32.totalorder %s3892_s0, %s5374_s7 }
  0x9b   : > { %p3161_p11 = scmp.ne.s32.totalorder %s3892_s0, %s3160_s19  ;;  %p3167_p1 = scmp.lt.u32.totalorder %s3165_s6, %s3160_s19 }
  0x9c   : > { %p3169_p12 = scmp.lt.u32.totalorder %s3160_s19, %s3892_s0 }
  0x9d   : > { %p3163_p4 = pnand %p3162_p5, %p3161_p11  ;;  %p3168_p3 = por %p3167_p1, %p3166_p9 }
  0x9f   : > { %p3164_p8 = pneg %p3163_p4  ;;  %p3170_p10 = por %p3169_p12, %p3168_p3 }
  0xa1   : > { %p3171_p0 = pnand %p3170_p10, %p3164_p8 }
  0xa3   : > { %3174 = shalt.err (!%p3171_p0)
}
  0xa4   : > { %s3175_s1 = scalar_lea.vmem %s3831_s12, 1024  ;;  %s3493_s23 = smov [#allocation13]  }
  0xa5   : > { %p3176_p6 = scmp.ne.s32.totalorder %s3831_s12, %s3175_s1  ;;  %s3180_s21 = sshll.u32 %s3493_s23, 4  ;;  %s3181_s21 = int_to_ptr.vmem [resolvable:$false] %s3180_s21 }
  0xa6   : > { %s3182_s8 = scalar_lea.vmem %s3181_s21, 2048  ;;  %p3183_p11 = scmp.lt.s32.totalorder %s3831_s12, %s3181_s21 }
  0xa7   : > { %p3178_p13 = pnand %p3176_p6, %p3162_p5  ;;  %p3184_p4 = scmp.lt.s32.totalorder %s3182_s8, %s3175_s1 }
  0xa9   : > { %p3179_p2 = pneg %p3178_p13  ;;  %p3185_p9 = por %p3184_p4, %p3183_p11 }
  0xab   : > { %p3186_p1 = pnand %p3185_p9, %p3179_p2 }
  0xad   : > { %3189 = shalt.err (!%p3186_p1)
}
  0xae   : > { %2824 = dma.hbm_to_vmem [thread:$0]  (!%p3827_p7), %s3892_s0, 1024, %s3831_s12, %s3899_s25, %s5373_s18, %s5373_s18, %s5372_s20  }
  0xaf   : > { %s177_s26 = sld [smem:[#allocation6 + %s3662_s10]]  ;;  %p188_p5 = scmp.ne.s32.totalorder %s3470_s11, %s3466_s30 }
  0xb0   : > { %p194_p8 = scmp.ne.s32.totalorder %s3466_s30, %s3462_s29  ;;  %s181_s19 = sadd.s32 1, %s3470_s11 }
  0xb1   : > { %s398_s5 = sand.u32 1, %s3470_s11   ;;  %p5376_p3 = scmp.eq.s32.totalorder %s3658_s16, 0 }
  0xb2   : > { %p5378_p10 = scmp.eq.s32.totalorder %s3486_s15, 0  ;;  %s5379_s22 = sld [smem:[#allocation42_spill]] }
  0xb3   : > { %p3939_p12 = por %p194_p8, %p5376_p3  ;;  %s5380_s12 = sld [smem:[#allocation41_spill]] }
  0xb4   : > { %p190_p0 = por %p188_p5, %p5378_p10  ;;  %s2378_s0 = sshll.u32 %s398_s5, 6 }
  0xb5   : > { %s5377_s6 = scalar_select %p3939_p12, 1, 0 }
  0xb6   : > { %s178_s13 = ssub.s32 %s3895_s9, %s177_s26  ;;  %p5381_p7 = scmp.lt.s32.totalorder %s3486_s15, 5 }
  0xb7   : > { %p179_p13 = scmp.eq.s32.totalorder %s178_s13, 0  ;;  %s400_s1 = scalar_lea.vmem [#allocation12], %s2378_s0 }
  0xb8   : > { %p3948_p6 = pnand %p5381_p7, %p190_p0  ;;  %s408_s23 = sshll.u32 %s400_s1, 4  ;;  %s3970_s23 = int_to_ptr.vmem [resolvable:$true] %s408_s23 }
  0xb9   : > { %s2786_s21 = scalar_select %p190_p0, [#allocation6], [#allocation19] }
  0xba   : > { %s3953_s8 = scalar_select %p179_p13, %s3470_s11, %s181_s19  }
  0xbb   : > { %s2787_s4 = scalar_select %p190_p0, %s3486_s15, 0 }
  0xbc   : > { %5383 = sst [smem:[#allocation55_spill]] %s3953_s8  ;;  %p5384_p2 = pmov %p5381_p7 }
  0xbd   : > { %s3961_s26 = sld [smem:[#allocation6 + %s3486_s15]]  ;;  %p244_p4 = scmp.ne.s32.totalorder %s5379_s22, %s3442_s24 }
  0xbe   : > { %s5615_s21 = smov (!%p5384_p2, %s2786_s21), [#allocation24]  ;;  %p5385_p11 = pmov %p5384_p2 }
  0xbf   : > { %s3964_s5 = sld [smem:[#allocation6 + %s3662_s10]]  ;;  %p250_p9 = scmp.ne.s32.totalorder %s3442_s24, %s5380_s12 }
  0xc0   : > { %s5617_s4 = smov (!%p5385_p11, %s2787_s4), 0  ;;  %s442_s0 = sand.u32 1, %s5379_s22  }
  0xc1   : > { %s401_s9 = sld [smem:[%s5615_s21 + %s5617_s4]]  ;;  %p5386_p1 = pmov %p5376_p3 }
  0xc2   : > { %s5388_s14 = sld [smem:[#allocation80_spill]]  ;;  %p5390_p8 = pmov %p5378_p10 }
  0xc3   : > { %p3975_p5 = por %p250_p9, %p5386_p1  ;;  %p3192_p0 = pneg %p3948_p6 }
  0xc4   : > { %p3986_p3 = por %p244_p4, %p5390_p8 }
  0xc5   : > { %s5387_s19 = scalar_select %p3975_p5, 1, 0 }
  0xc7   : > { %s2483_s13 = sshll.u32 %s401_s9, 10 }
  0xc8   : > { %s5389_s8 = smov %s5388_s14  ;;  %s3982_s11 = scalar_lea.hbm %s5388_s14, %s2483_s13 }
  0xc9   : > { %s3190_s12 = scalar_lea.hbm %s3982_s11, 1024  ;;  %s3195_s21 = scalar_lea.hbm %s5389_s8, 2048 }
  0xca   : > { %p3191_p10 = scmp.ne.s32.totalorder %s3982_s11, %s3190_s12  ;;  %p3196_p2 = scmp.lt.u32.totalorder %s3982_s11, %s5389_s8 }
  0xcb   : > { %p3197_p11 = scmp.lt.u32.totalorder %s3195_s21, %s3190_s12  ;;  %p3199_p9 = scmp.lt.u32.totalorder %s3190_s12, %s3982_s11 }
  0xcc   : > { %p3193_p7 = pnand %p3192_p0, %p3191_p10 }
  0xcd   : > { %p3198_p4 = por %p3197_p11, %p3196_p2 }
  0xce   : > { %p3194_p13 = pneg %p3193_p7 }
  0xcf   : > { %p3200_p1 = por %p3199_p9, %p3198_p4 }
  0xd1   : > { %p3201_p8 = pnand %p3200_p1, %p3194_p13 }
  0xd3   : > { %3204 = shalt.err (!%p3201_p8)
}
  0xd4   : > { %s3205_s1 = scalar_lea.vmem %s3970_s23, 1024  ;;  %s3494_s7 = smov [#allocation12]  }
  0xd5   : > { %p3206_p10 = scmp.ne.s32.totalorder %s3970_s23, %s3205_s1  ;;  %s3210_s14 = sshll.u32 %s3494_s7, 4  ;;  %s3211_s14 = int_to_ptr.vmem [resolvable:$false] %s3210_s14 }
  0xd6   : > { %s3212_s9 = scalar_lea.vmem %s3211_s14, 2048  ;;  %p3213_p12 = scmp.lt.s32.totalorder %s3970_s23, %s3211_s14 }
  0xd7   : > { %p3208_p7 = pnand %p3206_p10, %p3192_p0  ;;  %p3214_p2 = scmp.lt.s32.totalorder %s3212_s9, %s3205_s1 }
  0xd9   : > { %p3209_p5 = pneg %p3208_p7  ;;  %p3215_p11 = por %p3214_p2, %p3213_p12 }
  0xdb   : > { %p3216_p4 = pnand %p3215_p11, %p3209_p5 }
  0xdd   : > { %3219 = shalt.err (!%p3216_p4)
}
  0xde   : > { %2819 = dma.hbm_to_vmem [thread:$0]  (!%p3948_p6), %s3982_s11, 1024, %s3970_s23, %s3765_s2, %s5373_s18, %s5373_s18, %s5372_s20  }
  0xdf   : > { %s234_s29 = ssub.s32 %s3961_s26, %s3964_s5  ;;  %s237_s12 = sadd.s32 1, %s5379_s22 }
  0xe0   : > { %p235_p12 = scmp.eq.s32.totalorder %s234_s29, 0  ;;  %s2384_s21 = sshll.u32 %s442_s0, 6 }
  0xe1   : > { %s2792_s13 = scalar_select %p3986_p3, [#allocation6], [#allocation21] }
  0xe2   : > { %s5619_s22 = smov (!%p235_p12, %s5379_s22), %s237_s12  ;;  %p5392_p5 = scmp.lt.s32.totalorder %s3486_s15, 5 }
  0xe3   : > { %s2793_s1 = scalar_select %p3986_p3, %s3486_s15, 0 }
  0xe4   : > { %s5621_s13 = smov (!%p5392_p5, %s2792_s13), [#allocation26]  ;;  %p5393_p0 = pmov %p5392_p5 }
  0xe5   : > { %s444_s2 = scalar_lea.vmem [#allocation15], %s2384_s21  ;;  %s5396_s14 = sld [smem:[#allocation82_spill]] }
  0xe6   : > { %s5623_s1 = smov (!%p5393_p0, %s2793_s1), 0  ;;  %p5394_p13 = pmov %p5393_p0 }
  0xe7   : > { %s445_s11 = sld [smem:[%s5621_s13 + %s5623_s1]]  ;;  %s452_s23 = sshll.u32 %s444_s2, 4  ;;  %s4044_s23 = int_to_ptr.vmem [resolvable:$true] %s452_s23 }
  0xe8   : > { %p4040_p9 = pnand %p5394_p13, %p3986_p3 }
  0xea   : > { %p3222_p3 = pneg %p4040_p9 }
  0xeb   : > { %s5397_s9 = smov %s5396_s14 }
  0xec   : > { %s3225_s13 = scalar_lea.hbm %s5397_s9, 2048 }
  0xed   : > { %s2485_s26 = sshll.u32 %s445_s11, 10 }
  0xee   : > { %s4049_s29 = scalar_lea.hbm %s5396_s14, %s2485_s26 }
  0xef   : > { %s3220_s4 = scalar_lea.hbm %s4049_s29, 1024  ;;  %p3226_p10 = scmp.lt.u32.totalorder %s4049_s29, %s5397_s9 }
  0xf0   : > { %p3221_p6 = scmp.ne.s32.totalorder %s4049_s29, %s3220_s4  ;;  %p3227_p7 = scmp.lt.u32.totalorder %s3225_s13, %s3220_s4 }
  0xf1   : > { %p3229_p11 = scmp.lt.u32.totalorder %s3220_s4, %s4049_s29 }
  0xf2   : > { %p3223_p1 = pnand %p3222_p3, %p3221_p6  ;;  %p3228_p2 = por %p3227_p7, %p3226_p10 }
  0xf4   : > { %p3224_p8 = pneg %p3223_p1  ;;  %p3230_p4 = por %p3229_p11, %p3228_p2 }
  0xf6   : > { %p3231_p12 = pnand %p3230_p4, %p3224_p8 }
  0xf8   : > { %3234 = shalt.err (!%p3231_p12)
}
  0xf9   : > { %s3235_s2 = scalar_lea.vmem %s4044_s23, 1024  ;;  %s3495_s26 = smov [#allocation15]  }
  0xfa   : > { %p3236_p5 = scmp.ne.s32.totalorder %s4044_s23, %s3235_s2  ;;  %s3240_s5 = sshll.u32 %s3495_s26, 4  ;;  %s3241_s5 = int_to_ptr.vmem [resolvable:$false] %s3240_s5 }
  0xfb   : > { %s3242_s0 = scalar_lea.vmem %s3241_s5, 2048  ;;  %p3243_p6 = scmp.lt.s32.totalorder %s4044_s23, %s3241_s5 }
  0xfc   : > { %p3238_p0 = pnand %p3236_p5, %p3222_p3  ;;  %p3244_p1 = scmp.lt.s32.totalorder %s3242_s0, %s3235_s2 }
  0xfe   : > { %p3239_p13 = pneg %p3238_p0  ;;  %p3245_p10 = por %p3244_p1, %p3243_p6 }
 0x100   : > { %p3246_p7 = pnand %p3245_p10, %p3239_p13 }
 0x102   : > { %3249 = shalt.err (!%p3246_p7)
}
 0x103   : > { %2829 = dma.hbm_to_vmem [thread:$0]  (!%p4040_p9), %s4049_s29, 1024, %s4044_s23, %s3899_s25, %s5373_s18, %s5373_s18, %s5372_s20  }
 0x104   : > { %p5398_p3 = scmp.ne.s32.totalorder %s5359_s3, 0 }
 0x106   : > { %464 = sbr.rel (%p5398_p3) target bundleno = 1556 (0x614), region = 52 }
 0x10d   : > { %s5399_s14 = sld [smem:[#allocation44_spill]]  ;;  %s5400_s4 = sld [smem:[#allocation47_spill]] }
 0x113   : > { %s466_s12 = sand.u32 1, %s5399_s14   ;;  %p5401_p8 = scmp.ne.s32.totalorder %s5400_s4, 0 }
 0x114   : > { %s2388_s21 = sshll.u32 %s466_s12, 7  ;;  %s467_s13 = scalar_lea.sflag [#allocation8], %s466_s12 }
 0x115   : > { %s4083_s1 = scalar_lea.vmem [#allocation7], %s2388_s21 }
 0x116   : > { %3385 = dma.done.wait (%p5401_p8), %s467_s13, 2048  }
 0x117   : > { %3387 = vsyncadd (%p5401_p8), %s467_s13, 4294965248  ;;  %s475_s7 = sand.u32 1, %s3658_s16   ;;  %s4090_s20 = scalar_lea.vmem [#allocation10], %s2388_s21 }
 0x118   : > { %s476_s11 = scalar_lea.sflag [#allocation11], %s475_s7 }
 0x119   : > { %3389 = dma.done.wait (%p5401_p8), %s476_s11, 2048  }
 0x11a   : > { %3391 = vsyncadd (%p5401_p8), %s476_s11, 4294965248  ;;  %s486_s3 = sand.u32 1, %s3466_s30   ;;  %p5402_p9 = scmp.ne.s32.totalorder %s5377_s6, 0 }
 0x11b   : > { %s2390_s18 = sshll.u32 %s486_s3, 6 }
 0x11c   : > { %s4097_s25 = scalar_lea.vmem [#allocation12], %s2390_s18 }
 0x11d   : > { %3393 = dma.done.wait (%p5402_p9), %s476_s11, 1024  }
 0x11e   : > { %3395 = vsyncadd (%p5402_p9), %s476_s11, 4294966272  ;;  %s495_s23 = sand.u32 1, %s3454_s27   ;;  %s494_s2 = scalar_lea.sflag [#allocation14], %s475_s7 }
 0x11f   : > { %s2391_s29 = sshll.u32 %s495_s23, 6  ;;  %p5403_p2 = scmp.ne.s32.totalorder %s5363_s17, 0 }
 0x120   : > { %s4104_s26 = scalar_lea.vmem [#allocation13], %s2391_s29 }
 0x121   : > { %3397 = dma.done.wait (%p5403_p2), %s494_s2, 1024  }
 0x122   : > { %3399 = vsyncadd (%p5403_p2), %s494_s2, 4294966272  ;;  %s504_s5 = sand.u32 1, %s3442_s24   ;;  %p5404_p11 = scmp.ne.s32.totalorder %s5387_s19, 0 }
 0x123   : > { %s2392_s0 = sshll.u32 %s504_s5, 6 }
 0x124   : > { %s4111_s14 = scalar_lea.vmem [#allocation15], %s2392_s0 }
 0x125   : > { %3401 = dma.done.wait (%p5404_p11), %s494_s2, 1024  }
 0x126   : > { %3403 = vsyncadd (%p5404_p11), %s494_s2, 4294966272  ;;  %s5405_s6 = sld [smem:[#allocation39_spill]]  ;;  %s5406_s4 = sld [smem:[#allocation36_spill]] }
 0x127   : > { %s2399_s17 = sadd.s32 4294967295, %s3658_s16  ;;  %s611_s12 = sadd.s32 1, %s3658_s16 }
 0x128   : > { %s4120_s21 = sld [smem:[#allocation6 + %s3658_s16]]  ;;  %p608_p4 = scmp.gt.s32.totalorder %s2399_s17, 0 }
 0x129   : > { %p612_p12 = scmp.lt.s32.totalorder %s611_s12, 4  ;;  %s2395_s18 = sshll.u32 %s3658_s16, 4 }
 0x12a   : > { %s5625_s17 = smov (!%p608_p4, %s2399_s17), 0  ;;  %p580_p5 = scmp.lt.s32.totalorder %s2395_s18, 79 }
 0x12b   : > { %s5627_s12 = smov (!%p612_p12, %s611_s12), 4  ;;  %s610_s13 = sld [smem:[#allocation6 + %s5625_s17]] }
 0x12c   : > { %s5279_s19 = sand.u32 1, %s5405_s6   ;;  %s614_s11 = sld [smem:[#allocation6 + %s5627_s12]] }
 0x12d   : > { %s2393_s7 = sshll.u32 %s5279_s19, 6  ;;  %s5278_s3 = sand.u32 1, %s5406_s4  }
 0x12e   : > { %s2394_s23 = sshll.u32 %s5278_s3, 6  ;;  %s5629_s18 = smov (!%p580_p5, %s2395_s18), 79 }
 0x12f   : > { %p585_p13 = scmp.lt.s32.totalorder %s3658_s16, 4  ;;  %s2396_s29 = sshll.u32 %s5629_s18, 3 }
 0x130   : > { %p5407_p1 = scmp.eq.s32.totalorder %s3658_s16, 0  ;;  %s5408_s0 = sld [smem:[#allocation75_spill]] }
 0x131   : > { %p616_p0 = scmp.ne.s32.totalorder %s610_s13, %s4120_s21  ;;  %p5409_p7 = scmp.eq.s32.totalorder %s3658_s16, 4 }
 0x132   : > { %p619_p6 = scmp.ne.s32.totalorder %s614_s11, %s4120_s21  ;;  %s5411_s3 = sld [smem:[#allocation77_spill]] }
 0x133   : > { %p617_p10 = por %p616_p0, %p5407_p1  ;;  %s5412_s8 = sld [smem:[#allocation76_spill]] }
 0x134   : > { %p4141_p3 = por %p619_p6, %p5409_p7  ;;  %s4157_s2 = scalar_lea.vmem [#allocation16], %s2393_s7  ;;  %vm632_vm0 = vcmask (%p617_p10), 7168   ;;  %vm641_vm1 = vcmask (%p617_p10), 0   ;;  %v3496_v0 = vmov (%p617_p10), 0.0   ;;  %v3497_v1 = vmov (%p617_p10), -inf  }
 0x135   : > { %s4151_s13 = scalar_select %p585_p13, %s3658_s16, 4 }
 0x136   : > { %s4137_s17 = scalar_lea.vmem %s5408_s0, %s2396_s29  ;;  %s4159_s5 = scalar_lea.vmem [#allocation17], %s2394_s23  ;;  %624 = vst [vmem:[#allocation2] sm:$0xff] (%p617_p10), %v3496_v0  ;;  %625 = vst [vmem:[#allocation2 + $0x8] sm:$0xff] (%p617_p10), %v3496_v0 }
 0x137   : > { %623 = sbr.rel (!%p617_p10) target bundleno = 319 (0x13f), region = 76  ;;  %626 = vst [vmem:[#allocation2 + $0x10] sm:$0xff] (%p617_p10), %v3496_v0  ;;  %627 = vst [vmem:[#allocation2 + $0x18] sm:$0xff] (%p617_p10), %v3496_v0 }
 0x138   : > { %s4148_s19 = scalar_lea.vmem %s5411_s3, %s2396_s29  ;;  %628 = vst [vmem:[#allocation2 + $0x20] sm:$0xff] (%p617_p10), %v3496_v0  ;;  %629 = vst [vmem:[#allocation2 + $0x28] sm:$0xff] (%p617_p10), %v3496_v0 }
 0x139   : > { %s587_s9 = scalar_lea.vmem %s5412_s8, %s4151_s13  ;;  %630 = vst [vmem:[#allocation2 + $0x30] sm:$0xff] (%p617_p10), %v3496_v0  ;;  %631 = vst [vmem:[#allocation2 + $0x38] sm:$0xff] (%p617_p10), %v3496_v0 }
 0x13a   : > { %633 = vst.msk [vmem:[#allocation3] sm:$0xff] (%p617_p10), %vm632_vm0, %v3496_v0  ;;  %634 = vst.msk [vmem:[#allocation3 + $0x8] sm:$0xff] (%p617_p10), %vm632_vm0, %v3496_v0 }
 0x13b   : > { %635 = vst.msk [vmem:[#allocation3 + $0x10] sm:$0xff] (%p617_p10), %vm632_vm0, %v3496_v0  ;;  %636 = vst.msk [vmem:[#allocation3 + $0x18] sm:$0xff] (%p617_p10), %vm632_vm0, %v3496_v0 }
 0x13c   : > { %637 = vst.msk [vmem:[#allocation3 + $0x20] sm:$0xff] (%p617_p10), %vm632_vm0, %v3496_v0  ;;  %638 = vst.msk [vmem:[#allocation3 + $0x28] sm:$0xff] (%p617_p10), %vm632_vm0, %v3496_v0 }
 0x13d   : > { %639 = vst.msk [vmem:[#allocation3 + $0x30] sm:$0xff] (%p617_p10), %vm632_vm0, %v3496_v0  ;;  %640 = vst.msk [vmem:[#allocation3 + $0x38] sm:$0xff] (%p617_p10), %vm632_vm0, %v3496_v0 }
 0x13e   : > { %642 = vst.msk [vmem:[#allocation4] sm:$0x1] %vm641_vm1, %v3497_v1 }
 0x13f PF: > { %s2400_s8 = sshll.u32 %s4120_s21, 6  ;;  %v662_v2 = vld [vmem:[%s4137_s17 + $0x10] sm:$0xff]  ;;  %v660_v3 = vld [vmem:[%s4137_s17] sm:$0xff]  ;;  %v3498_v4 = vmov 0   ;;  %v663_v6 = vld [vmem:[%s4137_s17 + $0x18] sm:$0xff]  ;;  %v741_v48 = vlaneseq  ;;  %vm847_vm2 = vcmask 523264  }
 0x140   : > { %3003 = vset.pattern.permute.xlu1 %v3498_v4  ;;  %3002 = vset.pattern.permute.xlu0 %v3498_v4  ;;  %v4173_v5 = vstv %s2400_s8  ;;  %v661_v7 = vld [vmem:[%s4137_s17 + $0x8] sm:$0xff]  ;;  %v664_v13 = vld [vmem:[%s4137_s17 + $0x20] sm:$0xff]  ;;  %v841_v17 = vld [vmem:[%s4097_s25 + $0x10] sm:$0xff]  ;;  %v3499_v52 = vmov 0.0  }
 0x141   : > { %v4178_v8 = vsub.s32 %v662_v2, %v4173_v5  ;;  %v4181_v9 = vsub.s32 %v660_v3, %v4173_v5  ;;  %v4186_v10 = vsub.s32 %v663_v6, %v4173_v5  ;;  %v4189_v11 = vsub.s32 %v661_v7, %v4173_v5  ;;  %v665_v12 = vld [vmem:[%s4137_s17 + $0x28] sm:$0xff]  ;;  %v842_v18 = vld [vmem:[%s4097_s25 + $0x18] sm:$0xff]  ;;  %v666_v25 = vld [vmem:[%s4137_s17 + $0x30] sm:$0xff] }
 0x142   : > { %v839_v14 = vld [vmem:[%s4097_s25] sm:$0xff]  ;;  %v840_v15 = vld [vmem:[%s4097_s25 + $0x8] sm:$0xff]  ;;  %v2692_v19 = vpack.c.bf16 %v842_v18, %v841_v17  ;;  %v4200_v20 = vsub.s32 %v665_v12, %v4173_v5  ;;  %v4203_v21 = vsub.s32 %v664_v13, %v4173_v5  ;;  %v667_v24 = vld [vmem:[%s4137_s17 + $0x38] sm:$0xff]  ;;  %v4215_v28 = vsub.s32 %v666_v25, %v4173_v5 }
 0x143   : > { %750 = vperm.xlu1 %3003, %v4178_v8   ;;  %744 = vperm.xlu0 %3002, %v4181_v9   ;;  %v2688_v16 = vpack.c.bf16 %v840_v15, %v839_v14  ;;  %v843_v22 = vld [vmem:[%s4097_s25 + $0x20] sm:$0xff]  ;;  %v844_v23 = vld [vmem:[%s4097_s25 + $0x28] sm:$0xff]  ;;  %v4212_v27 = vsub.s32 %v667_v24, %v4173_v5  ;;  %v845_v29 = vld [vmem:[%s4097_s25 + $0x30] sm:$0xff]  ;;  %v4262_v49 = vand.u32 127, %v741_v48 }
 0x144   : > { %v2696_v26 = vpack.c.bf16 %v844_v23, %v843_v22  ;;  %v846_v30 = vld [vmem:[%s4097_s25 + $0x38] sm:$0xff]  ;;  %v669_v31 = vld [vmem:[%s4137_s17 + $0x48] sm:$0xff]  ;;  %v670_v37 = vld [vmem:[%s4137_s17 + $0x50] sm:$0xff] }
 0x145   : > { %2689 = vmatprep.subr.bf16.mxu0 %v2688_v16  ;;  %v668_v32 = vld [vmem:[%s4137_s17 + $0x40] sm:$0xff]  ;;  %v2700_v33 = vpack.c.bf16 %v846_v30, %v845_v29  ;;  %v4224_v34 = vsub.s32 %v669_v31, %v4173_v5  ;;  %v671_v36 = vld [vmem:[%s4137_s17 + $0x58] sm:$0xff]  ;;  %v4237_v39 = vsub.s32 %v670_v37, %v4173_v5  ;;  %v673_v40 = vld [vmem:[%s4137_s17 + $0x68] sm:$0xff] }
 0x146   : > { %2691 = vmatpush3.bf16.msra.mxu0 %v2688_v16  ;;  %v4227_v35 = vsub.s32 %v668_v32, %v4173_v5  ;;  %v4234_v38 = vsub.s32 %v671_v36, %v4173_v5  ;;  %v672_v41 = vld [vmem:[%s4137_s17 + $0x60] sm:$0xff]  ;;  %v4244_v42 = vsub.s32 %v673_v40, %v4173_v5  ;;  %v675_v44 = vld [vmem:[%s4137_s17 + $0x78] sm:$0xff]  ;;  %v674_v45 = vld [vmem:[%s4137_s17 + $0x70] sm:$0xff] }
 0x147   : > { %753 = vperm.xlu1 %3003, %v4186_v10   ;;  %747 = vperm.xlu0 %3002, %v4189_v11   ;;  %v4247_v43 = vsub.s32 %v672_v41, %v4173_v5  ;;  %v4254_v46 = vsub.s32 %v675_v44, %v4173_v5  ;;  %v4257_v47 = vsub.s32 %v674_v45, %v4173_v5  ;;  %v1074_v29 = vld [vmem:[%s4090_s20 + $0x8] sm:$0xff]  ;;  %v4301_v30 = vld [vmem:[%s4148_s19] sm:$0xff]  ;;  %v4309_v41 = vld [vmem:[%s4148_s19 + $0x18] sm:$0xff] }
 0x148   : > { %2693 = vmatprep.subr.bf16.mxu0 %v2692_v19  ;;  %5414 = vst [vmem:[#allocation57_spill] sm:$0xff] %v4301_v30  ;;  %v1073_v31 = vld [vmem:[%s4090_s20] sm:$0xff]  ;;  %v1042_v32 = vld [vmem:[%s4083_s1 + $0x8] sm:$0xff]  ;;  %5415 = vst [vmem:[#allocation58_spill] sm:$0xff] %v4309_v41 }
 0x149   : > { %v1089_v40 = vmul.f32 %v1073_v31, %v4301_v30  ;;  %v1076_v44 = vld [vmem:[%s4090_s20 + $0x18] sm:$0xff] }
 0x14a   : > { %2695 = vmatpush3.bf16.msra.mxu0 %v2692_v19  ;;  %v1080_v31 = vld [vmem:[%s4090_s20 + $0x38] sm:$0xff] }
 0x14b   : > { %759 = vperm.xlu1 %3003, %v4200_v20   ;;  %756 = vperm.xlu0 %3002, %v4203_v21  }
 0x14c   : > { %2697 = vmatprep.subr.bf16.mxu0 %v2696_v26 }
 0x14e   : > { %2699 = vmatpush3.bf16.msra.mxu0 %v2696_v26  ;;  %v4297_v26 = vld [vmem:[%s4148_s19 + $0x8] sm:$0xff] }
 0x14f   : > { %765 = vperm.xlu1 %3003, %v4212_v27   ;;  %762 = vperm.xlu0 %3002, %v4215_v28   ;;  %5413 = vst [vmem:[#allocation56_spill] sm:$0xff] %v4297_v26  ;;  %v1090_v36 = vmul.f32 %v1074_v29, %v4297_v26  ;;  %v4339_v29 = vld [vmem:[%s4148_s19 + $0x38] sm:$0xff] }
 0x150   : > { %2701 = vmatprep.subr.bf16.mxu0 %v2700_v33  ;;  %5420 = vst [vmem:[#allocation63_spill] sm:$0xff] %v4339_v29 }
 0x152   : > { %2703 = vmatpush3.bf16.msra.mxu0 %v2700_v33  ;;  %v1041_v33 = vld [vmem:[%s4083_s1] sm:$0xff] }
 0x153   : > { %771 = vperm.xlu1 %3003, %v4224_v34   ;;  %768 = vperm.xlu0 %3002, %v4227_v35  }
 0x157   : > { %777 = vperm.xlu1 %3003, %v4234_v38   ;;  %774 = vperm.xlu0 %3002, %v4237_v39  }
 0x15b   : > { %783 = vperm.xlu1 %3003, %v4244_v42   ;;  %780 = vperm.xlu0 %3002, %v4247_v43  }
 0x15f   : > { %789 = vperm.xlu1 %3003, %v4254_v46   ;;  %786 = vperm.xlu0 %3002, %v4257_v47  }
 0x1c2   : > { %v751_v50 = vpop.permute.xlu1 %750  ;;  %v745_v51 = vpop.permute.xlu0 %744 }
 0x1c3   : > { %vm791_vm3 = vcmp.eq.s32.totalorder %v4262_v49, %v745_v51  ;;  %vm793_vm4 = vcmp.eq.s32.totalorder %v4262_v49, %v751_v50  ;;  %v1044_v51 = vld [vmem:[%s4083_s1 + $0x18] sm:$0xff] }
 0x1c4   : > { %v2401_v53 = vsel %vm791_vm3, 1.0, %v3499_v52  ;;  %v2403_v56 = vsel %vm793_vm4, 1.0, %v3499_v52 }
 0x1c5   : > { %2576 = vmatprep.mubr.msk.f32.mxu0 %vm847_vm2, %v2401_v53  ;;  %v1092_v53 = vmul.f32 %v1076_v44, %v4309_v41  ;;  %v1049_v44 = vld [vmem:[%s4083_s1 + $0x40] sm:$0xff] }
 0x1c6   : > { %v754_v54 = vpop.permute.xlu1 %753  ;;  %v748_v55 = vpop.permute.xlu0 %747 }
 0x1c7   : > { %vm792_vm5 = vcmp.eq.s32.totalorder %v4262_v49, %v748_v55  ;;  %vm794_vm6 = vcmp.eq.s32.totalorder %v4262_v49, %v754_v54  ;;  %v1043_v55 = vld [vmem:[%s4083_s1 + $0x10] sm:$0xff] }
 0x1c8   : > { %v2402_v57 = vsel %vm792_vm5, 1.0, %v3499_v52  ;;  %v2404_v60 = vsel %vm794_vm6, 1.0, %v3499_v52 }
 0x1c9   : > { %2577 = vmatmul.mubr.msk.f32.vlgmr.msra.gmra.mrb[0].mxu0 %vm847_vm2, %v2402_v57  ;;  %v4316_v57 = vld [vmem:[%s4148_s19 + $0x10] sm:$0xff] }
 0x1ca   : > { %v760_v58 = vpop.permute.xlu1 %759  ;;  %2579 = vmatprep.mubr.msk.f32.mxu0 %vm847_vm2, %v2403_v56  ;;  %v757_v59 = vpop.permute.xlu0 %756  ;;  %5416 = vst [vmem:[#allocation59_spill] sm:$0xff] %v4316_v57 }
 0x1cb   : > { %vm795_vm7 = vcmp.eq.s32.totalorder %v4262_v49, %v757_v59  ;;  %vm796_vm8 = vcmp.eq.s32.totalorder %v4262_v49, %v760_v58 }
 0x1cc   : > { %v2405_v61 = vsel %vm795_vm7, 1.0, %v3499_v52  ;;  %v2406_v0 = vsel %vm796_vm8, 1.0, %v3499_v52  ;;  %vm5453_vm8 = vcmp.ge.s32.totalorder %v4200_v20, 0  ;;  %vm5456_vm7 = vcmask 7168  }
 0x1cd   : > { %2580 = vmatmul.mubr.msk.f32.gmra.mrb[2].mxu0 %vm847_vm2, %v2404_v60  ;;  %v1075_v60 = vld [vmem:[%s4090_s20 + $0x10] sm:$0xff] }
 0x1ce   : > { %v766_v62 = vpop.permute.xlu1 %765  ;;  %2582 = vmatprep.mubr.msk.f32.mxu0 %vm847_vm2, %v2405_v61  ;;  %v763_v63 = vpop.permute.xlu0 %762  ;;  %v4320_v61 = vld [vmem:[%s4148_s19 + $0x20] sm:$0xff] }
 0x1cf   : > { %vm797_vm9 = vcmp.eq.s32.totalorder %v4262_v49, %v763_v63  ;;  %vm798_vm10 = vcmp.eq.s32.totalorder %v4262_v49, %v766_v62  ;;  %5417 = vst [vmem:[#allocation60_spill] sm:$0xff] %v4320_v61  ;;  %v1077_v62 = vld [vmem:[%s4090_s20 + $0x20] sm:$0xff] }
 0x1d0   : > { %v2407_v1 = vsel %vm797_vm9, 1.0, %v3499_v52  ;;  %v2408_v4 = vsel %vm798_vm10, 1.0, %v3499_v52  ;;  %v1045_v63 = vld [vmem:[%s4083_s1 + $0x20] sm:$0xff] }
 0x1d1   : > { %2583 = vmatmul.mubr.msk.f32.gmra.mrb[4].mxu0 %vm847_vm2, %v2406_v0 }
 0x1d2   : > { %v772_v2 = vpop.permute.xlu1 %771  ;;  %2585 = vmatprep.mubr.msk.f32.mxu0 %vm847_vm2, %v2407_v1  ;;  %v769_v3 = vpop.permute.xlu0 %768 }
 0x1d3   : > { %vm799_vm11 = vcmp.eq.s32.totalorder %v4262_v49, %v769_v3  ;;  %vm800_vm12 = vcmp.eq.s32.totalorder %v4262_v49, %v772_v2  ;;  %v1091_v3 = vmul.f32 %v1075_v60, %v4316_v57  ;;  %v1083_v60 = vld [vmem:[%s4090_s20 + $0x50] sm:$0xff] }
 0x1d4   : > { %v2409_v6 = vsel %vm799_vm11, 1.0, %v3499_v52  ;;  %v2410_v13 = vsel %vm800_vm12, 1.0, %v3499_v52  ;;  %vm693_vm11 = vcmp.ge.s32.totalorder %v4181_v9, 0  ;;  %vm709_vm12 = vcmp.lt.s32.totalorder %v4181_v9, 64 }
 0x1d5   : > { %2586 = vmatmul.mubr.msk.f32.gmra.mrb[6].mxu0 %vm847_vm2, %v2408_v4  ;;  %v1093_v4 = vmul.f32 %v1077_v62, %v4320_v61  ;;  %vm4454_vm9 = vmand %vm693_vm11, %vm709_vm12 }
 0x1d6   : > { %v778_v7 = vpop.permute.xlu1 %777  ;;  %2588 = vmatprep.mubr.msk.f32.mxu0 %vm847_vm2, %v2409_v6  ;;  %v775_v12 = vpop.permute.xlu0 %774  ;;  %v4327_v6 = vld [vmem:[%s4148_s19 + $0x28] sm:$0xff] }
 0x1d7   : > { %vm801_vm13 = vcmp.eq.s32.totalorder %v4262_v49, %v775_v12  ;;  %vm802_vm14 = vcmp.eq.s32.totalorder %v4262_v49, %v778_v7  ;;  %5418 = vst [vmem:[#allocation61_spill] sm:$0xff] %v4327_v6  ;;  %v1078_v7 = vld [vmem:[%s4090_s20 + $0x28] sm:$0xff] }
 0x1d8   : > { %v2411_v14 = vsel %vm801_vm13, 1.0, %v3499_v52  ;;  %v2412_v17 = vsel %vm802_vm14, 1.0, %v3499_v52  ;;  %v1046_v12 = vld [vmem:[%s4083_s1 + $0x28] sm:$0xff]  ;;  %vm696_vm13 = vcmp.ge.s32.totalorder %v4186_v10, 0  ;;  %vm712_vm14 = vcmp.lt.s32.totalorder %v4186_v10, 64 }
 0x1d9   : > { %2589 = vmatmul.mubr.msk.f32.gmra.mrb[8].mxu0 %vm847_vm2, %v2410_v13 }
 0x1da   : > { %v784_v15 = vpop.permute.xlu1 %783  ;;  %2591 = vmatprep.mubr.msk.f32.mxu0 %vm847_vm2, %v2411_v14  ;;  %v781_v16 = vpop.permute.xlu0 %780  ;;  %v4332_v14 = vld [vmem:[%s4148_s19 + $0x30] sm:$0xff] }
 0x1db   : > { %vm803_vm15 = vcmp.eq.s32.totalorder %v4262_v49, %v781_v16  ;;  %vm804_vm0 = vcmp.eq.s32.totalorder %v4262_v49, %v784_v15  ;;  %5419 = vst [vmem:[#allocation62_spill] sm:$0xff] %v4332_v14  ;;  %v1079_v15 = vld [vmem:[%s4090_s20 + $0x30] sm:$0xff] }
 0x1dc   : > { %v2413_v18 = vsel %vm803_vm15, 1.0, %v3499_v52  ;;  %v2414_v23 = vsel %vm804_vm0, 1.0, %v3499_v52  ;;  %vm694_vm15 = vcmp.ge.s32.totalorder %v4189_v11, 0  ;;  %vm710_vm0 = vcmp.lt.s32.totalorder %v4189_v11, 64 }
 0x1dd   : > { %2592 = vmatmul.mubr.msk.f32.gmra.mrb[10].mxu0 %vm847_vm2, %v2412_v17  ;;  %v1047_v17 = vld [vmem:[%s4083_s1 + $0x30] sm:$0xff]  ;;  %vm4472_vm12 = vmand %vm694_vm15, %vm710_vm0  ;;  %vm5440_vm0 = vcmp.lt.s32.totalorder %v4203_v21, 64  ;;  %vm5471_vm15 = vcmp.ge.s32.totalorder %v4224_v34, 0 }
 0x1de   : > { %v790_v19 = vpop.permute.xlu1 %789  ;;  %2594 = vmatprep.mubr.msk.f32.mxu0 %vm847_vm2, %v2413_v18  ;;  %v787_v22 = vpop.permute.xlu0 %786  ;;  %v1094_v18 = vmul.f32 %v1078_v7, %v4327_v6 }
 0x1df   : > { %vm805_vm1 = vcmp.eq.s32.totalorder %v4262_v49, %v787_v22  ;;  %vm806_vm3 = vcmp.eq.s32.totalorder %v4262_v49, %v790_v19 }
 0x1e0   : > { %v2415_v24 = vsel %vm805_vm1, 1.0, %v3499_v52  ;;  %v2416_v25 = vsel %vm806_vm3, 1.0, %v3499_v52  ;;  %vm5452_vm3 = vcmp.lt.s32.totalorder %v4200_v20, 64 }
 0x1e1   : > { %2595 = vmatmul.mubr.msk.f32.gmra.mrb[12].mxu0 %vm847_vm2, %v2414_v23 }
 0x1e2   : > { %2597 = vmatprep.mubr.msk.f32.mxu0 %vm847_vm2, %v2415_v24 }
 0x1e5   : > { %2598 = vmatmul.mubr.msk.f32.gmra.mrb[14].mxu0 %vm847_vm2, %v2416_v25  ;;  %v1095_v25 = vmul.f32 %v1079_v15, %v4332_v14  ;;  %v1052_v15 = vld [vmem:[%s4083_s1 + $0x58] sm:$0xff] }
 0x29c   : > { %v2578_v37 = vpop.f32.mrb[0].mxu0 }
 0x29d   : > { %v1058_v45 = vmul.f32 %v2578_v37, %v1042_v32  ;;  %v962_v49 = vpop.f32.mrb[1].mxu0  ;;  %v1048_v32 = vld [vmem:[%s4083_s1 + $0x38] sm:$0xff]  ;;  %v1081_v37 = vld [vmem:[%s4090_s20 + $0x40] sm:$0xff] }
 0x29e   : > { %v1057_v50 = vmul.f32 %v1041_v33, %v962_v49 }
 0x29f   : > { %v1106_v52 = vadd.f32 %v1090_v36, %v1058_v45  ;;  %v4344_v36 = vld [vmem:[%s4148_s19 + $0x40] sm:$0xff]  ;;  %v1096_v45 = vmul.f32 %v1080_v31, %v4339_v29 }
 0x2a0   : > { %v2581_v54 = vpop.f32.mrb[2].mxu0  ;;  %v1105_v56 = vadd.f32 %v1089_v40, %v1057_v50  ;;  %5421 = vst [vmem:[#allocation64_spill] sm:$0xff] %v4344_v36 }
 0x2a1   : > { %v1060_v58 = vmul.f32 %v2581_v54, %v1044_v51  ;;  %1123 = vadd.xlane.f32.xlu1 %v1106_v52  ;;  %v972_v59 = vpop.f32.mrb[3].mxu0  ;;  %v4351_v54 = vld [vmem:[%s4148_s19 + $0x48] sm:$0xff] }
 0x2a2   : > { %1121 = vadd.xlane.f32.xlu0 %v1105_v56  ;;  %v1059_v1 = vmul.f32 %v1043_v55, %v972_v59  ;;  %5422 = vst [vmem:[#allocation65_spill] sm:$0xff] %v4351_v54  ;;  %v1082_v55 = vld [vmem:[%s4090_s20 + $0x48] sm:$0xff] }
 0x2a3   : > { %v1108_v0 = vadd.f32 %v1092_v53, %v1060_v58  ;;  %v1097_v53 = vmul.f32 %v1081_v37, %v4344_v36  ;;  %v1050_v56 = vld [vmem:[%s4083_s1 + $0x48] sm:$0xff] }
 0x2a4   : > { %v2584_v2 = vpop.f32.mrb[4].mxu0  ;;  %v1107_v23 = vadd.f32 %v1091_v3, %v1059_v1  ;;  %v4356_v59 = vld [vmem:[%s4148_s19 + $0x50] sm:$0xff]  ;;  %v4375_v37 = vld [vmem:[%s4148_s19 + $0x68] sm:$0xff] }
 0x2a5   : > { %v982_v13 = vpop.f32.mrb[5].mxu0  ;;  %v1062_v19 = vmul.f32 %v2584_v2, %v1046_v12  ;;  %5423 = vst [vmem:[#allocation66_spill] sm:$0xff] %v4356_v59  ;;  %v1099_v7 = vmul.f32 %v1083_v60, %v4356_v59  ;;  %v4363_v12 = vld [vmem:[%s4148_s19 + $0x58] sm:$0xff]  ;;  %5426 = vst [vmem:[#allocation69_spill] sm:$0xff] %v4375_v37 }
 0x2a6   : > { %v1061_v16 = vmul.f32 %v1045_v63, %v982_v13  ;;  %1127 = vadd.xlane.f32.xlu0 %v1108_v0  ;;  %v1051_v63 = vld [vmem:[%s4083_s1 + $0x50] sm:$0xff]  ;;  %v1098_v0 = vmul.f32 %v1082_v55, %v4351_v54  ;;  %5424 = vst [vmem:[#allocation67_spill] sm:$0xff] %v4363_v12  ;;  %v1084_v13 = vld [vmem:[%s4090_s20 + $0x58] sm:$0xff] }
 0x2a7   : > { %v1110_v51 = vadd.f32 %v1094_v18, %v1062_v19  ;;  %v1085_v18 = vld [vmem:[%s4090_s20 + $0x60] sm:$0xff] }
 0x2a8   : > { %v2587_v22 = vpop.f32.mrb[6].mxu0  ;;  %v1109_v24 = vadd.f32 %v1093_v4, %v1061_v16 }
 0x2a9   : > { %v992_v33 = vpop.f32.mrb[7].mxu0  ;;  %v1064_v49 = vmul.f32 %v2587_v22, %v1048_v32  ;;  %v1053_v22 = vld [vmem:[%s4083_s1 + $0x60] sm:$0xff] }
 0x2aa   : > { %v1063_v40 = vmul.f32 %v1047_v17, %v992_v33  ;;  %1125 = vadd.xlane.f32.xlu0 %v1107_v23  ;;  %1129 = vadd.xlane.f32.xlu1 %v1109_v24  ;;  %v4368_v17 = vld [vmem:[%s4148_s19 + $0x60] sm:$0xff]  ;;  %v1100_v23 = vmul.f32 %v1084_v13, %v4363_v12  ;;  %v5472_v12 = vmov 0 }
 0x2ab   : > { %v1112_v3 = vadd.f32 %v1096_v45, %v1064_v49  ;;  %5425 = vst [vmem:[#allocation68_spill] sm:$0xff] %v4368_v17  ;;  %v1101_v33 = vmul.f32 %v1085_v18, %v4368_v17  ;;  %v4380_v49 = vld [vmem:[%s4148_s19 + $0x70] sm:$0xff]  ;;  %v1272_v18 = vshrl.u32 %v741_v48, 7  ;;  %v5282_v48 = vmov 1.0  }
 0x2ac   : > { %v2590_v50 = vpop.f32.mrb[8].mxu0  ;;  %v1111_v52 = vadd.f32 %v1095_v25, %v1063_v40  ;;  %v1086_v40 = vld [vmem:[%s4090_s20 + $0x68] sm:$0xff]  ;;  %5427 = vst [vmem:[#allocation70_spill] sm:$0xff] %v4380_v49 }
 0x2ad   : > { %v1002_v58 = vpop.f32.mrb[9].mxu0  ;;  %v1066_v1 = vmul.f32 %v2590_v50, %v1050_v56  ;;  %v1087_v50 = vld [vmem:[%s4090_s20 + $0x70] sm:$0xff] }
 0x2ae   : > { %v1065_v62 = vmul.f32 %v1049_v44, %v1002_v58  ;;  %1131 = vadd.xlane.f32.xlu0 %v1110_v51  ;;  %1133 = vadd.xlane.f32.xlu1 %v1111_v52  ;;  %v1054_v44 = vld [vmem:[%s4083_s1 + $0x68] sm:$0xff]  ;;  %v1055_v52 = vld [vmem:[%s4083_s1 + $0x70] sm:$0xff] }
 0x2af   : > { %v1114_v31 = vadd.f32 %v1098_v0, %v1066_v1  ;;  %v4388_v1 = vld [vmem:[%s4148_s19 + $0x78] sm:$0xff] }
 0x2b0   : > { %v2593_v2 = vpop.f32.mrb[10].mxu0  ;;  %v1113_v4 = vadd.f32 %v1097_v53, %v1065_v62  ;;  %v1102_v53 = vmul.f32 %v1086_v40, %v4375_v37  ;;  %v1103_v62 = vmul.f32 %v1087_v50, %v4380_v49  ;;  %5428 = vst [vmem:[#allocation71_spill] sm:$0xff] %v4388_v1  ;;  %v4427_v40 = vadd.s32 48, %v1272_v18 }
 0x2b1   : > { %v1012_v16 = vpop.f32.mrb[11].mxu0  ;;  %v1068_v24 = vmul.f32 %v2593_v2, %v1052_v15  ;;  %v1088_v2 = vld [vmem:[%s4090_s20 + $0x78] sm:$0xff] }
 0x2b2   : > { %v1067_v19 = vmul.f32 %v1051_v63, %v1012_v16  ;;  %1135 = vadd.xlane.f32.xlu0 %v1112_v3  ;;  %1137 = vadd.xlane.f32.xlu1 %v1113_v4  ;;  %v1056_v63 = vld [vmem:[%s4083_s1 + $0x78] sm:$0xff]  ;;  %v1104_v15 = vmul.f32 %v1088_v2, %v4388_v1  ;;  %5431 = vst [vmem:[#allocation73_spill] sm:$0xff] %v4427_v40 }
 0x2b3   : > { %v1116_v58 = vadd.f32 %v1100_v23, %v1068_v24  ;;  %v4401_v24 = vadd.s32 8, %v1272_v18 }
 0x2b4   : > { %v2596_v25 = vpop.f32.mrb[12].mxu0  ;;  %v1115_v32 = vadd.f32 %v1099_v7, %v1067_v19  ;;  %v1392_v19 = vld [vmem:[%s587_s9] sm:$0x1] }
 0x2b5   : > { %v1022_v45 = vpop.f32.mrb[13].mxu0  ;;  %v1070_v55 = vmul.f32 %v2596_v25, %v1054_v44  ;;  %v1393_v23 = vsub.s32 %v1392_v19, %v4173_v5  ;;  %v4419_v5 = vadd.s32 32, %v1272_v18  ;;  %v4429_v44 = vadd.s32 56, %v1272_v18 }
 0x2b6   : > { %v1069_v51 = vmul.f32 %v1053_v22, %v1022_v45  ;;  %1139 = vadd.xlane.f32.xlu0 %v1114_v31  ;;  %1141 = vadd.xlane.f32.xlu1 %v1115_v32  ;;  %v4398_v22 = vsub.s32 0, %v1272_v18  ;;  %v4406_v31 = vadd.s32 16, %v1272_v18  ;;  %v4408_v32 = vadd.s32 24, %v1272_v18 }
 0x2b7   : > { %v1118_v7 = vadd.f32 %v1102_v53, %v1070_v55  ;;  %5432 = vst [vmem:[#allocation74_spill] sm:$0xff] %v4429_v44 }
 0x2b8   : > { %v2599_v56 = vpop.f32.mrb[14].mxu0  ;;  %v1117_v60 = vadd.f32 %v1101_v33, %v1069_v51  ;;  %v4404_v25 = vrot.slane %v1393_v23, %v4398_v22  ;;  %v4421_v33 = vadd.s32 40, %v1272_v18 }
 0x2b9   : > { %v1032_v0 = vpop.f32.mrb[15].mxu0  ;;  %v1072_v4 = vmul.f32 %v2599_v56, %v1056_v63 }
 0x2ba   : > { %v1071_v3 = vmul.f32 %v1055_v52, %v1032_v0  ;;  %1143 = vadd.xlane.f32.xlu0 %v1116_v58  ;;  %1145 = vadd.xlane.f32.xlu1 %v1117_v60  ;;  %vm1407_vm2 = vcmp.eq.s32.totalorder %v1272_v18, %v4404_v25  ;;  %5430 = vst [vmem:[#allocation72_spill] sm:$0xff] %v4421_v33  ;;  %v5442_v18 = vmov 0 }
 0x2bb   : > { %v1120_v16 = vadd.f32 %v1104_v15, %v1072_v4  ;;  %2632 = vmatprep.mubr.msk.f32.mxu1 %vm1407_vm2, %v5282_v48  ;;  %2676 = vmatprep.mubr.msk.f32.mxu0 %vm1407_vm2, %v5282_v48  ;;  %v5437_v4 = vmov 0 }
 0x2bc   : > { %v1119_v13 = vadd.f32 %v1103_v62, %v1071_v3 }
 0x2be   : > { %1147 = vadd.xlane.f32.xlu0 %v1118_v7  ;;  %1149 = vadd.xlane.f32.xlu1 %v1119_v13 }
 0x2c2   : > { %1151 = vadd.xlane.f32.xlu0 %v1120_v16 }
 0x32e   : > { %v1124_v50 = vpop.xlane.xlu1 %1123 }
 0x32f   : > { %v1122_v45 = vpop.xlane.xlu0 %1121  ;;  %v1170_v55 = vmul.f32 0.2, %v1124_v50  ;;  %vm1154_vm6 = vcmp.gt.f32.partialorder %v1124_v50, 0.0 }
 0x330   : > { %v1169_v56 = vmul.f32 0.2, %v1122_v45  ;;  %vm1153_vm1 = vcmp.gt.f32.partialorder %v1122_v45, 0.0 }
 0x331   : > { %v4462_v2 = vsel %vm1154_vm6, %v1124_v50, %v1170_v55  ;;  %vm4483_vm6 = vmand %vm696_vm13, %vm712_vm14 }
 0x332   : > { %v4477_v3 = vsel %vm1153_vm1, %v1122_v45, %v1169_v56  ;;  %v5438_v4 = vsel %vm4483_vm6, 4294967295, %v5437_v4  ;;  %vm5441_vm1 = vcmp.ge.s32.totalorder %v4203_v21, 0  ;;  %v1203_v45 = vsel %vm4472_vm12, %v4462_v2, -inf }
 0x333   : > { %v1128_v51 = vpop.xlane.xlu0 %1127  ;;  %vm4495_vm10 = vmand %vm5441_vm1, %vm5440_vm0  ;;  %v1202_v21 = vsel %vm4454_vm9, %v4477_v3, -inf  ;;  %vm5445_vm1 = vcmp.ge.s32.totalorder %v4178_v8, 0 }
 0x334   : > { %v1172_v58 = vmul.f32 0.2, %v1128_v51  ;;  %vm5439_vm2 = vcmp.gt.f32.partialorder %v1128_v51, 0.0  ;;  %v5443_v18 = vsel %vm4495_vm10, 4294967295, %v5442_v18  ;;  %vm4547_vm0 = vmand %vm5453_vm8, %vm5452_vm3  ;;  %v4557_v20 = vsel %vm5456_vm7, %v1202_v21, -inf }
 0x335   : > { %vm5457_vm8 = vmmov %vm5456_vm7  ;;  %vm5458_vm3 = vcmp.lt.s32.totalorder %v4227_v35, 64 }
 0x336   : > { %v4488_v7 = vsel %vm5439_vm2, %v1128_v51, %v1172_v58 }
 0x337   : > { %v1130_v52 = vpop.xlane.xlu1 %1129  ;;  %v1126_v53 = vpop.xlane.xlu0 %1125  ;;  %v1205_v50 = vsel %vm4483_vm6, %v4488_v7, -inf  ;;  %vm5483_vm6 = vcmp.lt.s32.totalorder %v4234_v38, 64 }
 0x338   : > { %v1173_v63 = vmul.f32 0.2, %v1130_v52  ;;  %vm1157_vm5 = vcmp.gt.f32.partialorder %v1130_v52, 0.0  ;;  %v1171_v13 = vmul.f32 0.2, %v1126_v53  ;;  %vm1155_vm13 = vcmp.gt.f32.partialorder %v1126_v53, 0.0 }
 0x33a   : > { %v4500_v10 = vsel %vm1157_vm5, %v1130_v52, %v1173_v63  ;;  %vm5444_vm5 = vcmp.lt.s32.totalorder %v4178_v8, 64  ;;  %v4530_v51 = vsel %vm1155_vm13, %v1126_v53, %v1171_v13  ;;  %v5450_v52 = vmov 0 }
 0x33b   : > { %v1134_v60 = vpop.xlane.xlu1 %1133  ;;  %v1132_v62 = vpop.xlane.xlu0 %1131  ;;  %vm4514_vm4 = vmand %vm5445_vm1, %vm5444_vm5  ;;  %v1206_v8 = vsel %vm4495_vm10, %v4500_v10, -inf  ;;  %vm5448_vm5 = vcmp.lt.s32.totalorder %v4215_v28, 64  ;;  %vm5449_vm1 = vcmp.ge.s32.totalorder %v4215_v28, 0  ;;  %v5454_v53 = vmov 0 }
 0x33c   : > { %v1175_v11 = vmul.f32 0.2, %v1134_v60  ;;  %vm1159_vm14 = vcmp.gt.f32.partialorder %v1134_v60, 0.0  ;;  %v1174_v19 = vmul.f32 0.2, %v1132_v62  ;;  %vm1158_vm11 = vcmp.gt.f32.partialorder %v1132_v62, 0.0  ;;  %vm4536_vm2 = vmand %vm5449_vm1, %vm5448_vm5 }
 0x33d   : > { %v5451_v52 = vsel %vm4536_vm2, 4294967295, %v5450_v52  ;;  %v5455_v53 = vsel %vm4547_vm0, 4294967295, %v5454_v53  ;;  %vm5462_vm5 = vmmov %vm5456_vm7  ;;  %v1204_v21 = vsel %vm4514_vm4, %v4530_v51, -inf  ;;  %vm5464_vm7 = vcmp.lt.s32.totalorder %v4212_v27, 64 }
 0x33e   : > { %v4541_v55 = vsel %vm1159_vm14, %v1134_v60, %v1175_v11  ;;  %v4552_v63 = vsel %vm1158_vm11, %v1132_v62, %v1174_v19  ;;  %v4560_v11 = vsel %vm5457_vm8, %v1205_v50, -inf  ;;  %vm5459_vm11 = vcmp.ge.s32.totalorder %v4227_v35, 0  ;;  %vm5463_vm1 = vmmov %vm5462_vm5 }
 0x33f   : > { %v1138_v15 = vpop.xlane.xlu1 %1137  ;;  %v1136_v16 = vpop.xlane.xlu0 %1135  ;;  %vm4566_vm13 = vmand %vm5459_vm11, %vm5458_vm3  ;;  %v1220_v19 = vsel %vm5462_vm5, %v1203_v45, -inf  ;;  %v1223_v1 = vsel %vm5463_vm1, %v1206_v8, -inf  ;;  %v1208_v50 = vsel %vm4536_vm2, %v4541_v55, -inf  ;;  %v1207_v35 = vsel %vm4547_vm0, %v4552_v63, -inf }
 0x340   : > { %v1177_v28 = vmul.f32 0.2, %v1138_v15  ;;  %v1176_v13 = vmul.f32 0.2, %v1136_v16  ;;  %vm5465_vm8 = vcmp.ge.s32.totalorder %v4212_v27, 0  ;;  %vm5468_vm5 = vcmp.gt.f32.partialorder %v1138_v15, 0.0 }
 0x341   : > { %vm4585_vm3 = vmand %vm5465_vm8, %vm5464_vm7  ;;  %vm5469_vm1 = vcmp.gt.f32.partialorder %v1136_v16, 0.0  ;;  %vm5470_vm11 = vcmp.lt.s32.totalorder %v4224_v34, 64  ;;  %vm5475_vm8 = vcmp.lt.s32.totalorder %v4237_v39, 64 }
 0x342   : > { %v4590_v37 = vsel %vm5468_vm5, %v1138_v15, %v1177_v28  ;;  %v4593_v17 = vsel %vm5469_vm1, %v1136_v16, %v1176_v13  ;;  %vm4599_vm14 = vmand %vm5471_vm15, %vm5470_vm11  ;;  %vm5476_vm5 = vcmp.ge.s32.totalorder %v4237_v39, 0  ;;  %v5477_v15 = vmov 0 }
 0x343   : > { %v1142_v56 = vpop.xlane.xlu1 %1141  ;;  %v1140_v58 = vpop.xlane.xlu0 %1139  ;;  %v5473_v12 = vsel %vm4599_vm14, 4294967295, %v5472_v12  ;;  %vm4610_vm2 = vmand %vm5476_vm5, %vm5475_vm8  ;;  %v1224_v28 = vmax.f32 %v4557_v20, %v1223_v1  ;;  %vm5480_vm11 = vcmask 7168   ;;  %vm5484_vm8 = vcmp.ge.s32.totalorder %v4234_v38, 0 }
 0x344   : > { %v1179_v48 = vmul.f32 0.2, %v1142_v56  ;;  %v1178_v60 = vmul.f32 0.2, %v1140_v58  ;;  %vm5474_vm7 = vcmp.gt.f32.partialorder %v1140_v58, 0.0  ;;  %v5478_v15 = vsel %vm4610_vm2, 4294967295, %v5477_v15  ;;  %vm4625_vm5 = vmand %vm5484_vm8, %vm5483_vm6 }
 0x345   : > { %vm5479_vm1 = vcmp.gt.f32.partialorder %v1142_v56, 0.0  ;;  %v5485_v39 = vmov 0  ;;  %v1209_v1 = vsel %vm4585_vm3, %v4593_v17, -inf }
 0x346   : > { %v4604_v27 = vsel %vm5474_vm7, %v1140_v58, %v1178_v60  ;;  %v4615_v16 = vsel %vm5479_vm1, %v1142_v56, %v1179_v48  ;;  %v1221_v58 = vsel %vm5480_vm11, %v1204_v21, -inf  ;;  %vm5481_vm7 = vmmov %vm5480_vm11  ;;  %v5486_v39 = vsel %vm4625_vm5, 4294967295, %v5485_v39 }
 0x347   : > { %v1146_v8 = vpop.xlane.xlu1 %1145  ;;  %v1144_v49 = vpop.xlane.xlu0 %1143  ;;  %v1227_v13 = vsel %vm5481_vm7, %v1208_v50, -inf  ;;  %vm5482_vm10 = vmmov %vm5481_vm7  ;;  %v1210_v48 = vsel %vm4566_vm13, %v4590_v37, -inf  ;;  %v1211_v56 = vsel %vm4599_vm14, %v4604_v27, -inf  ;;  %vm5488_vm1 = vcmp.ge.s32.totalorder %v4247_v43, 0 }
 0x348   : > { %v1181_v59 = vmul.f32 0.2, %v1146_v8  ;;  %vm1165_vm0 = vcmp.gt.f32.partialorder %v1146_v8, 0.0  ;;  %vm1164_vm15 = vcmp.gt.f32.partialorder %v1144_v49, 0.0  ;;  %v1180_v34 = vmul.f32 0.2, %v1144_v49 }
 0x349   : > { %v1225_v60 = vsel %vm5482_vm10, %v1207_v35, -inf  ;;  %vm5487_vm10 = vcmp.lt.s32.totalorder %v4247_v43, 64  ;;  %v1212_v35 = vsel %vm4610_vm2, %v4615_v16, -inf  ;;  %vm5491_vm11 = vcmp.lt.s32.totalorder %v4257_v47, 64  ;;  %v5532_v43 = vld [vmem:[#allocation72_spill] sm:$0xff] }
 0x34a   : > { %vm4642_vm6 = vmand %vm5488_vm1, %vm5487_vm10  ;;  %v4646_v20 = vsel %vm1164_vm15, %v1144_v49, %v1180_v34  ;;  %v4652_v54 = vsel %vm1165_vm0, %v1146_v8, %v1181_v59  ;;  %vm5492_vm7 = vcmp.ge.s32.totalorder %v4257_v47, 0  ;;  %vm5495_vm15 = vcmp.lt.s32.totalorder %v4244_v42, 64  ;;  %v5534_v59 = vld [vmem:[#allocation73_spill] sm:$0xff] }
 0x34b   : > { %v1150_v21 = vpop.xlane.xlu1 %1149  ;;  %v1148_v50 = vpop.xlane.xlu0 %1147  ;;  %vm4658_vm8 = vmand %vm5492_vm7, %vm5491_vm11  ;;  %v1213_v34 = vsel %vm4625_vm5, %v4646_v20, -inf  ;;  %vm5496_vm1 = vcmp.ge.s32.totalorder %v4244_v42, 0  ;;  %v1226_v8 = vmax.f32 %v1220_v19, %v1225_v60  ;;  %vm5499_vm11 = vcmask 7168  }
 0x34c   : > { %vm1167_vm10 = vcmp.gt.f32.partialorder %v1150_v21, 0.0  ;;  %v1183_v49 = vmul.f32 0.2, %v1150_v21  ;;  %vm4669_vm0 = vmand %vm5496_vm1, %vm5495_vm15  ;;  %vm1166_vm2 = vcmp.gt.f32.partialorder %v1148_v50, 0.0  ;;  %v1182_v47 = vmul.f32 0.2, %v1148_v50 }
 0x34d   : > { %v1231_v36 = vsel %vm5499_vm11, %v1210_v48, -inf  ;;  %vm5500_vm7 = vmmov %vm5499_vm11  ;;  %v1214_v42 = vsel %vm4642_vm6, %v4652_v54, -inf }
 0x34e   : > { %v1229_v29 = vsel %vm5500_vm7, %v1209_v1, -inf  ;;  %vm5501_vm14 = vmmov %vm5500_vm7  ;;  %v4676_v6 = vsel %vm1167_vm10, %v1150_v21, %v1183_v49  ;;  %v4685_v57 = vsel %vm1166_vm2, %v1148_v50, %v1182_v47  ;;  %v1228_v21 = vmax.f32 %v1221_v58, %v1227_v13  ;;  %v5536_v1 = vld [vmem:[#allocation74_spill] sm:$0xff] }
 0x34f   : > { %v1233_v14 = vsel %vm5501_vm14, %v1211_v56, -inf  ;;  %vm5502_vm5 = vmmov %vm5500_vm7  ;;  %v1216_v41 = vsel %vm4658_vm8, %v4676_v6, -inf  ;;  %v1152_v19 = vpop.xlane.xlu0 %1151  ;;  %v1215_v48 = vsel %vm4669_vm0, %v4685_v57, -inf  ;;  %vm5504_vm14 = vcmp.lt.s32.totalorder %v4254_v46, 64 }
 0x350   : > { %v1235_v61 = vsel %vm5502_vm5, %v1212_v35, -inf  ;;  %vm5503_vm15 = vmmov %vm5502_vm5  ;;  %vm5505_vm5 = vcmp.ge.s32.totalorder %v4254_v46, 0  ;;  %vm1168_vm1 = vcmp.gt.f32.partialorder %v1152_v19, 0.0  ;;  %v1184_v56 = vmul.f32 0.2, %v1152_v19 }
 0x351   : > { %v1237_v60 = vsel %vm5503_vm15, %v1213_v34, -inf  ;;  %vm4695_vm10 = vmand %vm5505_vm5, %vm5504_vm14  ;;  %v1230_v50 = vmax.f32 %v4560_v11, %v1229_v29  ;;  %v1234_v49 = vmax.f32 %v1226_v8, %v1233_v14  ;;  %v1232_v34 = vmax.f32 %v1224_v28, %v1231_v36 }
 0x352   : > { %vm5508_vm2 = vmmov %vm5500_vm7  ;;  %v4703_v26 = vsel %vm1168_vm1, %v1152_v19, %v1184_v56  ;;  %v1236_v46 = vmax.f32 %v1228_v21, %v1235_v61  ;;  %v1201_v61 = vld [vmem:[#allocation4] sm:$0x1]  ;;  %vm1320_vm14 = vcmask 0  }
 0x353   : > { %v1241_v35 = vsel %vm5508_vm2, %v1215_v48, -inf  ;;  %vm5509_vm11 = vmmov %vm5508_vm2  ;;  %v1238_v44 = vmax.f32 %v1230_v50, %v1237_v60  ;;  %v1217_v40 = vsel %vm4695_vm10, %v4703_v26, -inf }
 0x354   : > { %v1239_v47 = vsel %vm5509_vm11, %v1214_v42, -inf  ;;  %vm5510_vm7 = vmmov %vm5508_vm2  ;;  %v1242_v33 = vmax.f32 %v1234_v49, %v1241_v35 }
 0x355   : > { %v1243_v30 = vsel %vm5510_vm7, %v1216_v41, -inf  ;;  %vm5511_vm15 = vmmov %vm5508_vm2  ;;  %v1240_v29 = vmax.f32 %v1232_v34, %v1239_v47  ;;  %vm5512_vm2 = vnez %v5438_v4 }
 0x356   : > { %v1245_v58 = vsel %vm5511_vm15, %v1217_v40, -inf  ;;  %v1244_v11 = vmax.f32 %v1236_v46, %v1243_v30  ;;  %vm2705_vm1 = vmpackc.low %vm4472_vm12, %vm4454_vm9  ;;  %vm5513_vm15 = vnez %v5443_v18 }
 0x357   : > { %v1246_v13 = vmax.f32 %v1238_v44, %v1245_v58  ;;  %v1247_v36 = vmax.f32 %v1240_v29, %v1242_v33  ;;  %vm2711_vm11 = vmpackc.low %vm5512_vm2, %vm4514_vm4 }
 0x359   : > { %v1248_v14 = vmax.f32 %v1244_v11, %v1246_v13 }
 0x35b   : > { %v1249_v28 = vmax.f32 %v1247_v36, %v1248_v14 }
 0x35d   : > { %v1250_v8 = vrot.slane %v1249_v28, 4 }
 0x35f   : > { %v1251_v42 = vmax.f32 %v1249_v28, %v1250_v8 }
 0x361   : > { %v1252_v41 = vrot.slane %v1251_v42, 2 }
 0x363   : > { %v1253_v19 = vmax.f32 %v1251_v42, %v1252_v41  ;;  %v1296_v42 = vld [vmem:[#allocation3 + $0x8] sm:$0xff] }
 0x365   : > { %v1254_v48 = vrot.slane %v1253_v19, 1 }
 0x367   : > { %v1255_v60 = vmax.f32 %v1253_v19, %v1254_v48  ;;  %v1295_v48 = vld [vmem:[#allocation3] sm:$0xff] }
 0x369   : > { %v1256_v56 = vmax.f32 %v1201_v61, %v1255_v60 }
 0x36b   : > { %v4710_v21 = vrot.slane %v1256_v56, %v4398_v22  ;;  %v1258_v50 = vsub.f32 %v1201_v61, %v1256_v56  ;;  %1321 = vst.msk [vmem:[#allocation4] sm:$0x1] %vm1320_vm14, %v1256_v56  ;;  %vm1257_vm5 = vcmp.gt.f32.partialorder %v1256_v56, -inf  ;;  %vm5514_vm14 = vmmov %vm5510_vm7 }
 0x36d   : > { %v1329_v30 = vsub.f32 %v4462_v2, %v4710_v21  ;;  %v1259_v40 = vmul.f32 1.442695, %v1258_v50  ;;  %v1328_v33 = vsub.f32 %v4477_v3, %v4710_v21  ;;  %v1330_v44 = vsub.f32 %v4530_v51, %v4710_v21 }
 0x36e   : > { %v1331_v35 = vsub.f32 %v4488_v7, %v4710_v21  ;;  %v1332_v49 = vsub.f32 %v4500_v10, %v4710_v21  ;;  %v1333_v34 = vsub.f32 %v4552_v63, %v4710_v21  ;;  %v1334_v47 = vsub.f32 %v4541_v55, %v4710_v21 }
 0x36f   : > { %v1346_v2 = vmul.f32 1.442695, %v1329_v30  ;;  %3004 = vpow2.f32 %v1259_v40  ;;  %v1344_v46 = vmul.f32 1.442695, %v1328_v33  ;;  %v1348_v58 = vmul.f32 1.442695, %v1330_v44 }
 0x370   : > { %v1350_v3 = vmul.f32 1.442695, %v1331_v35  ;;  %v1352_v29 = vmul.f32 1.442695, %v1332_v49  ;;  %v1354_v51 = vmul.f32 1.442695, %v1333_v34  ;;  %v1335_v7 = vsub.f32 %v4593_v17, %v4710_v21 }
 0x371   : > { %3006 = vpow2.f32 %v1346_v2  ;;  %v1356_v10 = vmul.f32 1.442695, %v1334_v47  ;;  %v1336_v63 = vsub.f32 %v4590_v37, %v4710_v21  ;;  %v1337_v11 = vsub.f32 %v4604_v27, %v4710_v21  ;;  %v1300_v33 = vld [vmem:[#allocation3 + $0x28] sm:$0xff]  ;;  %v1299_v44 = vld [vmem:[#allocation3 + $0x20] sm:$0xff]  ;;  %v1302_v2 = vld [vmem:[#allocation3 + $0x38] sm:$0xff] }
 0x372   : > { %3008 = vpow2.f32 %v1344_v46  ;;  %v1358_v55 = vmul.f32 1.442695, %v1335_v7  ;;  %v1338_v14 = vsub.f32 %v4615_v16, %v4710_v21  ;;  %v1339_v17 = vsub.f32 %v4646_v20, %v4710_v21  ;;  %v1298_v16 = vld [vmem:[#allocation3 + $0x18] sm:$0xff]  ;;  %v1301_v46 = vld [vmem:[#allocation3 + $0x30] sm:$0xff] }
 0x373   : > { %3010 = vpow2.f32 %v1348_v58  ;;  %v1360_v13 = vmul.f32 1.442695, %v1336_v63  ;;  %v1362_v37 = vmul.f32 1.442695, %v1337_v11  ;;  %v1340_v8 = vsub.f32 %v4652_v54, %v4710_v21  ;;  %v1297_v54 = vld [vmem:[#allocation3 + $0x10] sm:$0xff] }
 0x374   : > { %3012 = vpow2.f32 %v1350_v3  ;;  %v1364_v19 = vmul.f32 1.442695, %v1338_v14  ;;  %v1366_v60 = vmul.f32 1.442695, %v1339_v17  ;;  %v1341_v30 = vsub.f32 %v4685_v57, %v4710_v21 }
 0x375   : > { %3014 = vpow2.f32 %v1352_v29  ;;  %v1368_v49 = vmul.f32 1.442695, %v1340_v8  ;;  %v1342_v3 = vsub.f32 %v4676_v6, %v4710_v21 }
 0x376   : > { %3016 = vpow2.f32 %v1354_v51  ;;  %v1370_v11 = vmul.f32 1.442695, %v1341_v30 }
 0x377   : > { %3018 = vpow2.f32 %v1356_v10  ;;  %v1372_v17 = vmul.f32 1.442695, %v1342_v3 }
 0x378   : > { %3020 = vpow2.f32 %v1358_v55 }
 0x379   : > { %v3005_v36 = vpop.eup %3004  ;;  %3022 = vpow2.f32 %v1360_v13  ;;  %v1343_v13 = vsub.f32 %v4703_v26, %v4710_v21 }
 0x37a   : > { %v1261_v28 = vsel %vm1257_vm5, %v3005_v36, 0.0  ;;  %3024 = vpow2.f32 %v1362_v37  ;;  %vm5515_vm5 = vmmov %vm5510_vm7 }
 0x37b   : > { %v3007_v41 = vpop.eup %3006  ;;  %v4739_v27 = vrot.slane %v1261_v28, %v4398_v22  ;;  %3026 = vpow2.f32 %v1364_v19  ;;  %v1374_v23 = vmul.f32 1.442695, %v1343_v13 }
 0x37c   : > { %v3009_v61 = vpop.eup %3008  ;;  %v1377_v20 = vsel %vm4472_vm12, %v3007_v41, 0.0  ;;  %vm5517_vm12 = vnez %v5455_v53  ;;  %3028 = vpow2.f32 %v1366_v60 }
 0x37d   : > { %v3011_v56 = vpop.eup %3010  ;;  %1575 = vperm.xlu0 %3002, %v1377_v20   ;;  %v1376_v22 = vsel %vm4454_vm9, %v3009_v61, 0.0  ;;  %v2704_v50 = vpack.c.bf16 %v3007_v41, %v3009_v61  ;;  %v1305_v40 = vmul.f32 %v1296_v42, %v4739_v27  ;;  %v1304_v34 = vmul.f32 %v1295_v48, %v4739_v27  ;;  %vm5516_vm9 = vmmov %vm5515_vm5 }
 0x37e   : > { %v3013_v35 = vpop.eup %3012  ;;  %1570 = vperm.xlu1 %3003, %v1376_v22   ;;  %v1307_v47 = vmul.f32 %v1298_v16, %v4739_v27  ;;  %v1306_v29 = vmul.f32 %v1297_v54, %v4739_v27  ;;  %v1309_v6 = vmul.f32 %v1300_v33, %v4739_v27  ;;  %v1308_v10 = vmul.f32 %v1299_v44, %v4739_v27  ;;  %v5539_v33 = vld [vmem:[#allocation57_spill] sm:$0xff] }
 0x37f   : > { %v3015_v57 = vpop.eup %3014  ;;  %2706 = vmatprep.subr.msk.bf16.mxu1 %vm2705_vm1, %v2704_v50  ;;  %v2710_v58 = vpack.c.bf16 %v3013_v35, %v3011_v56  ;;  %1313 = vst.msk [vmem:[#allocation3 + $0x8] sm:$0xff] %vm5510_vm7, %v1305_v40  ;;  %v1378_v0 = vsel %vm4514_vm4, %v3011_v56, 0.0  ;;  %v1311_v9 = vmul.f32 %v1302_v2, %v4739_v27  ;;  %v1310_v55 = vmul.f32 %v1301_v46, %v4739_v27  ;;  %vm5518_vm7 = vmmov %vm5515_vm5  ;;  %v5540_v46 = vld [vmem:[#allocation59_spill] sm:$0xff] }
 0x380   : > { %v3017_v51 = vpop.eup %3016  ;;  %2709 = vmatpush3.bf16.msk.msra.mxu1 %vm2705_vm1, %v2704_v50  ;;  %v1380_v7 = vsel %vm5513_vm15, %v3015_v57, 0.0  ;;  %1312 = vst.msk [vmem:[#allocation3] sm:$0xff] %vm5514_vm14, %v1304_v34  ;;  %vm5519_vm14 = vmmov %vm5515_vm5  ;;  %3030 = vpow2.f32 %v1368_v49  ;;  %vm5521_vm1 = vnez %v5451_v52  ;;  %v1379_v28 = vsel %vm5512_vm2, %v3013_v35, 0.0  ;;  %v5538_v50 = vld [vmem:[#allocation56_spill] sm:$0xff] }
 0x381   : > { %1315 = vst.msk [vmem:[#allocation3 + $0x18] sm:$0xff] %vm5515_vm5, %v1307_v47  ;;  %v3019_v63 = vpop.eup %3018  ;;  %2712 = vmatprep.subr.msk.bf16.mxu1 %vm2711_vm11, %v2710_v58  ;;  %1590 = vperm.xlu0 %3002, %v1380_v7   ;;  %v2716_v14 = vpack.c.bf16 %v3017_v51, %v3015_v57  ;;  %1319 = vst.msk [vmem:[#allocation3 + $0x38] sm:$0xff] %vm5515_vm5, %v1311_v9  ;;  %3032 = vpow2.f32 %v1370_v11  ;;  %v1381_v41 = vsel %vm5517_vm12, %v3017_v51, 0.0  ;;  %vm5524_vm2 = vnez %v5473_v12  ;;  %v5544_v11 = vld [vmem:[#allocation62_spill] sm:$0xff] }
 0x382   : > { %1314 = vst.msk [vmem:[#allocation3 + $0x10] sm:$0xff] %vm5516_vm9, %v1306_v29  ;;  %1580 = vperm.xlu1 %3003, %v1378_v0   ;;  %vm5520_vm9 = vmmov %vm5515_vm5  ;;  %v3021_v36 = vpop.eup %3020  ;;  %v1382_v26 = vsel %vm5521_vm1, %v3019_v63, 0.0  ;;  %3034 = vpow2.f32 %v1372_v17  ;;  %v5527_v22 = vmov 1.0   ;;  %vm5533_vm5 = vcmp.eq.s32.totalorder %v5532_v43, %v4404_v25 }
 0x383   : > { %1317 = vst.msk [vmem:[#allocation3 + $0x28] sm:$0xff] %vm5518_vm7, %v1309_v6  ;;  %v3023_v21 = vpop.eup %3022  ;;  %vm5522_vm7 = vmpackc.low %vm5517_vm12, %vm5513_vm15  ;;  %v2722_v37 = vpack.c.bf16 %v3021_v36, %v3019_v63  ;;  %3036 = vpow2.f32 %v1374_v23  ;;  %v1383_v62 = vsel %vm4585_vm3, %v3021_v36, 0.0  ;;  %v5542_v6 = vld [vmem:[#allocation60_spill] sm:$0xff]  ;;  %v5543_v63 = vld [vmem:[#allocation61_spill] sm:$0xff] }
 0x384   : > { %1316 = vst.msk [vmem:[#allocation3 + $0x20] sm:$0xff] %vm5519_vm14, %v1308_v10  ;;  %2715 = vmatpush3.bf16.msk.msra.mxu1 %vm2711_vm11, %v2710_v58  ;;  %vm2723_vm4 = vmpackc.low %vm4585_vm3, %vm5521_vm1  ;;  %v3025_v8 = vpop.eup %3024  ;;  %v1384_v4 = vsel %vm4566_vm13, %v3023_v21, 0.0  ;;  %vm5525_vm14 = vnez %v5478_v15  ;;  %v5541_v58 = vld [vmem:[#allocation58_spill] sm:$0xff] }
 0x385   : > { %1318 = vst.msk [vmem:[#allocation3 + $0x30] sm:$0xff] %vm5520_vm9, %v1310_v55  ;;  %2718 = vmatprep.subr.msk.bf16.mxu1 %vm5522_vm7, %v2716_v14  ;;  %1600 = vperm.xlu0 %3002, %v1382_v26   ;;  %vm5523_vm11 = vmmov %vm5522_vm7  ;;  %v3027_v42 = vpop.eup %3026  ;;  %v2728_v18 = vpack.c.bf16 %v3025_v8, %v3023_v21  ;;  %v1385_v60 = vsel %vm5524_vm2, %v3025_v8, 0.0  ;;  %vm5535_vm9 = vcmp.eq.s32.totalorder %v5534_v59, %v4404_v25 }
 0x386   : > { %1585 = vperm.xlu1 %3003, %v1379_v28   ;;  %vm2729_vm15 = vmpackc.low %vm5524_vm2, %vm4566_vm13  ;;  %v3029_v19 = vpop.eup %3028  ;;  %v1386_v48 = vsel %vm5525_vm14, %v3027_v42, 0.0  ;;  %vm5526_vm13 = vnez %v5486_v39  ;;  %vm5537_vm7 = vcmp.eq.s32.totalorder %v5536_v1, %v4404_v25  ;;  %v5546_v28 = vld [vmem:[#allocation64_spill] sm:$0xff] }
 0x387   : > { %vm2735_vm12 = vmpackc.low %vm5526_vm13, %vm5525_vm14  ;;  %v2734_v16 = vpack.c.bf16 %v3029_v19, %v3027_v42  ;;  %v1387_v56 = vsel %vm5526_vm13, %v3029_v19, 0.0 }
 0x388   : > { %2721 = vmatpush3.bf16.msk.msra.mxu1 %vm5523_vm11, %v2716_v14  ;;  %vm2741_vm3 = vmpackc.low %vm4669_vm0, %vm4642_vm6  ;;  %v5545_v14 = vld [vmem:[#allocation63_spill] sm:$0xff] }
 0x389   : > { %2724 = vmatprep.subr.msk.bf16.mxu1 %vm2723_vm4, %v2722_v37  ;;  %1610 = vperm.xlu0 %3002, %v1384_v4   ;;  %vm2747_vm1 = vmpackc.low %vm4695_vm10, %vm4658_vm8  ;;  %v1434_v43 = vld [vmem:[#allocation3 + $0x18] sm:$0xff]  ;;  %v1433_v59 = vld [vmem:[#allocation3 + $0x10] sm:$0xff] }
 0x38a   : > { %1595 = vperm.xlu1 %3003, %v1381_v41   ;;  %v3031_v53 = vpop.eup %3030  ;;  %vm5558_vm14 = vmmov %vm5533_vm5 }
 0x38b   : > { %v3033_v61 = vpop.eup %3032  ;;  %v1388_v52 = vsel %vm4642_vm6, %v3031_v53, 0.0  ;;  %vm5528_vm6 = vcmp.eq.s32.totalorder %v4401_v24, %v4404_v25  ;;  %vm5559_vm13 = vmmov %vm5535_vm9  ;;  %v1432_v24 = vld [vmem:[#allocation3 + $0x8] sm:$0xff] }
 0x38c   : > { %2727 = vmatpush3.bf16.msk.msra.mxu1 %vm2723_vm4, %v2722_v37  ;;  %v3035_v20 = vpop.eup %3034  ;;  %v2740_v45 = vpack.c.bf16 %v3033_v61, %v3031_v53  ;;  %v1389_v38 = vsel %vm4669_vm0, %v3033_v61, 0.0  ;;  %vm5530_vm0 = vcmp.eq.s32.totalorder %v4408_v32, %v4404_v25  ;;  %v5547_v37 = vld [vmem:[#allocation65_spill] sm:$0xff]  ;;  %v5550_v61 = vld [vmem:[#allocation68_spill] sm:$0xff]  ;;  %vm5554_vm4 = vmmov %vm5528_vm6 }
 0x38d   : > { %2730 = vmatprep.subr.msk.bf16.mxu1 %vm2729_vm15, %v2728_v18  ;;  %1620 = vperm.xlu0 %3002, %v1386_v48   ;;  %v3037_v15 = vpop.eup %3036  ;;  %v1390_v54 = vsel %vm4658_vm8, %v3035_v20, 0.0  ;;  %vm5529_vm8 = vcmp.eq.s32.totalorder %v4406_v31, %v4404_v25  ;;  %v5549_v48 = vld [vmem:[#allocation67_spill] sm:$0xff]  ;;  %vm5556_vm2 = vmmov %vm5530_vm0 }
 0x38e   : > { %1605 = vperm.xlu1 %3003, %v1383_v62   ;;  %v2746_v12 = vpack.c.bf16 %v3037_v15, %v3035_v20  ;;  %v1391_v39 = vsel %vm4695_vm10, %v3037_v15, 0.0  ;;  %vm5531_vm10 = vcmp.eq.s32.totalorder %v4419_v5, %v4404_v25  ;;  %v5551_v20 = vld [vmem:[#allocation69_spill] sm:$0xff]  ;;  %vm5555_vm11 = vmmov %vm5529_vm8  ;;  %v1431_v5 = vld [vmem:[#allocation3] sm:$0xff] }
 0x38f   : > { %v1436_v25 = vld [vmem:[#allocation3 + $0x28] sm:$0xff] }
 0x390   : > { %2733 = vmatpush3.bf16.msk.msra.mxu1 %vm2729_vm15, %v2728_v18  ;;  %v5548_v18 = vld [vmem:[#allocation66_spill] sm:$0xff]  ;;  %vm5557_vm15 = vmmov %vm5531_vm10 }
 0x391   : > { %2736 = vmatprep.subr.msk.bf16.mxu1 %vm2735_vm12, %v2734_v16  ;;  %1630 = vperm.xlu0 %3002, %v1388_v52  }
 0x392   : > { %1615 = vperm.xlu1 %3003, %v1385_v60  }
 0x394   : > { %2739 = vmatpush3.bf16.msk.msra.mxu1 %vm2735_vm12, %v2734_v16  ;;  %vm5560_vm12 = vmmov %vm5537_vm7 }
 0x395   : > { %2742 = vmatprep.subr.msk.bf16.mxu1 %vm2741_vm3, %v2740_v45  ;;  %1640 = vperm.xlu0 %3002, %v1390_v54  }
 0x396   : > { %1625 = vperm.xlu1 %3003, %v1387_v56   ;;  %v5552_v56 = vld [vmem:[#allocation70_spill] sm:$0xff] }
 0x398   : > { %2745 = vmatpush3.bf16.msk.msra.mxu1 %vm2741_vm3, %v2740_v45  ;;  %vm5561_vm3 = vcmask 7168  }
 0x399   : > { %2748 = vmatprep.subr.msk.bf16.mxu1 %vm2747_vm1, %v2746_v12  ;;  %1276 = vperm.xlu0 %3002, %v4739_v27  }
 0x39a   : > { %1635 = vperm.xlu1 %3003, %v1389_v38   ;;  %v5553_v38 = vld [vmem:[#allocation71_spill] sm:$0xff] }
 0x39c   : > { %2751 = vmatpush3.bf16.msk.msra.mxu1 %vm2747_vm1, %v2746_v12  ;;  %vm5562_vm1 = vmmov %vm5561_vm3 }
 0x39e   : > { %1645 = vperm.xlu1 %3003, %v1391_v39  }
 0x39f   : > { %2633 = vmatmul.mubr.msk.f32.vlgmr.msra.gmra.mrb[0].mxu1 %vm5528_vm6, %v5527_v22  ;;  %vm5563_vm6 = vmmov %vm5562_vm1 }
 0x3a0   : > { %2635 = vmatprep.mubr.msk.f32.mxu1 %vm5529_vm8, %v5527_v22  ;;  %vm5564_vm8 = vmmov %vm5562_vm1 }
 0x3a3   : > { %2636 = vmatmul.mubr.msk.f32.gmra.mrb[2].mxu1 %vm5530_vm0, %v5527_v22  ;;  %vm5565_vm0 = vmmov %vm5562_vm1 }
 0x3a4   : > { %2638 = vmatprep.mubr.msk.f32.mxu1 %vm5531_vm10, %v5527_v22  ;;  %vm5566_vm10 = vmmov %vm5565_vm0 }
 0x3a7   : > { %2639 = vmatmul.mubr.msk.f32.gmra.mrb[4].mxu1 %vm5533_vm5, %v5527_v22  ;;  %vm5567_vm5 = vmmov %vm5565_vm0 }
 0x3a8   : > { %2641 = vmatprep.mubr.msk.f32.mxu1 %vm5535_vm9, %v5527_v22  ;;  %vm5568_vm9 = vmmov %vm5565_vm0 }
 0x3ab   : > { %2642 = vmatmul.mubr.msk.f32.gmra.mrb[6].mxu1 %vm5537_vm7, %v5527_v22 }
 0x3fc   : > { %v1576_v27 = vpop.permute.xlu0 %1575 }
 0x3fd   : > { %v1649_v30 = vmul.f32 %v1576_v27, %v5538_v50  ;;  %v1571_v40 = vpop.permute.xlu1 %1570 }
 0x3fe   : > { %v1648_v44 = vmul.f32 %v1571_v40, %v5539_v33 }
 0x400   : > { %v2752_v35 = vpack.c.bf16 %v1649_v30, %v1648_v44  ;;  %v1591_v49 = vpop.permute.xlu0 %1590 }
 0x401   : > { %v1581_v34 = vpop.permute.xlu1 %1580  ;;  %v1652_v10 = vmul.f32 %v1591_v49, %v5542_v6  ;;  %v1435_v49 = vld [vmem:[#allocation3 + $0x20] sm:$0xff] }
 0x402   : > { %2753 = vmatprep.subr.bf16.mxu0 %v2752_v35  ;;  %v1650_v57 = vmul.f32 %v1581_v34, %v5540_v46  ;;  %v1262_v6 = vld [vmem:[#allocation2] sm:$0xff] }
 0x403   : > { %2755 = vmatpush3.bf16.msra.mxu0 %v2752_v35 }
 0x404   : > { %v1601_v47 = vpop.permute.xlu0 %1600 }
 0x405   : > { %v1586_v2 = vpop.permute.xlu1 %1585  ;;  %v1654_v13 = vmul.f32 %v1601_v47, %v5544_v11 }
 0x406   : > { %v1651_v3 = vmul.f32 %v1586_v2, %v5541_v58  ;;  %v1438_v2 = vld [vmem:[#allocation3 + $0x38] sm:$0xff]  ;;  %v1437_v58 = vld [vmem:[#allocation3 + $0x30] sm:$0xff] }
 0x408   : > { %v2756_v29 = vpack.c.bf16 %v1651_v3, %v1650_v57  ;;  %v1611_v51 = vpop.permute.xlu0 %1610 }
 0x409   : > { %v1596_v7 = vpop.permute.xlu1 %1595  ;;  %v1656_v23 = vmul.f32 %v1611_v51, %v5546_v28 }
 0x40a   : > { %v1653_v0 = vmul.f32 %v1596_v7, %v5543_v63  ;;  %2757 = vmatprep.subr.bf16.mxu0 %v2756_v29  ;;  %v1263_v7 = vld [vmem:[#allocation2 + $0x8] sm:$0xff] }
 0x40b   : > { %2759 = vmatpush3.bf16.msra.mxu0 %v2756_v29 }
 0x40c   : > { %v2760_v9 = vpack.c.bf16 %v1653_v0, %v1652_v10  ;;  %v1621_v36 = vpop.permute.xlu0 %1620 }
 0x40d   : > { %v1606_v55 = vpop.permute.xlu1 %1605  ;;  %v1658_v19 = vmul.f32 %v1621_v36, %v5548_v18  ;;  %v1269_v18 = vld [vmem:[#allocation2 + $0x38] sm:$0xff] }
 0x40e   : > { %v1655_v17 = vmul.f32 %v1606_v55, %v5545_v14  ;;  %2761 = vmatprep.subr.bf16.mxu0 %v2760_v9 }
 0x40f   : > { %2763 = vmatpush3.bf16.msra.mxu0 %v2760_v9  ;;  %v1265_v9 = vld [vmem:[#allocation2 + $0x18] sm:$0xff] }
 0x410   : > { %v2764_v26 = vpack.c.bf16 %v1655_v17, %v1654_v13  ;;  %v1631_v42 = vpop.permute.xlu0 %1630  ;;  %v1264_v13 = vld [vmem:[#allocation2 + $0x10] sm:$0xff] }
 0x411   : > { %v1616_v21 = vpop.permute.xlu1 %1615  ;;  %v1660_v52 = vmul.f32 %v1631_v42, %v5550_v61 }
 0x412   : > { %v1657_v8 = vmul.f32 %v1616_v21, %v5547_v37  ;;  %2765 = vmatprep.subr.bf16.mxu0 %v2764_v26  ;;  %v1267_v21 = vld [vmem:[#allocation2 + $0x28] sm:$0xff]  ;;  %v1266_v37 = vld [vmem:[#allocation2 + $0x20] sm:$0xff] }
 0x413   : > { %2767 = vmatpush3.bf16.msra.mxu0 %v2764_v26 }
 0x414   : > { %v2768_v4 = vpack.c.bf16 %v1657_v8, %v1656_v23  ;;  %v1641_v45 = vpop.permute.xlu0 %1640 }
 0x415   : > { %v1626_v41 = vpop.permute.xlu1 %1625  ;;  %v1662_v12 = vmul.f32 %v1641_v45, %v5552_v56 }
 0x416   : > { %v1659_v53 = vmul.f32 %v1626_v41, %v5549_v48  ;;  %2769 = vmatprep.subr.bf16.mxu0 %v2768_v4 }
 0x417   : > { %2771 = vmatpush3.bf16.msra.mxu0 %v2768_v4 }
 0x418   : > { %v2772_v62 = vpack.c.bf16 %v1659_v53, %v1658_v19  ;;  %v1277_v51 = vpop.permute.xlu0 %1276  ;;  %v1268_v53 = vld [vmem:[#allocation2 + $0x30] sm:$0xff] }
 0x419   : > { %v1636_v16 = vpop.permute.xlu1 %1635  ;;  %v1280_v10 = vmul.f32 %v1277_v51, %v1263_v7  ;;  %v1279_v0 = vmul.f32 %v1277_v51, %v1262_v6  ;;  %v1282_v17 = vmul.f32 %v1277_v51, %v1265_v9  ;;  %v1281_v26 = vmul.f32 %v1277_v51, %v1264_v13  ;;  %v1924_v13 = vld [vmem:[%s4097_s25] sm:$0xff] (%p4141_p3) }
 0x41a   : > { %v1661_v60 = vmul.f32 %v1636_v16, %v5551_v20  ;;  %2773 = vmatprep.subr.bf16.mxu0 %v2772_v62  ;;  %v1284_v4 = vmul.f32 %v1277_v51, %v1267_v21  ;;  %v1283_v41 = vmul.f32 %v1277_v51, %v1266_v37  ;;  %v1286_v16 = vmul.f32 %v1277_v51, %v1269_v18  ;;  %v1940_v37 = vld [vmem:[%s4111_s14] sm:$0xff] (%p4141_p3) }
 0x41b   : > { %2775 = vmatpush3.bf16.msra.mxu0 %v2772_v62 }
 0x41c   : > { %v2776_v15 = vpack.c.bf16 %v1661_v60, %v1660_v52  ;;  %v1285_v52 = vmul.f32 %v1277_v51, %v1268_v53 }
 0x41d   : > { %v1646_v54 = vpop.permute.xlu1 %1645 }
 0x41e   : > { %v1663_v39 = vmul.f32 %v1646_v54, %v5553_v38  ;;  %2777 = vmatprep.subr.bf16.mxu0 %v2776_v15 }
 0x41f   : > { %2779 = vmatpush3.bf16.msra.mxu0 %v2776_v15 }
 0x420   : > { %v2780_v27 = vpack.c.bf16 %v1663_v39, %v1662_v12  ;;  %v3501_v12 = vmov (%p4141_p3), 0  }
 0x421   : > { %3039 = vset.pattern.permute.xlu1 (%p4141_p3), %v3501_v12  ;;  %3038 = vset.pattern.permute.xlu0 (%p4141_p3), %v3501_v12 }
 0x422   : > { %2781 = vmatprep.subr.bf16.mxu0 %v2780_v27 }
 0x423   : > { %2783 = vmatpush3.bf16.msra.mxu0 %v2780_v27 }
 0x426   : > { %2677 = vmatmul.mubr.msk.f32.vlgmr.msra.gmra.mrb[16].mxu0 %vm5554_vm4, %v5527_v22 }
 0x427   : > { %2679 = vmatprep.mubr.msk.f32.mxu0 %vm5555_vm11, %v5527_v22 }
 0x42a   : > { %2680 = vmatmul.mubr.msk.f32.gmra.mrb[18].mxu0 %vm5556_vm2, %v5527_v22 }
 0x42b   : > { %2682 = vmatprep.mubr.msk.f32.mxu0 %vm5557_vm15, %v5527_v22 }
 0x42e   : > { %2683 = vmatmul.mubr.msk.f32.gmra.mrb[20].mxu0 %vm5558_vm14, %v5527_v22 }
 0x42f   : > { %2685 = vmatprep.mubr.msk.f32.mxu0 %vm5559_vm13, %v5527_v22 }
 0x432   : > { %2686 = vmatmul.mubr.msk.f32.gmra.mrb[22].mxu0 %vm5560_vm12, %v5527_v22 }
 0x472   : > { %v2634_v31 = vpop.f32.mrb[0].mxu1 }
 0x473   : > { %v1545_v32 = vadd.f32 %v2634_v31, %v1432_v24  ;;  %v1505_v50 = vpop.f32.mrb[1].mxu1 }
 0x474   : > { %v1544_v30 = vadd.f32 %v1505_v50, %v1431_v5 }
 0x475   : > { %1553 = vst.msk [vmem:[#allocation3 + $0x8] sm:$0xff] %vm5561_vm3, %v1545_v32 }
 0x476   : > { %1552 = vst.msk [vmem:[#allocation3] sm:$0xff] %vm5562_vm1, %v1544_v30  ;;  %v2637_v40 = vpop.f32.mrb[2].mxu1 }
 0x477   : > { %v1547_v33 = vadd.f32 %v2637_v40, %v1434_v43  ;;  %v1515_v44 = vpop.f32.mrb[3].mxu1 }
 0x478   : > { %v1546_v35 = vadd.f32 %v1515_v44, %v1433_v59 }
 0x479   : > { %1555 = vst.msk [vmem:[#allocation3 + $0x18] sm:$0xff] %vm5563_vm6, %v1547_v33 }
 0x47a   : > { %1554 = vst.msk [vmem:[#allocation3 + $0x10] sm:$0xff] %vm5564_vm8, %v1546_v35  ;;  %v2640_v22 = vpop.f32.mrb[4].mxu1 }
 0x47b   : > { %v1549_v1 = vadd.f32 %v2640_v22, %v1436_v25  ;;  %v1525_v34 = vpop.f32.mrb[5].mxu1 }
 0x47c   : > { %v1548_v47 = vadd.f32 %v1525_v34, %v1435_v49  ;;  %v1789_v38 = vld [vmem:[#allocation3 + $0x8] sm:$0xff] (%p4141_p3) }
 0x47d   : > { %1557 = vst.msk [vmem:[#allocation3 + $0x28] sm:$0xff] %vm5565_vm0, %v1549_v1  ;;  %v1788_v54 = vld [vmem:[#allocation3] sm:$0xff] (%p4141_p3)  ;;  %vm1797_vm2 = vcmp.gt.f32.partialorder (%p4141_p3), %v1789_v38, 0.0 }
 0x47e   : > { %1556 = vst.msk [vmem:[#allocation3 + $0x20] sm:$0xff] %vm5566_vm10, %v1548_v47  ;;  %v2643_v46 = vpop.f32.mrb[6].mxu1  ;;  %vm1796_vm4 = vcmp.gt.f32.partialorder (%p4141_p3), %v1788_v54, 0.0  ;;  %v1805_v5 = vsel (%p4141_p3), %vm1797_vm2, %v1789_v38, 1.0  ;;  %v1877_v44 = vsel (%p4141_p3), %vm1797_vm2, 1, %v3501_v12 }
 0x47f   : > { %v1551_v57 = vadd.f32 %v2643_v46, %v1438_v2  ;;  %v1535_v3 = vpop.f32.mrb[7].mxu1  ;;  %v1804_v27 = vsel (%p4141_p3), %vm1796_vm4, %v1788_v54, 1.0  ;;  %v1876_v35 = vsel (%p4141_p3), %vm1796_vm4, 1, %v3501_v12 }
 0x480   : > { %v1550_v29 = vadd.f32 %v1535_v3, %v1437_v58  ;;  %v1791_v56 = vld [vmem:[#allocation3 + $0x18] sm:$0xff] (%p4141_p3)  ;;  %1822 = vperm.xlu0 (%p4141_p3), %3038, %v1804_v27  }
 0x481   : > { %1559 = vst.msk [vmem:[#allocation3 + $0x38] sm:$0xff] %vm5567_vm5, %v1551_v57  ;;  %v1790_v15 = vld [vmem:[#allocation3 + $0x10] sm:$0xff] (%p4141_p3)  ;;  %vm1799_vm11 = vcmp.gt.f32.partialorder (%p4141_p3), %v1791_v56, 0.0 }
 0x482   : > { %1558 = vst.msk [vmem:[#allocation3 + $0x30] sm:$0xff] %vm5568_vm9, %v1550_v29  ;;  %vm1798_vm7 = vcmp.gt.f32.partialorder (%p4141_p3), %v1790_v15, 0.0  ;;  %v1807_v32 = vsel (%p4141_p3), %vm1799_vm11, %v1791_v56, 1.0  ;;  %v1879_v25 = vsel (%p4141_p3), %vm1799_vm11, 1, %v3501_v12 }
 0x483   : > { %v1806_v39 = vsel (%p4141_p3), %vm1798_vm7, %v1790_v15, 1.0  ;;  %v1878_v22 = vsel (%p4141_p3), %vm1798_vm7, 1, %v3501_v12 }
 0x484   : > { %v1793_v24 = vld [vmem:[#allocation3 + $0x28] sm:$0xff] (%p4141_p3)  ;;  %1832 = vperm.xlu1 (%p4141_p3), %3039, %v1806_v39   ;;  %1827 = vperm.xlu0 (%p4141_p3), %3038, %v1805_v5  }
 0x485   : > { %v1792_v31 = vld [vmem:[#allocation3 + $0x20] sm:$0xff] (%p4141_p3)  ;;  %vm1801_vm15 = vcmp.gt.f32.partialorder (%p4141_p3), %v1793_v24, 0.0  ;;  %v1929_v5 = vld [vmem:[%s4097_s25 + $0x28] sm:$0xff] (%p4141_p3) }
 0x486   : > { %vm1800_vm14 = vcmp.gt.f32.partialorder (%p4141_p3), %v1792_v31, 0.0  ;;  %v1809_v43 = vsel (%p4141_p3), %vm1801_vm15, %v1793_v24, 1.0  ;;  %v1881_v1 = vsel (%p4141_p3), %vm1801_vm15, 1, %v3501_v12  ;;  %v1943_v24 = vld [vmem:[%s4111_s14 + $0x18] sm:$0xff] (%p4141_p3) }
 0x487   : > { %v1808_v40 = vsel (%p4141_p3), %vm1800_vm14, %v1792_v31, 1.0  ;;  %v1880_v49 = vsel (%p4141_p3), %vm1800_vm14, 1, %v3501_v12 }
 0x488   : > { %v1795_v50 = vld [vmem:[#allocation3 + $0x38] sm:$0xff] (%p4141_p3)  ;;  %1837 = vperm.xlu1 (%p4141_p3), %3039, %v1807_v32   ;;  %1842 = vperm.xlu0 (%p4141_p3), %3038, %v1808_v40  }
 0x489   : > { %v1794_v30 = vld [vmem:[#allocation3 + $0x30] sm:$0xff] (%p4141_p3)  ;;  %vm1803_vm13 = vcmp.gt.f32.partialorder (%p4141_p3), %v1795_v50, 0.0 }
 0x48a   : > { %vm1802_vm12 = vcmp.gt.f32.partialorder (%p4141_p3), %v1794_v30, 0.0  ;;  %v1811_v33 = vsel (%p4141_p3), %vm1803_vm13, %v1795_v50, 1.0  ;;  %v1883_v34 = vsel (%p4141_p3), %vm1803_vm13, 1, %v3501_v12 }
 0x48b   : > { %v1810_v59 = vsel (%p4141_p3), %vm1802_vm12, %v1794_v30, 1.0  ;;  %v1882_v47 = vsel (%p4141_p3), %vm1802_vm12, 1, %v3501_v12  ;;  %v1942_v12 = vld [vmem:[%s4111_s14 + $0x10] sm:$0xff] (%p4141_p3) }
 0x48c   : > { %1847 = vperm.xlu1 (%p4141_p3), %3039, %v1809_v43   ;;  %1852 = vperm.xlu0 (%p4141_p3), %3038, %v1810_v59   ;;  %v1928_v43 = vld [vmem:[%s4097_s25 + $0x20] sm:$0xff] (%p4141_p3) }
 0x490   : > { %1857 = vperm.xlu1 (%p4141_p3), %3039, %v1811_v33   ;;  %1885 = vperm.xlu0 (%p4141_p3), %3038, %v1876_v35  }
 0x494   : > { %1888 = vperm.xlu1 (%p4141_p3), %3039, %v1877_v44   ;;  %1891 = vperm.xlu0 (%p4141_p3), %3038, %v1878_v22  }
 0x498   : > { %1894 = vperm.xlu1 (%p4141_p3), %3039, %v1879_v25   ;;  %1897 = vperm.xlu0 (%p4141_p3), %3038, %v1880_v49  }
 0x49c   : > { %1900 = vperm.xlu1 (%p4141_p3), %3039, %v1881_v1   ;;  %1903 = vperm.xlu0 (%p4141_p3), %3038, %v1882_v47  }
 0x4a0   : > { %1906 = vperm.xlu1 (%p4141_p3), %3039, %v1883_v34   ;;  %v1944_v34 = vld [vmem:[%s4111_s14 + $0x20] sm:$0xff] (%p4141_p3) }
 0x4f9   : > { %v2678_v63 = vpop.f32.mrb[16].mxu0 }
 0x4fa   : > { %v1770_v55 = vadd.f32 %v2678_v63, %v1280_v10  ;;  %v1730_v11 = vpop.f32.mrb[17].mxu0 }
 0x4fb   : > { %v1769_v14 = vadd.f32 %v1730_v11, %v1279_v0 }
 0x4fc   : > { %1778 = vst [vmem:[#allocation2 + $0x8] sm:$0xff] %v1770_v55 }
 0x4fd   : > { %1777 = vst [vmem:[#allocation2] sm:$0xff] %v1769_v14  ;;  %v2681_v36 = vpop.f32.mrb[18].mxu0 }
 0x4fe   : > { %v1772_v28 = vadd.f32 %v2681_v36, %v1282_v17  ;;  %v1740_v23 = vpop.f32.mrb[19].mxu0  ;;  %v1925_v36 = vld [vmem:[%s4097_s25 + $0x8] sm:$0xff] (%p4141_p3) }
 0x4ff   : > { %v1771_v8 = vadd.f32 %v1740_v23, %v1281_v26  ;;  %v1823_v46 = vpop.permute.xlu0 (%p4141_p3), %1822 }
 0x500   : > { %1780 = vst [vmem:[#allocation2 + $0x18] sm:$0xff] %v1772_v28  ;;  %3040 = vrcp.f32 (%p4141_p3), %v1823_v46 }
 0x501   : > { %1779 = vst [vmem:[#allocation2 + $0x10] sm:$0xff] %v1771_v8  ;;  %v2684_v42 = vpop.f32.mrb[20].mxu0 }
 0x502   : > { %v1774_v19 = vadd.f32 %v2684_v42, %v1284_v4  ;;  %v1750_v48 = vpop.f32.mrb[21].mxu0  ;;  %v1941_v42 = vld [vmem:[%s4111_s14 + $0x8] sm:$0xff] (%p4141_p3) }
 0x503   : > { %v1773_v62 = vadd.f32 %v1750_v48, %v1283_v41  ;;  %1787 = sbr.rel (!%p4141_p3) target bundleno = 1496 (0x5d8), region = 80  ;;  %v1833_v2 = vpop.permute.xlu1 (%p4141_p3), %1832  ;;  %v1828_v58 = vpop.permute.xlu0 (%p4141_p3), %1827  ;;  %v1813_v63 = vld [vmem:[#allocation2 + $0x8] sm:$0xff] (%p4141_p3)  ;;  %v1927_v48 = vld [vmem:[%s4097_s25 + $0x18] sm:$0xff] (%p4141_p3) }
 0x504   : > { %1782 = vst [vmem:[#allocation2 + $0x28] sm:$0xff] %v1774_v19  ;;  %3042 = vrcp.f32 (%p4141_p3), %v1833_v2  ;;  %v1812_v10 = vld [vmem:[#allocation2] sm:$0xff] (%p4141_p3) }
 0x505   : > { %1781 = vst [vmem:[#allocation2 + $0x20] sm:$0xff] %v1773_v62  ;;  %v2687_v61 = vpop.f32.mrb[22].mxu0  ;;  %3044 = vrcp.f32 (%p4141_p3), %v1828_v58  ;;  %v1931_v58 = vld [vmem:[%s4097_s25 + $0x38] sm:$0xff] (%p4141_p3) }
 0x506   : > { %v1776_v20 = vadd.f32 %v2687_v61, %v1286_v16  ;;  %v1760_v60 = vpop.f32.mrb[23].mxu0  ;;  %v1926_v16 = vld [vmem:[%s4097_s25 + $0x10] sm:$0xff] (%p4141_p3) }
 0x507   : > { %v1775_v45 = vadd.f32 %v1760_v60, %v1285_v52  ;;  %v1838_v57 = vpop.permute.xlu1 (%p4141_p3), %1837  ;;  %v1843_v29 = vpop.permute.xlu0 (%p4141_p3), %1842  ;;  %v1815_v21 = vld [vmem:[#allocation2 + $0x18] sm:$0xff] (%p4141_p3) }
 0x508   : > { %1784 = vst [vmem:[#allocation2 + $0x38] sm:$0xff] %v1776_v20  ;;  %3046 = vrcp.f32 (%p4141_p3), %v1838_v57  ;;  %v1814_v28 = vld [vmem:[#allocation2 + $0x10] sm:$0xff] (%p4141_p3) }
 0x509   : > { %1783 = vst [vmem:[#allocation2 + $0x30] sm:$0xff] %v1775_v45 }
 0x50a   : > { %v3041_v6 = vpop.eup %3040 }
 0x50b   : > { %v1848_v3 = vpop.permute.xlu1 %1847  ;;  %v1853_v7 = vpop.permute.xlu0 %1852  ;;  %v1861_v11 = vmul.f32 %v3041_v6, %v1812_v10  ;;  %v1817_v20 = vld [vmem:[#allocation2 + $0x28] sm:$0xff] }
 0x50c   : > { %3048 = vrcp.f32 %v1848_v3  ;;  %v1816_v60 = vld [vmem:[#allocation2 + $0x20] sm:$0xff]  ;;  %v1945_v6 = vld [vmem:[%s4111_s14 + $0x28] sm:$0xff] }
 0x50d   : > { %3050 = vrcp.f32 %v1843_v29 }
 0x50e   : > { %v3043_v0 = vpop.eup %3042 }
 0x50f   : > { %v1858_v51 = vpop.permute.xlu1 %1857  ;;  %v3045_v9 = vpop.eup %3044  ;;  %v1865_v62 = vmul.f32 %v3043_v0, %v1814_v28  ;;  %v1819_v44 = vld [vmem:[#allocation2 + $0x38] sm:$0xff] }
 0x510   : > { %3052 = vrcp.f32 %v1858_v51  ;;  %v1886_v14 = vpop.permute.xlu0 %1885  ;;  %v1863_v26 = vmul.f32 %v3045_v9, %v1813_v63  ;;  %v1818_v35 = vld [vmem:[#allocation2 + $0x30] sm:$0xff] }
 0x511   : > { %3054 = vrcp.f32 %v1853_v7  ;;  %vm1908_vm1 = vcmp.eq.s32.totalorder %v1886_v14, 1  ;;  %v1930_v51 = vld [vmem:[%s4097_s25 + $0x30] sm:$0xff] }
 0x512   : > { %v3047_v17 = vpop.eup %3046  ;;  %v1916_v23 = vsel %vm1908_vm1, %v1861_v11, 0.0 }
 0x513   : > { %v1889_v55 = vpop.permute.xlu1 %1888  ;;  %v1932_v4 = vadd.f32 %v1924_v13, %v1916_v23  ;;  %v1867_v19 = vmul.f32 %v3047_v17, %v1815_v21 }
 0x514   : > { %vm1909_vm3 = vcmp.eq.s32.totalorder %v1889_v55, 1  ;;  %v1892_v61 = vpop.permute.xlu0 %1891  ;;  %v1946_v55 = vld [vmem:[%s4111_s14 + $0x30] sm:$0xff] }
 0x515   : > { %v1917_v8 = vsel %vm1909_vm3, %v1863_v26, 0.0  ;;  %vm1910_vm8 = vcmp.eq.s32.totalorder %v1892_v61, 1  ;;  %v4972_v45 = vmul.f32 %v1940_v37, %v1932_v4 }
 0x516   : > { %v3049_v41 = vpop.eup %3048  ;;  %v1933_v18 = vadd.f32 %v1925_v36, %v1917_v8  ;;  %v1918_v54 = vsel %vm1910_vm8, %v1865_v62, 0.0  ;;  %v1947_v36 = vld [vmem:[%s4111_s14 + $0x38] sm:$0xff] }
 0x517   : > { %v1895_v53 = vpop.permute.xlu1 %1894  ;;  %v3051_v52 = vpop.eup %3050  ;;  %v1934_v39 = vadd.f32 %v1926_v16, %v1918_v54  ;;  %v1956_v27 = vmul.f32 %v4972_v45, %v4972_v45  ;;  %v1871_v32 = vmul.f32 %v3049_v41, %v1817_v20 }
 0x518   : > { %vm1911_vm6 = vcmp.eq.s32.totalorder %v1895_v53, 1  ;;  %v4974_v56 = vmul.f32 %v1941_v42, %v1933_v18  ;;  %v1869_v30 = vmul.f32 %v3051_v52, %v1816_v60  ;;  %v1898_v40 = vpop.permute.xlu0 %1897 }
 0x519   : > { %v1919_v15 = vsel %vm1911_vm6, %v1867_v19, 0.0  ;;  %vm1912_vm10 = vcmp.eq.s32.totalorder %v1898_v40, 1  ;;  %1964 = vadd.xlane.f32.xlu0 %v1956_v27  ;;  %v4984_v25 = vmul.f32 %v1942_v12, %v1934_v39  ;;  %v2076_v40 = vld [vmem:[%s4104_s26] sm:$0xff] }
 0x51a   : > { %v1935_v38 = vadd.f32 %v1927_v48, %v1919_v15  ;;  %v3053_v31 = vpop.eup %3052  ;;  %v1957_v33 = vmul.f32 %v4974_v56, %v4974_v56  ;;  %v1920_v1 = vsel %vm1912_vm10, %v1869_v30, 0.0 }
 0x51b   : > { %v1901_v50 = vpop.permute.xlu1 %1900  ;;  %v3055_v59 = vpop.eup %3054  ;;  %v1936_v2 = vadd.f32 %v1928_v43, %v1920_v1  ;;  %v1958_v46 = vmul.f32 %v4984_v25, %v4984_v25  ;;  %v1875_v57 = vmul.f32 %v3053_v31, %v1819_v44 }
 0x51c   : > { %vm1913_vm0 = vcmp.eq.s32.totalorder %v1901_v50, 1  ;;  %1966 = vadd.xlane.f32.xlu1 %v1957_v33  ;;  %v4986_v49 = vmul.f32 %v1943_v24, %v1935_v38  ;;  %v1873_v29 = vmul.f32 %v3055_v59, %v1818_v35  ;;  %v1904_v7 = vpop.permute.xlu0 %1903 }
 0x51d   : > { %v1921_v22 = vsel %vm1913_vm0, %v1871_v32, 0.0  ;;  %vm1914_vm9 = vcmp.eq.s32.totalorder %v1904_v7, 1  ;;  %1968 = vadd.xlane.f32.xlu0 %v1958_v46  ;;  %v4994_v10 = vmul.f32 %v1944_v34, %v1936_v2 }
 0x51e   : > { %v1937_v47 = vadd.f32 %v1929_v5, %v1921_v22  ;;  %v1922_v0 = vsel %vm1914_vm9, %v1873_v29, 0.0  ;;  %v1959_v9 = vmul.f32 %v4986_v49, %v4986_v49 }
 0x51f   : > { %v1907_v3 = vpop.permute.xlu1 %1906  ;;  %v1938_v13 = vadd.f32 %v1930_v51, %v1922_v0  ;;  %v1960_v14 = vmul.f32 %v4994_v10, %v4994_v10  ;;  %v2077_v51 = vld [vmem:[%s4104_s26 + $0x8] sm:$0xff] }
 0x520   : > { %vm1915_vm5 = vcmp.eq.s32.totalorder %v1907_v3, 1  ;;  %v5001_v17 = vmul.f32 %v1945_v6, %v1937_v47  ;;  %v2084_v47 = vmul.f32 0.5, %v2076_v40  ;;  %v2083_v40 = vld [vmem:[%s4104_s26 + $0x38] sm:$0xff] }
 0x521   : > { %v1923_v63 = vsel %vm1915_vm5, %v1875_v57, 0.0  ;;  %1970 = vadd.xlane.f32.xlu0 %v1959_v9  ;;  %1972 = vadd.xlane.f32.xlu1 %v1960_v14  ;;  %v5004_v26 = vmul.f32 %v1946_v55, %v1938_v13 }
 0x522   : > { %v1939_v11 = vadd.f32 %v1931_v58, %v1923_v63  ;;  %v1961_v21 = vmul.f32 %v5001_v17, %v5001_v17 }
 0x523   : > { %v1962_v28 = vmul.f32 %v5004_v26, %v5004_v26 }
 0x524   : > { %v5010_v23 = vmul.f32 %v1947_v36, %v1939_v11  ;;  %v2085_v36 = vmul.f32 0.5, %v2077_v51 }
 0x525   : > { %1974 = vadd.xlane.f32.xlu0 %v1961_v21  ;;  %1976 = vadd.xlane.f32.xlu1 %v1962_v28  ;;  %v2078_v21 = vld [vmem:[%s4104_s26 + $0x10] sm:$0xff] }
 0x526   : > { %v1963_v37 = vmul.f32 %v5010_v23, %v5010_v23 }
 0x529   : > { %1978 = vadd.xlane.f32.xlu0 %v1963_v37 }
 0x5a6   : > { %v1965_v8 = vpop.xlane.xlu0 %1964 }
 0x5a7   : > { %3056 = vrsqrt.f32 %v1965_v8  ;;  %vm1982_vm7 = vcmp.eq.f32.partialorder %v1965_v8, inf  ;;  %vm1984_vm4 = vcmp.eq.f32.partialorder %v1965_v8, 0.0  ;;  %v1985_v52 = vand.u32 2147483648, %v1965_v8 }
 0x5a9   : > { %v1967_v4 = vpop.xlane.xlu1 %1966 }
 0x5aa   : > { %3058 = vrsqrt.f32 %v1967_v4  ;;  %v1969_v42 = vpop.xlane.xlu0 %1968  ;;  %vm1989_vm11 = vcmp.eq.f32.partialorder %v1967_v4, inf  ;;  %v1992_v20 = vand.u32 2147483648, %v1967_v4  ;;  %vm1991_vm2 = vcmp.eq.f32.partialorder %v1967_v4, 0.0 }
 0x5ab   : > { %3060 = vrsqrt.f32 %v1969_v42  ;;  %vm1996_vm15 = vcmp.eq.f32.partialorder %v1969_v42, inf  ;;  %v1999_v32 = vand.u32 2147483648, %v1969_v42  ;;  %vm1998_vm14 = vcmp.eq.f32.partialorder %v1969_v42, 0.0 }
 0x5ae   : > { %v1973_v41 = vpop.xlane.xlu1 %1972  ;;  %v1971_v18 = vpop.xlane.xlu0 %1970 }
 0x5af   : > { %3062 = vrsqrt.f32 %v1973_v41  ;;  %vm2010_vm13 = vcmp.eq.f32.partialorder %v1973_v41, inf  ;;  %vm2012_vm12 = vcmp.eq.f32.partialorder %v1973_v41, 0.0  ;;  %v2013_v44 = vand.u32 2147483648, %v1973_v41 }
 0x5b0   : > { %3064 = vrsqrt.f32 %v1971_v18  ;;  %vm2003_vm3 = vcmp.eq.f32.partialorder %v1971_v18, inf  ;;  %v2006_v1 = vand.u32 2147483648, %v1971_v18  ;;  %vm2005_vm1 = vcmp.eq.f32.partialorder %v1971_v18, 0.0 }
 0x5b1   : > { %v3057_v19 = vpop.eup %3056 }
 0x5b2   : > { %v1981_v53 = vmul.f32 %v3057_v19, %v1965_v8  ;;  %v5014_v62 = vpop.xlane.xlu1 %1976  ;;  %v5016_v16 = vpop.xlane.xlu0 %1974 }
 0x5b3   : > { %3066 = vrsqrt.f32 %v5014_v62  ;;  %vm2024_vm6 = vcmp.eq.f32.partialorder %v5014_v62, inf  ;;  %vm2026_vm8 = vcmp.eq.f32.partialorder %v5014_v62, 0.0  ;;  %v2027_v6 = vand.u32 2147483648, %v5014_v62 }
 0x5b4   : > { %v3059_v48 = vpop.eup %3058  ;;  %v1983_v60 = vsel %vm1982_vm7, %v1965_v8, %v1981_v53  ;;  %3068 = vrsqrt.f32 %v5016_v16  ;;  %vm2017_vm0 = vcmp.eq.f32.partialorder %v5016_v16, inf  ;;  %v2020_v9 = vand.u32 2147483648, %v5016_v16 }
 0x5b5   : > { %v1988_v61 = vmul.f32 %v3059_v48, %v1967_v4  ;;  %v3061_v15 = vpop.eup %3060  ;;  %v1986_v12 = vsel %vm1984_vm4, %v1985_v52, %v1983_v60  ;;  %vm2019_vm10 = vcmp.eq.f32.partialorder %v5016_v16, 0.0  ;;  %v2080_v52 = vld [vmem:[%s4104_s26 + $0x20] sm:$0xff]  ;;  %v2079_v60 = vld [vmem:[%s4104_s26 + $0x18] sm:$0xff] }
 0x5b6   : > { %v2036_v39 = vmax.f32 %v1986_v12, 1e-12  ;;  %v1995_v27 = vmul.f32 %v3061_v15, %v1969_v42  ;;  %v5020_v24 = vpop.xlane.xlu0 %1978 }
 0x5b7   : > { %v1990_v54 = vsel %vm1989_vm11, %v1967_v4, %v1988_v61  ;;  %3070 = vrsqrt.f32 %v5020_v24  ;;  %vm2031_vm5 = vcmp.eq.f32.partialorder %v5020_v24, inf  ;;  %vm2033_vm9 = vcmp.eq.f32.partialorder %v5020_v24, 0.0 }
 0x5b8   : > { %v1993_v38 = vsel %vm1991_vm2, %v1992_v20, %v1990_v54  ;;  %3072 = vrcp.f32 %v2036_v39  ;;  %v1997_v5 = vsel %vm1996_vm15, %v1969_v42, %v1995_v27  ;;  %v2088_v54 = vmul.f32 0.5, %v2080_v52  ;;  %v2082_v39 = vld [vmem:[%s4104_s26 + $0x30] sm:$0xff] }
 0x5b9   : > { %v2037_v31 = vmax.f32 %v1993_v38, 1e-12  ;;  %v3063_v50 = vpop.eup %3062  ;;  %v2000_v30 = vsel %vm1998_vm14, %v1999_v32, %v1997_v5  ;;  %v2087_v38 = vmul.f32 0.5, %v2079_v60  ;;  %v2090_v5 = vmul.f32 0.5, %v2082_v39 }
 0x5ba   : > { %v3065_v43 = vpop.eup %3064  ;;  %v2038_v33 = vmax.f32 %v2000_v30, 1e-12  ;;  %v2009_v59 = vmul.f32 %v3063_v50, %v1973_v41 }
 0x5bb   : > { %3074 = vrcp.f32 %v2037_v31  ;;  %v2002_v35 = vmul.f32 %v3065_v43, %v1971_v18  ;;  %v2081_v31 = vld [vmem:[%s4104_s26 + $0x28] sm:$0xff] }
 0x5bc   : > { %3076 = vrcp.f32 %v2038_v33  ;;  %v2011_v22 = vsel %vm2010_vm13, %v1973_v41, %v2009_v59  ;;  %v2089_v43 = vmul.f32 0.5, %v2081_v31 }
 0x5bd   : > { %v3067_v34 = vpop.eup %3066  ;;  %v2014_v2 = vsel %vm2012_vm12, %v2013_v44, %v2011_v22  ;;  %v2004_v46 = vsel %vm2003_vm3, %v1971_v18, %v2002_v35  ;;  %v2034_v18 = vand.u32 2147483648, %v5020_v24  ;;  %v2091_v44 = vmul.f32 0.5, %v2083_v40 }
 0x5be   : > { %v3069_v57 = vpop.eup %3068  ;;  %v2040_v58 = vmax.f32 %v2014_v2, 1e-12  ;;  %v2007_v3 = vsel %vm2005_vm1, %v2006_v1, %v2004_v46  ;;  %v2023_v29 = vmul.f32 %v3067_v34, %v5014_v62 }
 0x5bf   : > { %v2039_v7 = vmax.f32 %v2007_v3, 1e-12  ;;  %v2016_v63 = vmul.f32 %v3069_v57, %v5016_v16 }
 0x5c0   : > { %3078 = vrcp.f32 %v2040_v58  ;;  %v2025_v0 = vsel %vm2024_vm6, %v5014_v62, %v2023_v29 }
 0x5c1   : > { %v3071_v55 = vpop.eup %3070  ;;  %3080 = vrcp.f32 %v2039_v7  ;;  %v2028_v11 = vsel %vm2026_vm8, %v2027_v6, %v2025_v0  ;;  %v2018_v13 = vsel %vm2017_vm0, %v5016_v16, %v2016_v63 }
 0x5c2   : > { %v3073_v14 = vpop.eup %3072  ;;  %v2042_v28 = vmax.f32 %v2028_v11, 1e-12  ;;  %v2021_v37 = vsel %vm2019_vm10, %v2020_v9, %v2018_v13  ;;  %v2030_v8 = vmul.f32 %v3071_v55, %v5020_v24 }
 0x5c3   : > { %v2060_v42 = vmul.f32 %v3073_v14, %v4972_v45  ;;  %v2041_v41 = vmax.f32 %v2021_v37, 1e-12  ;;  %v2086_v45 = vmul.f32 0.5, %v2078_v21 }
 0x5c4   : > { %3082 = vrcp.f32 %v2042_v28  ;;  %v2032_v48 = vsel %vm2031_vm5, %v5020_v24, %v2030_v8 }
 0x5c5   : > { %v3075_v4 = vpop.eup %3074  ;;  %2068 = vst [vmem:[%s4157_s2] sm:$0xff] %v2060_v42  ;;  %v2092_v53 = vadd.f32 %v2084_v47, %v2060_v42  ;;  %3084 = vrcp.f32 %v2041_v41  ;;  %v2035_v62 = vsel %vm2033_vm9, %v2034_v18, %v2032_v48 }
 0x5c6   : > { %v2061_v19 = vmul.f32 %v3075_v4, %v4974_v56  ;;  %v3077_v16 = vpop.eup %3076  ;;  %v2043_v56 = vmax.f32 %v2035_v62, 1e-12 }
 0x5c7   : > { %2100 = vst [vmem:[%s4159_s5] sm:$0xff] %v2092_v53  ;;  %v2062_v20 = vmul.f32 %v3077_v16, %v4984_v25 }
 0x5c8   : > { %2069 = vst [vmem:[%s4157_s2 + $0x8] sm:$0xff] %v2061_v19  ;;  %v2093_v61 = vadd.f32 %v2085_v36, %v2061_v19  ;;  %3086 = vrcp.f32 %v2043_v56 }
 0x5c9   : > { %2070 = vst [vmem:[%s4157_s2 + $0x10] sm:$0xff] %v2062_v20  ;;  %v2094_v15 = vadd.f32 %v2086_v45, %v2062_v20 }
 0x5ca   : > { %2101 = vst [vmem:[%s4159_s5 + $0x8] sm:$0xff] %v2093_v61  ;;  %v3079_v12 = vpop.eup %3078 }
 0x5cb   : > { %v3081_v27 = vpop.eup %3080  ;;  %2102 = vst [vmem:[%s4159_s5 + $0x10] sm:$0xff] %v2094_v15  ;;  %v2064_v24 = vmul.f32 %v3079_v12, %v4994_v10 }
 0x5cc   : > { %v2063_v25 = vmul.f32 %v3081_v27, %v4986_v49 }
 0x5cd   : > { %2072 = vst [vmem:[%s4157_s2 + $0x20] sm:$0xff] %v2064_v24  ;;  %v2096_v32 = vadd.f32 %v2088_v54, %v2064_v24 }
 0x5ce   : > { %v3083_v50 = vpop.eup %3082  ;;  %2071 = vst [vmem:[%s4157_s2 + $0x18] sm:$0xff] %v2063_v25  ;;  %v2095_v30 = vadd.f32 %v2087_v38, %v2063_v25 }
 0x5cf   : > { %v3085_v33 = vpop.eup %3084  ;;  %2104 = vst [vmem:[%s4159_s5 + $0x20] sm:$0xff] %v2096_v32  ;;  %v2066_v10 = vmul.f32 %v3083_v50, %v5004_v26 }
 0x5d0   : > { %2103 = vst [vmem:[%s4159_s5 + $0x18] sm:$0xff] %v2095_v30  ;;  %v2065_v49 = vmul.f32 %v3085_v33, %v5001_v17 }
 0x5d1   : > { %2074 = vst [vmem:[%s4157_s2 + $0x30] sm:$0xff] %v2066_v10  ;;  %v2098_v59 = vadd.f32 %v2090_v5, %v2066_v10 }
 0x5d2   : > { %v3087_v35 = vpop.eup %3086  ;;  %2073 = vst [vmem:[%s4157_s2 + $0x28] sm:$0xff] %v2065_v49  ;;  %v2097_v22 = vadd.f32 %v2089_v43, %v2065_v49 }
 0x5d3   : > { %2106 = vst [vmem:[%s4159_s5 + $0x30] sm:$0xff] %v2098_v59  ;;  %v2067_v1 = vmul.f32 %v3087_v35, %v5010_v23 }
 0x5d4   : > { %2105 = vst [vmem:[%s4159_s5 + $0x28] sm:$0xff] %v2097_v22 }
 0x5d5   : > { %2075 = vst [vmem:[%s4157_s2 + $0x38] sm:$0xff] %v2067_v1  ;;  %v2099_v34 = vadd.f32 %v2091_v44, %v2067_v1 }
 0x5d7   : > { %2107 = vst [vmem:[%s4159_s5 + $0x38] sm:$0xff] %v2099_v34 }
 0x5d8 PF: > { %s5569_s9 = sld [smem:[#allocation48_spill]]  ;;  %s5571_s20 = sld [smem:[#allocation50_spill]] }
 0x5d9   : > { %s5572_s25 = sld [smem:[#allocation39_spill]]  ;;  %s2128_s3 = sshll.u32 %s4157_s2, 4  ;;  %s5081_s3 = int_to_ptr.vmem [resolvable:$true] %s2128_s3 }
 0x5da   : > { %s5574_s4 = sld [smem:[#allocation83_spill]]  ;;  %s2145_s13 = sshll.u32 %s4159_s5, 4  ;;  %s5122_s13 = int_to_ptr.vmem [resolvable:$true] %s2145_s13 }
 0x5db   : > { %s3250_s2 = scalar_lea.vmem %s5081_s3, 1024  ;;  %s3502_s8 = smov [#allocation16]  }
 0x5dc   : > { %p3251_p2 = scmp.ne.s32.totalorder %s5081_s3, %s3250_s2  ;;  %s3254_s1 = sshll.u32 %s3502_s8, 4  ;;  %s3255_s1 = int_to_ptr.vmem [resolvable:$false] %s3254_s1 }
 0x5dd   : > { %p3257_p12 = scmp.lt.s32.totalorder %s5081_s3, %s3255_s1 }
 0x5de   : > { %p5570_p8 = scmp.ne.s32.totalorder %s5569_s9, 0  ;;  %p5573_p9 = scmp.ne.s32.totalorder %s5571_s20, 0 }
 0x5df   : > { %s5575_s11 = sand.u32 1, %s5572_s25  }
 0x5e0   : > { %s2800_s26 = scalar_select %p5570_p8, [#allocation6], [#allocation22] }
 0x5e1   : > { %s2801_s14 = scalar_select %p5570_p8, %s3658_s16, 0 }
 0x5e2   : > { %s2803_s23 = scalar_select %p5573_p9, [#allocation6], [#allocation23] }
 0x5e3   : > { %s2121_s19 = sld [smem:[%s2800_s26 + %s2801_s14]]  ;;  %s5631_s16 = smov (!%p5573_p9, %s3658_s16), 0 }
 0x5e4   : > { %s5083_s29 = sld [smem:[%s2803_s23 + %s5631_s16]]  ;;  %s5093_s18 = scalar_lea.sflag [#allocation9], %s5575_s11 }
 0x5e5   : > { %p3252_p11 = pnand %p3251_p2, %p5570_p8  ;;  %s3256_s16 = scalar_lea.vmem %s3255_s1, 2048 }
 0x5e6   : > { %p3258_p5 = scmp.lt.s32.totalorder %s3256_s16, %s3250_s2 }
 0x5e7   : > { %p3253_p4 = pneg %p3252_p11 }
 0x5e8   : > { %p3259_p0 = por %p3258_p5, %p3257_p12 }
 0x5e9   : > { %s2486_s0 = sshll.u32 %s2121_s19, 10 }
 0x5ea   : > { %s5088_s12 = scalar_lea.hbm %s5574_s4, %s2486_s0  ;;  %p3260_p13 = pnand %p3259_p0, %p3253_p4 }
 0x5ec   : > { %3263 = shalt.err (!%p3260_p13)
}
 0x5ed   : > { %s3264_s21 = scalar_lea.hbm %s5088_s12, 1024  ;;  %s3268_s26 = scalar_lea.hbm %s5574_s4, 2048 }
 0x5ee   : > { %p3265_p6 = scmp.ne.s32.totalorder %s5088_s12, %s3264_s21  ;;  %p3269_p7 = scmp.lt.u32.totalorder %s5088_s12, %s5574_s4 }
 0x5ef   : > { %p3270_p3 = scmp.lt.u32.totalorder %s3268_s26, %s3264_s21  ;;  %p3272_p11 = scmp.lt.u32.totalorder %s3264_s21, %s5088_s12 }
 0x5f0   : > { %p3266_p1 = pnand %p3265_p6, %p5570_p8 }
 0x5f1   : > { %p3271_p2 = por %p3270_p3, %p3269_p7 }
 0x5f2   : > { %p3267_p10 = pneg %p3266_p1 }
 0x5f3   : > { %p3273_p4 = por %p3272_p11, %p3271_p2 }
 0x5f5   : > { %p3274_p12 = pnand %p3273_p4, %p3267_p10 }
 0x5f7   : > { %3277 = shalt.err (!%p3274_p12)
}
 0x5f8   : > { %s3503_s23 = smov 128   ;;  %s5576_s0 = sld [smem:[#allocation36_spill]] }
 0x5f9   : > { %s3504_s17 = smov 8   ;;  %s2487_s6 = sshll.u32 %s5083_s29, 10 }
 0x5fa   : > { %2802 = dma.vmem_to_hbm [thread:$0]  (%p5570_p8), %s5081_s3, 1024, %s5088_s12, %s5093_s18, %s3503_s23, %s3503_s23, %s3504_s17  }
 0x5fb   : > { %s5577_s8 = sld [smem:[#allocation84_spill]]  ;;  %s3278_s9 = scalar_lea.vmem %s5122_s13, 1024 }
 0x5fc   : > { %p3279_p5 = scmp.ne.s32.totalorder %s5122_s13, %s3278_s9  ;;  %s3505_s5 = smov [#allocation17]  }
 0x5fd   : > { %s3282_s3 = sshll.u32 %s3505_s5, 4  ;;  %s3283_s3 = int_to_ptr.vmem [resolvable:$false] %s3282_s3 }
 0x5fe   : > { %s5578_s16 = sand.u32 1, %s5576_s0   ;;  %p3280_p0 = pnand %p3279_p5, %p5573_p9 }
 0x5ff   : > { %s5132_s21 = scalar_lea.sflag [#allocation18], %s5578_s16  ;;  %s3284_s12 = scalar_lea.vmem %s3283_s3, 2048 }
 0x600   : > { %p3281_p8 = pneg %p3280_p0  ;;  %p3285_p13 = scmp.lt.s32.totalorder %s5122_s13, %s3283_s3 }
 0x601   : > { %s5128_s1 = scalar_lea.hbm %s5577_s8, %s2487_s6  ;;  %p3286_p6 = scmp.lt.s32.totalorder %s3284_s12, %s3278_s9 }
 0x603   : > { %p3287_p1 = por %p3286_p6, %p3285_p13 }
 0x605   : > { %p3288_p10 = pnand %p3287_p1, %p3281_p8 }
 0x607   : > { %3291 = shalt.err (!%p3288_p10)
}
 0x608   : > { %s3292_s29 = scalar_lea.hbm %s5128_s1, 1024  ;;  %s3296_s25 = scalar_lea.hbm %s5577_s8, 2048 }
 0x609   : > { %p3293_p7 = scmp.ne.s32.totalorder %s5128_s1, %s3292_s29  ;;  %p3297_p11 = scmp.lt.u32.totalorder %s5128_s1, %s5577_s8 }
 0x60a   : > { %p3298_p4 = scmp.lt.u32.totalorder %s3296_s25, %s3292_s29  ;;  %p3300_p5 = scmp.lt.u32.totalorder %s3292_s29, %s5128_s1 }
 0x60b   : > { %p3294_p3 = pnand %p3293_p7, %p5573_p9 }
 0x60c   : > { %p3299_p12 = por %p3298_p4, %p3297_p11 }
 0x60d   : > { %p3295_p2 = pneg %p3294_p3 }
 0x60e   : > { %p3301_p0 = por %p3300_p5, %p3299_p12 }
 0x610   : > { %p3302_p8 = pnand %p3301_p0, %p3295_p2 }
 0x612   : > { %3305 = shalt.err (!%p3302_p8)
}
 0x613   : > { %2805 = dma.vmem_to_hbm [thread:$0]  (%p5573_p9), %s5122_s13, 1024, %s5128_s1, %s5132_s21, %s3503_s23, %s3503_s23, %s3504_s17  }
 0x614 PF: > { %s5579_s19 = sld [smem:[#allocation38_spill]]  ;;  %s5580_s0 = sld [smem:[#allocation49_spill]] }
 0x615   : > { %p2838_p13 = scmp.ge.s32.totalorder %s3486_s15, 2 }
 0x61a   : > { %s2160_s6 = sand.u32 1, %s5579_s19   ;;  %p5581_p6 = scmp.ne.s32.totalorder %s5580_s0, 0 }
 0x61b   : > { %s2161_s11 = scalar_lea.sflag [#allocation9], %s2160_s6 }
 0x61c   : > { %p2831_p1 = pnand %p2838_p13, %p5581_p6 }
 0x61e   : > { %3405 = dma.done.wait (!%p2831_p1), %s2161_s11, 1024  }
 0x61f   : > { %3407 = vsyncadd (!%p2831_p1), %s2161_s11, 4294966272  ;;  %s5582_s2 = sld [smem:[#allocation35_spill]]  ;;  %s5583_s20 = sld [smem:[#allocation52_spill]] }
 0x625   : > { %s2169_s16 = sand.u32 1, %s5582_s2   ;;  %p5584_p10 = scmp.ne.s32.totalorder %s5583_s20, 0 }
 0x626   : > { %s2170_s9 = scalar_lea.sflag [#allocation18], %s2169_s16 }
 0x627   : > { %p2834_p7 = pnand %p2838_p13, %p5584_p10 }
 0x629   : > { %3409 = dma.done.wait (!%p2834_p7), %s2170_s9, 1024  }
 0x62a   : > { %3411 = vsyncadd (!%p2834_p7), %s2170_s9, 4294966272  ;;  %s5585_s0 = sld [smem:[#allocation36_spill]]  ;;  %s5586_s18 = sld [smem:[#allocation37_spill]] }
 0x62b   : > { %s5587_s19 = sld [smem:[#allocation53_spill]]  ;;  %s5589_s21 = sld [smem:[#allocation40_spill]] }
 0x62c   : > { %s5588_s20 = sld [smem:[#allocation39_spill]]  ;;  %s5590_s15 = sld [smem:[#allocation51_spill]] }
 0x62d   : > { %s5591_s13 = sld [smem:[#allocation42_spill]]  ;;  %s5592_s17 = smov %s5619_s22 }
 0x62e   : > { %s5593_s1 = sld [smem:[#allocation54_spill]]  ;;  %s5594_s5 = sld [smem:[#allocation43_spill]] }
 0x62f   : > { %s5595_s11 = sld [smem:[#allocation55_spill]]  ;;  %p39_p9 = scmp.ge.s32.totalorder %s3662_s10, 7  }
 0x630   : > { %s5596_s12 = sld [smem:[#allocation44_spill]]  ;;  %s5597_s3 = sld [smem:[#allocation45_spill]] }
 0x631   : > { %s5598_s14 = sld [smem:[#allocation46_spill]]  ;;  %s5600_s23 = smov %s3442_s24 }
 0x632   : > { %s5599_s22 = smov %s5590_s15  ;;  %s5602_s25 = smov %s5592_s17 }
 0x633   : > { %s5601_s24 = smov %s5591_s13  ;;  %s5603_s26 = smov %s3454_s27 }
 0x634   : > { %s5604_s27 = smov %s3458_s28  ;;  %s5605_s28 = smov %s5593_s1 }
 0x635   : > { %s5606_s29 = smov %s3466_s30  ;;  %s5607_s30 = smov %s5594_s5 }
 0x636   : > { %s5608_s13 = smov %s5597_s3  ;;  %s5609_s15 = smov %s3662_s10 }
 0x637   :  { %41 = sbr.rel (!%p39_p9) target bundleno = 36 (0x24), region = 179 }
 0x63e   :  { %2175 = vsyncpa [#allocation8], 1 }
 0x63f   :  { %2177 = vsyncpa [#allocation8 + $0x1], 1 }
 0x640   :  { %2178 = vsyncpa [#allocation11], 1 }
 0x641   :  { %2180 = vsyncpa [#allocation11 + $0x1], 1 }
 0x642   :  { %2181 = vsyncpa [#allocation14], 1 }
 0x643   :  { %2183 = vsyncpa [#allocation14 + $0x1], 1 }
 0x644   :  { %2184 = vsyncpa [#allocation9], 1 }
 0x645   :  { %2186 = vsyncpa [#allocation9 + $0x1], 1 }
 0x646   :  { %2187 = vsyncpa [#allocation18], 1 }
 0x647   :  { %2189 = vsyncpa [#allocation18 + $0x1], 1 }

</bundles_post_ra>
